<compile_context>
chip_gen: v6e
topology: v6e:2x2x1
jax: 0.10.0
libtpu: 0.0.40
codegen_flags: <defaults>
</compile_context>

<pallas_src>
import functools

import jax
import jax.numpy as jnp
from jax import lax
from jax.experimental import pallas as pl
from jax.experimental.pallas import tpu as pltpu

# ---------------------------------------------------------------------------
# Packed-weight layout: one f32 (144, 512) VMEM buffer per GRU block.
#   rows [0, din)        cols [0, 3G)      : input weight  W_ih (gate slabs)
#   rows [0, z)          cols [3G, 3G+G)   : z2h weight (encoder blocks only)
#   rows [8, 8+G)        cols [0, 3G)      : recurrent weight W_hh
#   rows [8, 8+G)        cols [3G, ...)    : [fc_mu | fc_logsig]  (encoder)
#                                            or fused fc_out      (decoder)
#   row 136 : folded input bias (b_ih + b_hr/b_hz folds), width 3G
#   row 137 : b_hn, width G
#   row 138 : [b_mu | b_logsig] (encoder) / b_out (decoder)
#   row 139 : b_z2h, width G (encoder blocks only)
# Every gate occupies its own 128-lane slab (G = 128); padded rows/cols are 0.
# ---------------------------------------------------------------------------
_GH = 128
_ROW_WIH = 0
_ROW_WHH = 8
_ROW_BIAS = _ROW_WHH + _GH          # 136
_PACK_ROWS = _ROW_BIAS + 8          # 144
_PACK_COLS = 3 * _GH + 128          # 512


# ----------------------------- in-kernel helpers -----------------------------
def _gru_cell(gi, gh, h, bhn_b):
    """PyTorch GRU cell with [r, z, n] gate slabs of width _GH."""
    G = _GH
    r = jax.nn.sigmoid(gi[:, 0:G] + gh[:, 0:G])
    z = jax.nn.sigmoid(gi[:, G:2 * G] + gh[:, G:2 * G])
    n = jnp.tanh(gi[:, 2 * G:3 * G] + r * (gh[:, 2 * G:3 * G] + bhn_b))
    return (1.0 - z) * n + z * h


def _gru_run(p_ref, x_at, seq_len, batch, din, h0):
    """Statically unrolled GRU over seq_len steps; returns list of hiddens."""
    G = _GH
    wih = p_ref[_ROW_WIH:_ROW_WIH + din, 0:3 * G]                     # (din,3G)
    # bias broadcasts hoisted out of the loop (JAX does not CSE them)
    bi_b = jnp.broadcast_to(p_ref[_ROW_BIAS:_ROW_BIAS + 1, 0:3 * G],
                            (batch, 3 * G))
    bhn_b = jnp.broadcast_to(p_ref[_ROW_BIAS + 1:_ROW_BIAS + 2, 0:G],
                             (batch, G))
    h = h0
    hs = []
    for t in range(seq_len):      # static unroll (T=8): one basic block
        gi = jnp.dot(x_at(t), wih, preferred_element_type=jnp.float32) + bi_b
        gh = jnp.dot(h, p_ref[_ROW_WHH:_ROW_WHH + G, 0:3 * G],
                     preferred_element_type=jnp.float32)
        h = _gru_cell(gi, gh, h, bhn_b)
        hs.append(h)
    return hs


def _latent_head(p_ref, h, eps, z):
    """[fc_mu|fc_logsig] -> reparam -> tanh(z2h).  Returns (mu_ls, h0_dec)."""
    G = _GH
    wml = p_ref[_ROW_WHH:_ROW_WHH + G, 3 * G:3 * G + 2 * z]
    bml = p_ref[_ROW_BIAS + 2:_ROW_BIAS + 3, 0:2 * z]
    mu_ls = jnp.dot(h, wml, preferred_element_type=jnp.float32) + bml
    mu = mu_ls[:, 0:z]
    ls = mu_ls[:, z:2 * z]
    # matches torch: mu + exp(logsig).mul(0.5).mul(randn)
    zlat = mu + jnp.exp(ls) * 0.5 * eps
    wz2h = p_ref[0:z, 3 * G:3 * G + G]
    bz2h = p_ref[_ROW_BIAS + 3:_ROW_BIAS + 4, 0:G]
    h0 = jnp.tanh(jnp.dot(zlat, wz2h, preferred_element_type=jnp.float32)
                  + bz2h)
    return mu_ls, h0


def _output_head(p_ref, hs, batch, dout):
    """Fused output linear on every hidden state; returns list of (B, dout)."""
    G = _GH
    wout = p_ref[_ROW_WHH:_ROW_WHH + G, 3 * G:3 * G + dout]
    bout_b = jnp.broadcast_to(p_ref[_ROW_BIAS + 2:_ROW_BIAS + 3, 0:dout],
                              (batch, dout))
    return [jnp.dot(h, wout, preferred_element_type=jnp.float32) + bout_b
            for h in hs]


# --------------------------------- kernels -----------------------------------
def _crvae_phase1_kernel(xp_ref, xc_ref, eps_ref, enc_ref, dec_ref,
                         mu_ls_ref, recon_ref, *, seq_len, batch, d, z):
    h_zero = jnp.zeros((batch, _GH), jnp.float32)            # nn.GRU h0 = 0

    # Encoder GRU + fused latent head.
    hs = _gru_run(enc_ref, lambda t: xp_ref[t], seq_len, batch, d, h_zero)
    mu_ls, h0_dec = _latent_head(enc_ref, hs[-1], eps_ref[...], z)
    mu_ls_ref[...] = mu_ls

    # Teacher forcing done by indexing: dec_in = [x_past[-1], x_cur[:-1]].
    def dec_x(t):
        return xp_ref[seq_len - 1] if t == 0 else xc_ref[t - 1]

    hs_d = _gru_run(dec_ref, dec_x, seq_len, batch, d, h0_dec)
    outs = _output_head(dec_ref, hs_d, batch, d)
    for t in range(seq_len):                  # leading-axis (aligned) stores
        recon_ref[t] = outs[t]


def _crvae_phase2_kernel(xp_ref, xc_ref, eps1_ref, eps2_ref,
                         enc_ref, dec_ref, ev_enc_ref, ev_dec_ref,
                         mu_ls_ref, mu_ls_e_ref, recon_plus_ref,
                         *, seq_len, batch, d, z, z2):
    h_zero = jnp.zeros((batch, _GH), jnp.float32)

    # Main encoder + latent head.
    hs = _gru_run(enc_ref, lambda t: xp_ref[t], seq_len, batch, d, h_zero)
    mu_ls, h0_dec = _latent_head(enc_ref, hs[-1], eps1_ref[...], z)
    mu_ls_ref[...] = mu_ls

    # Batched decoder heads.
    def dec_x(t):
        return xp_ref[seq_len - 1] if t == 0 else xc_ref[t - 1]

    hs_d = _gru_run(dec_ref, dec_x, seq_len, batch, d, h0_dec)
    recon = _output_head(dec_ref, hs_d, batch, d)            # list of (B, d)

    # Residual for the ErrorVAE (torch .detach() only affects backward).
    res = [xc_ref[t] - recon[t] for t in range(seq_len)]

    # ErrorVAE encoder + latent head (fused, residual never leaves VMEM).
    hs_e = _gru_run(ev_enc_ref, lambda t: res[t], seq_len, batch, d, h_zero)
    mu_ls_e, h0_e = _latent_head(ev_enc_ref, hs_e[-1], eps2_ref[...], z2)
    mu_ls_e_ref[...] = mu_ls_e

    # ErrorVAE decoder + fused output linear; emit recon + eps_hat directly.
    hs_ed = _gru_run(ev_dec_ref, lambda t: res[t], seq_len, batch, d, h0_e)
    eps_hat = _output_head(ev_dec_ref, hs_ed, batch, d)
    for t in range(seq_len):
        recon_plus_ref[t] = recon[t] + eps_hat[t]


# --------------------------- parameter init / pack ---------------------------
def init_params(key, D, H, Z):
    H2, Z2 = H // 2, Z // 2
    keys = iter(jax.random.split(key, 64))

    def nrm(shape, scale=0.1):
        return scale * jax.random.normal(next(keys), shape, dtype=jnp.float32)

    def gru_params(din, h):
        return dict(wih_t=nrm((din, 3 * h)), whh_t=nrm((h, 3 * h)),
                    bih=nrm((3 * h,)), bhh=nrm((3 * h,)))

    def lin_params(din, dout):
        return dict(w_t=nrm((din, dout)), b=nrm((dout,)))

    return dict(
        encoder=dict(gru=gru_params(D, H), fc_mu=lin_params(H, Z),
                     fc_logsig=lin_params(H, Z)),
        z2h=lin_params(Z, H),
        W_in=[0.01 * jax.random.normal(next(keys), (D, H), dtype=jnp.float32)
              for _ in range(D)],
        heads=[dict(gru=gru_params(H, H), fc_out=lin_params(H, 1))
               for _ in range(D)],
        err_vae=dict(enc=gru_params(D, H2), dec=gru_params(D, H2),
                     mu=lin_params(H2, Z2), logsig=lin_params(H2, Z2),
                     z2h=lin_params(Z2, H2), out=lin_params(H2, D)),
    )


def _pack_gru(wih_t, whh_t, bih, bhh, h):
    """Pad [r,z,n] gates (hidden h) into _GH-wide lane slabs; fold b_hr/b_hz
    into the input bias (exact).  b_hn is kept separate (inside r*(...))."""
    G = _GH
    assert h <= G
    din = wih_t.shape[0]
    wih_p = jnp.zeros((din, 3 * G), jnp.float32)
    whh_p = jnp.zeros((G, 3 * G), jnp.float32)
    bi_p = jnp.zeros((3 * G,), jnp.float32)
    for g in range(3):
        wih_p = wih_p.at[:, g * G:g * G + h].set(wih_t[:, g * h:(g + 1) * h])
        whh_p = whh_p.at[0:h, g * G:g * G + h].set(whh_t[:, g * h:(g + 1) * h])
        b = bih[g * h:(g + 1) * h]
        if g < 2:                               # fold recurrent r/z biases
            b = b + bhh[g * h:(g + 1) * h]
        bi_p = bi_p.at[g * G:g * G + h].set(b)
    bhn_p = jnp.zeros((G,), jnp.float32).at[0:h].set(bhh[2 * h:3 * h])
    return wih_p, whh_p, bi_p, bhn_p


def _pack_encoder_block(gru, h, wmu_t, bmu, wls_t, bls, z, wz2h_t, bz2h, hout):
    G = _GH
    din = gru["wih_t"].shape[0]
    assert din <= 8 and z <= 8 and hout <= G
    wih_p, whh_p, bi_p, bhn_p = _pack_gru(gru["wih_t"], gru["whh_t"],
                                          gru["bih"], gru["bhh"], h)
    buf = jnp.zeros((_PACK_ROWS, _PACK_COLS), jnp.float32)
    buf = buf.at[0:din, 0:3 * G].set(wih_p)
    buf = buf.at[_ROW_WHH:_ROW_WHH + G, 0:3 * G].set(whh_p)
    wml = jnp.zeros((G, 2 * z), jnp.float32)
    wml = wml.at[0:h, 0:z].set(wmu_t).at[0:h, z:2 * z].set(wls_t)
    buf = buf.at[_ROW_WHH:_ROW_WHH + G, 3 * G:3 * G + 2 * z].set(wml)
    wz = jnp.zeros((z, G), jnp.float32).at[:, 0:hout].set(wz2h_t)
    buf = buf.at[0:z, 3 * G:3 * G + G].set(wz)
    buf = buf.at[_ROW_BIAS, 0:3 * G].set(bi_p)
    buf = buf.at[_ROW_BIAS + 1, 0:G].set(bhn_p)
    buf = buf.at[_ROW_BIAS + 2, 0:z].set(bmu)
    buf = buf.at[_ROW_BIAS + 2, z:2 * z].set(bls)
    buf = buf.at[_ROW_BIAS + 3, 0:G].set(
        jnp.zeros((G,), jnp.float32).at[0:hout].set(bz2h))
    return buf


def _pack_decoder_block(wih_t, whh_t, bih, bhh, h, wout_t, bout, dout):
    G = _GH
    din = wih_t.shape[0]
    assert din <= 8 and h <= G
    wih_p, whh_p, bi_p, bhn_p = _pack_gru(wih_t, whh_t, bih, bhh, h)
    buf = jnp.zeros((_PACK_ROWS, _PACK_COLS), jnp.float32)
    buf = buf.at[0:din, 0:3 * G].set(wih_p)
    buf = buf.at[_ROW_WHH:_ROW_WHH + G, 0:3 * G].set(whh_p)
    wo = jnp.zeros((G, dout), jnp.float32).at[0:h, :].set(wout_t)
    buf = buf.at[_ROW_WHH:_ROW_WHH + G, 3 * G:3 * G + dout].set(wo)
    buf = buf.at[_ROW_BIAS, 0:3 * G].set(bi_p)
    buf = buf.at[_ROW_BIAS + 1, 0:G].set(bhn_p)
    buf = buf.at[_ROW_BIAS + 2, 0:dout].set(bout)
    return buf


def pack_params(params):
    """One-time, exact weight fold/pack (off the hot path)."""
    D = len(params["W_in"])
    H = params["z2h"]["w_t"].shape[1]
    Z = params["encoder"]["fc_mu"]["w_t"].shape[1]
    DH = D * H
    assert DH <= _GH, "batched decoder hidden D*H must fit one 128-lane slab"

    # Batched decoder heads: fold W_in (no bias/activation -> exact), build a
    # block-diagonal recurrent weight ([gate, head, unit] columns) and a
    # block fc_out so all D heads run as a single 128-wide GRU.
    wih = jnp.zeros((D, 3 * DH), jnp.float32)
    whh = jnp.zeros((DH, 3 * DH), jnp.float32)
    bih = jnp.zeros((3 * DH,), jnp.float32)
    bhh = jnp.zeros((3 * DH,), jnp.float32)
    wout = jnp.zeros((DH, D), jnp.float32)
    bout = jnp.zeros((D,), jnp.float32)
    for p in range(D):
        head = params["heads"][p]
        g = head["gru"]
        wih_eff = params["W_in"][p] @ g["wih_t"]               # (D, 3H)
        for gate in range(3):
            dst = gate * DH + p * H
            src = gate * H
            wih = wih.at[:, dst:dst + H].set(wih_eff[:, src:src + H])
            whh = whh.at[p * H:(p + 1) * H, dst:dst + H].set(
                g["whh_t"][:, src:src + H])
            bih = bih.at[dst:dst + H].set(g["bih"][src:src + H])
            bhh = bhh.at[dst:dst + H].set(g["bhh"][src:src + H])
        wout = wout.at[p * H:(p + 1) * H, p].set(head["fc_out"]["w_t"][:, 0])
        bout = bout.at[p].set(head["fc_out"]["b"][0])

    enc = params["encoder"]
    ev = params["err_vae"]
    H2 = ev["z2h"]["w_t"].shape[1]
    Z2 = ev["mu"]["w_t"].shape[1]

    return dict(
        enc_pack=_pack_encoder_block(
            enc["gru"], H,
            enc["fc_mu"]["w_t"], enc["fc_mu"]["b"],
            enc["fc_logsig"]["w_t"], enc["fc_logsig"]["b"], Z,
            jnp.tile(params["z2h"]["w_t"], (1, D)),   # same h0 to every head
            jnp.tile(params["z2h"]["b"], (D,)), DH),
        dec_pack=_pack_decoder_block(wih, whh, bih, bhh, DH, wout, bout, D),
        ev_enc_pack=_pack_encoder_block(
            ev["enc"], H2, ev["mu"]["w_t"], ev["mu"]["b"],
            ev["logsig"]["w_t"], ev["logsig"]["b"], Z2,
            ev["z2h"]["w_t"], ev["z2h"]["b"], H2),
        ev_dec_pack=_pack_decoder_block(
            ev["dec"]["wih_t"], ev["dec"]["whh_t"], ev["dec"]["bih"],
            ev["dec"]["bhh"], H2, ev["out"]["w_t"], ev["out"]["b"], D),
    )


# ------------------------------- forward wrapper ------------------------------
def crvae_forward(packed, x_past, x_cur, key, *, z, z2, phase=1):
    B, T, D = x_past.shape
    k1, k2 = jax.random.split(key)
    eps1 = jax.random.normal(k1, (B, z), dtype=jnp.float32)

    # Time-major kernel I/O: leading axis == timestep -> tile-aligned indexing.
    # (Kept batch-first at the module boundary; at production scale adopt
    #  time-major end-to-end to drop even these tiny transposes.)
    xp = jnp.transpose(x_past, (1, 0, 2))
    xc = jnp.transpose(x_cur, (1, 0, 2))

    vmem = pl.BlockSpec(memory_space=pltpu.MemorySpace.VMEM)

    if phase == 1:
        mu_ls, recon_t = pl.pallas_call(
            functools.partial(_crvae_phase1_kernel,
                              seq_len=T, batch=B, d=D, z=z),
            out_shape=(jax.ShapeDtypeStruct((B, 2 * z), jnp.float32),
                       jax.ShapeDtypeStruct((T, B, D), jnp.float32)),
            in_specs=[vmem] * 5,
            out_specs=(vmem, vmem),
        )(xp, xc, eps1, packed["enc_pack"], packed["dec_pack"])
        recon = jnp.transpose(recon_t, (1, 0, 2))
        return recon, mu_ls[:, :z], mu_ls[:, z:], None, None

    eps2 = jax.random.normal(k2, (B, z2), dtype=jnp.float32)
    mu_ls, mu_ls_e, rp_t = pl.pallas_call(
        functools.partial(_crvae_phase2_kernel,
                          seq_len=T, batch=B, d=D, z=z, z2=z2),
        out_shape=(jax.ShapeDtypeStruct((B, 2 * z), jnp.float32),
                   jax.ShapeDtypeStruct((B, 2 * z2), jnp.float32),
                   jax.ShapeDtypeStruct((T, B, D), jnp.float32)),
        in_specs=[vmem] * 8,
        out_specs=(vmem, vmem, vmem),
    )(xp, xc, eps1, eps2, packed["enc_pack"], packed["dec_pack"],
      packed["ev_enc_pack"], packed["ev_dec_pack"])
    recon_plus = jnp.transpose(rp_t, (1, 0, 2))
    return (recon_plus, mu_ls[:, :z], mu_ls[:, z:],
            mu_ls_e[:, :z2], mu_ls_e[:, z2:])


# ------------------------- pure-JAX reference (checks) ------------------------
_HI = lax.Precision.HIGHEST


def _gru_ref(x_tbd, h0, gp):
    H = gp["whh_t"].shape[0]

    def step(h, x_t):
        gi = jnp.dot(x_t, gp["wih_t"], precision=_HI) + gp["bih"]
        gh = jnp.dot(h, gp["whh_t"], precision=_HI) + gp["bhh"]
        r = jax.nn.sigmoid(gi[:, :H] + gh[:, :H])
        zg = jax.nn.sigmoid(gi[:, H:2 * H] + gh[:, H:2 * H])
        n = jnp.tanh(gi[:, 2 * H:] + r * gh[:, 2 * H:])
        h = (1.0 - zg) * n + zg * h
        return h, h

    h_last, hs = lax.scan(step, h0, x_tbd)
    return hs, h_last


def crvae_forward_ref(params, x_past, x_cur, key, phase):
    B, T, D = x_past.shape
    enc = params["encoder"]
    ev = params["err_vae"]
    Z = enc["fc_mu"]["w_t"].shape[1]
    H = params["z2h"]["w_t"].shape[1]
    H2, Z2 = ev["z2h"]["w_t"].shape[1], ev["mu"]["w_t"].shape[1]
    k1, k2 = jax.random.split(key)
    eps1 = jax.random.normal(k1, (B, Z), dtype=jnp.float32)

    xp = jnp.transpose(x_past, (1, 0, 2))
    _, hT = _gru_ref(xp, jnp.zeros((B, H), jnp.float32), enc["gru"])
    mu = hT @ enc["fc_mu"]["w_t"] + enc["fc_mu"]["b"]
    ls = hT @ enc["fc_logsig"]["w_t"] + enc["fc_logsig"]["b"]
    zlat = mu + jnp.exp(ls) * 0.5 * eps1
    h0 = jnp.tanh(zlat @ params["z2h"]["w_t"] + params["z2h"]["b"])

    dec_in = jnp.concatenate([x_past[:, -1:, :], x_cur[:, :-1, :]], axis=1)
    dec_in_t = jnp.transpose(dec_in, (1, 0, 2))
    cols = []
    for p in range(D):
        xs = jnp.einsum("tbd,dh->tbh", dec_in_t, params["W_in"][p],
                        precision=_HI)
        hs, _ = _gru_ref(xs, h0, params["heads"][p]["gru"])
        cols.append(hs @ params["heads"][p]["fc_out"]["w_t"]
                    + params["heads"][p]["fc_out"]["b"])
    recon_t = jnp.concatenate(cols, axis=-1)                     # (T,B,D)
    recon = jnp.transpose(recon_t, (1, 0, 2))
    if phase == 1:
        return recon, mu, ls, None, None

    eps2 = jax.random.normal(k2, (B, Z2), dtype=jnp.float32)
    res_t = jnp.transpose(x_cur, (1, 0, 2)) - recon_t
    _, hTe = _gru_ref(res_t, jnp.zeros((B, H2), jnp.float32), ev["enc"])
    mu_e = hTe @ ev["mu"]["w_t"] + ev["mu"]["b"]
    ls_e = hTe @ ev["logsig"]["w_t"] + ev["logsig"]["b"]
    z_e = mu_e + jnp.exp(ls_e) * 0.5 * eps2
    h0_e = jnp.tanh(z_e @ ev["z2h"]["w_t"] + ev["z2h"]["b"])
    hs_ed, _ = _gru_ref(res_t, h0_e, ev["dec"])
    eps_hat_t = hs_ed @ ev["out"]["w_t"] + ev["out"]["b"]
    recon_plus = jnp.transpose(recon_t + eps_hat_t, (1, 0, 2))
    return recon_plus, mu, ls, mu_e, ls_e


# ------------------------------------ main ------------------------------------
if __name__ == "__main__":
    D, H, Z, tau = 4, 32, 8, 8
    B, T = 2, 8
    root = jax.random.PRNGKey(0)
    kp, kx1, kx2, kn = jax.random.split(root, 4)

    params = init_params(kp, D, H, Z)
    packed = pack_params(params)        # one-time weight fold/pack
    x_past = jax.random.normal(kx1, (B, T, D), dtype=jnp.float32)
    x_cur = jax.random.normal(kx2, (B, T, D), dtype=jnp.float32)

    fwd1 = jax.jit(functools.partial(crvae_forward, z=Z, z2=Z // 2, phase=1))
    fwd2 = jax.jit(functools.partial(crvae_forward, z=Z, z2=Z // 2, phase=2))

    # phase 1: a single fused pallas_call
    recon, mu, logsig, _, _ = fwd1(packed, x_past, x_cur, kn)
    jax.block_until_ready((recon, mu, logsig))
    # phase 2: a single fused pallas_call (incl. ErrorVAE)
    recon_p, mu2, logsig2, mu_e, logsig_e = fwd2(packed, x_past, x_cur, kn)
    jax.block_until_ready((recon_p, mu2, logsig2, mu_e, logsig_e))

    assert recon.shape == (B, T, D) and recon_p.shape == (B, T, D)
    assert mu.shape == (B, Z) and logsig.shape == (B, Z)
    assert mu_e.shape == (B, Z // 2) and logsig_e.shape == (B, Z // 2)

    # Numerical check against a pure-JAX reference of the PyTorch forward.
    tol = dict(rtol=5e-3, atol=5e-3)
    r1, m1, l1, _, _ = crvae_forward_ref(params, x_past, x_cur, kn, 1)
    r2, _, _, me, le = crvae_forward_ref(params, x_past, x_cur, kn, 2)
    assert jnp.allclose(recon, r1, **tol)
    assert jnp.allclose(mu, m1, **tol) and jnp.allclose(logsig, l1, **tol)
    assert jnp.allclose(recon_p, r2, **tol)
    assert jnp.allclose(mu_e, me, **tol) and jnp.allclose(logsig_e, le, **tol)

    print("KERNEL_OK")
</pallas_src>

<mosaic_0001>
module attributes {stable_mosaic.version = 11 : i64} {
  func.func @_crvae_phase1_kernel(%arg0: memref<8x2x4xf32, #tpu.memory_space<vmem>>, %arg1: memref<8x2x4xf32, #tpu.memory_space<vmem>>, %arg2: memref<2x8xf32, #tpu.memory_space<vmem>>, %arg3: memref<144x512xf32, #tpu.memory_space<vmem>>, %arg4: memref<144x512xf32, #tpu.memory_space<vmem>>, %arg5: memref<2x16xf32, #tpu.memory_space<vmem>>, %arg6: memref<8x2x4xf32, #tpu.memory_space<vmem>>) attributes {dimension_semantics = [], scalar_prefetch = 0 : i64, scratch_operands = 0 : i64, tpu.core_type = #tpu.core_type<tc>} {
    %cst = arith.constant 0.000000e+00 : f32
    %0 = vector.broadcast %cst : f32 to vector<2x128xf32>
    %c0 = arith.constant 0 : index
    %c0_0 = arith.constant 0 : index
    %1 = vector.load %arg3[%c0, %c0_0] : memref<144x512xf32, #tpu.memory_space<vmem>>, vector<4x384xf32>
    %c136 = arith.constant 136 : index
    %c0_1 = arith.constant 0 : index
    %2 = vector.load %arg3[%c136, %c0_1] : memref<144x512xf32, #tpu.memory_space<vmem>>, vector<1x384xf32>
    %3 = vector.shape_cast %2 : vector<1x384xf32> to vector<1x384xf32>
    %4 = vector.broadcast %3 : vector<1x384xf32> to vector<2x384xf32>
    %c137 = arith.constant 137 : index
    %c0_2 = arith.constant 0 : index
    %5 = vector.load %arg3[%c137, %c0_2] : memref<144x512xf32, #tpu.memory_space<vmem>>, vector<1x128xf32>
    %6 = vector.shape_cast %5 : vector<1x128xf32> to vector<1x128xf32>
    %7 = vector.broadcast %6 : vector<1x128xf32> to vector<2x128xf32>
    %c0_3 = arith.constant 0 : index
    %c0_4 = arith.constant 0 : index
    %c0_5 = arith.constant 0 : index
    %8 = vector.load %arg0[%c0_3, %c0_4, %c0_5] : memref<8x2x4xf32, #tpu.memory_space<vmem>>, vector<1x2x4xf32>
    %9 = vector.shape_cast %8 : vector<1x2x4xf32> to vector<2x4xf32>
    %cst_6 = arith.constant dense<0.000000e+00> : vector<2x384xf32>
    %10 = tpu.matmul %9, %1, %cst_6 {dimension_numbers = #tpu.dot_dimension_numbers<[1], [0], [0], [1], [0, 0, 1, 1], [], []>} : vector<2x4xf32>, vector<4x384xf32>, vector<2x384xf32> -> vector<2x384xf32>
    %11 = arith.addf %10, %4 : vector<2x384xf32>
    %c8 = arith.constant 8 : index
    %c0_7 = arith.constant 0 : index
    %12 = vector.load %arg3[%c8, %c0_7] : memref<144x512xf32, #tpu.memory_space<vmem>>, vector<128x384xf32>
    %cst_8 = arith.constant dense<0.000000e+00> : vector<2x384xf32>
    %13 = tpu.matmul %0, %12, %cst_8 {dimension_numbers = #tpu.dot_dimension_numbers<[1], [0], [0], [1], [0, 0, 1, 1], [], []>} : vector<2x128xf32>, vector<128x384xf32>, vector<2x384xf32> -> vector<2x384xf32>
    %14 = vector.extract_strided_slice %11 {offsets = [0, 0], sizes = [2, 128], strides = [1, 1]} : vector<2x384xf32> to vector<2x128xf32>
    %15 = vector.extract_strided_slice %13 {offsets = [0, 0], sizes = [2, 128], strides = [1, 1]} : vector<2x384xf32> to vector<2x128xf32>
    %16 = arith.addf %14, %15 : vector<2x128xf32>
    %17 = arith.negf %16 : vector<2x128xf32>
    %18 = math.exp %17 : vector<2x128xf32>
    %cst_9 = arith.constant 1.000000e+00 : f32
    %19 = vector.broadcast %cst_9 : f32 to vector<2x128xf32>
    %20 = arith.addf %19, %18 : vector<2x128xf32>
    %21 = arith.divf %19, %20 : vector<2x128xf32>
    %22 = vector.extract_strided_slice %11 {offsets = [0, 128], sizes = [2, 128], strides = [1, 1]} : vector<2x384xf32> to vector<2x128xf32>
    %23 = vector.extract_strided_slice %13 {offsets = [0, 128], sizes = [2, 128], strides = [1, 1]} : vector<2x384xf32> to vector<2x128xf32>
    %24 = arith.addf %22, %23 : vector<2x128xf32>
    %25 = arith.negf %24 : vector<2x128xf32>
    %26 = math.exp %25 : vector<2x128xf32>
    %cst_10 = arith.constant 1.000000e+00 : f32
    %27 = vector.broadcast %cst_10 : f32 to vector<2x128xf32>
    %28 = arith.addf %27, %26 : vector<2x128xf32>
    %29 = arith.divf %27, %28 : vector<2x128xf32>
    %30 = vector.extract_strided_slice %11 {offsets = [0, 256], sizes = [2, 128], strides = [1, 1]} : vector<2x384xf32> to vector<2x128xf32>
    %31 = vector.extract_strided_slice %13 {offsets = [0, 256], sizes = [2, 128], strides = [1, 1]} : vector<2x384xf32> to vector<2x128xf32>
    %32 = arith.addf %31, %7 : vector<2x128xf32>
    %33 = arith.mulf %21, %32 : vector<2x128xf32>
    %34 = arith.addf %30, %33 : vector<2x128xf32>
    %35 = math.tanh %34 : vector<2x128xf32>
    %cst_11 = arith.constant 1.000000e+00 : f32
    %36 = vector.broadcast %cst_11 : f32 to vector<2x128xf32>
    %37 = arith.subf %36, %29 : vector<2x128xf32>
    %38 = arith.mulf %37, %35 : vector<2x128xf32>
    %39 = arith.mulf %29, %0 : vector<2x128xf32>
    %40 = arith.addf %38, %39 : vector<2x128xf32>
    %c1 = arith.constant 1 : index
    %c0_12 = arith.constant 0 : index
    %c0_13 = arith.constant 0 : index
    %41 = vector.load %arg0[%c1, %c0_12, %c0_13] : memref<8x2x4xf32, #tpu.memory_space<vmem>>, vector<1x2x4xf32>
    %42 = vector.shape_cast %41 : vector<1x2x4xf32> to vector<2x4xf32>
    %cst_14 = arith.constant dense<0.000000e+00> : vector<2x384xf32>
    %43 = tpu.matmul %42, %1, %cst_14 {dimension_numbers = #tpu.dot_dimension_numbers<[1], [0], [0], [1], [0, 0, 1, 1], [], []>} : vector<2x4xf32>, vector<4x384xf32>, vector<2x384xf32> -> vector<2x384xf32>
    %44 = arith.addf %43, %4 : vector<2x384xf32>
    %c8_15 = arith.constant 8 : index
    %c0_16 = arith.constant 0 : index
    %45 = vector.load %arg3[%c8_15, %c0_16] : memref<144x512xf32, #tpu.memory_space<vmem>>, vector<128x384xf32>
    %cst_17 = arith.constant dense<0.000000e+00> : vector<2x384xf32>
    %46 = tpu.matmul %40, %45, %cst_17 {dimension_numbers = #tpu.dot_dimension_numbers<[1], [0], [0], [1], [0, 0, 1, 1], [], []>} : vector<2x128xf32>, vector<128x384xf32>, vector<2x384xf32> -> vector<2x384xf32>
    %47 = vector.extract_strided_slice %44 {offsets = [0, 0], sizes = [2, 128], strides = [1, 1]} : vector<2x384xf32> to vector<2x128xf32>
    %48 = vector.extract_strided_slice %46 {offsets = [0, 0], sizes = [2, 128], strides = [1, 1]} : vector<2x384xf32> to vector<2x128xf32>
    %49 = arith.addf %47, %48 : vector<2x128xf32>
    %50 = arith.negf %49 : vector<2x128xf32>
    %51 = math.exp %50 : vector<2x128xf32>
    %cst_18 = arith.constant 1.000000e+00 : f32
    %52 = vector.broadcast %cst_18 : f32 to vector<2x128xf32>
    %53 = arith.addf %52, %51 : vector<2x128xf32>
    %54 = arith.divf %52, %53 : vector<2x128xf32>
    %55 = vector.extract_strided_slice %44 {offsets = [0, 128], sizes = [2, 128], strides = [1, 1]} : vector<2x384xf32> to vector<2x128xf32>
    %56 = vector.extract_strided_slice %46 {offsets = [0, 128], sizes = [2, 128], strides = [1, 1]} : vector<2x384xf32> to vector<2x128xf32>
    %57 = arith.addf %55, %56 : vector<2x128xf32>
    %58 = arith.negf %57 : vector<2x128xf32>
    %59 = math.exp %58 : vector<2x128xf32>
    %cst_19 = arith.constant 1.000000e+00 : f32
    %60 = vector.broadcast %cst_19 : f32 to vector<2x128xf32>
    %61 = arith.addf %60, %59 : vector<2x128xf32>
    %62 = arith.divf %60, %61 : vector<2x128xf32>
    %63 = vector.extract_strided_slice %44 {offsets = [0, 256], sizes = [2, 128], strides = [1, 1]} : vector<2x384xf32> to vector<2x128xf32>
    %64 = vector.extract_strided_slice %46 {offsets = [0, 256], sizes = [2, 128], strides = [1, 1]} : vector<2x384xf32> to vector<2x128xf32>
    %65 = arith.addf %64, %7 : vector<2x128xf32>
    %66 = arith.mulf %54, %65 : vector<2x128xf32>
    %67 = arith.addf %63, %66 : vector<2x128xf32>
    %68 = math.tanh %67 : vector<2x128xf32>
    %cst_20 = arith.constant 1.000000e+00 : f32
    %69 = vector.broadcast %cst_20 : f32 to vector<2x128xf32>
    %70 = arith.subf %69, %62 : vector<2x128xf32>
    %71 = arith.mulf %70, %68 : vector<2x128xf32>
    %72 = arith.mulf %62, %40 : vector<2x128xf32>
    %73 = arith.addf %71, %72 : vector<2x128xf32>
    %c2 = arith.constant 2 : index
    %c0_21 = arith.constant 0 : index
    %c0_22 = arith.constant 0 : index
    %74 = vector.load %arg0[%c2, %c0_21, %c0_22] : memref<8x2x4xf32, #tpu.memory_space<vmem>>, vector<1x2x4xf32>
    %75 = vector.shape_cast %74 : vector<1x2x4xf32> to vector<2x4xf32>
    %cst_23 = arith.constant dense<0.000000e+00> : vector<2x384xf32>
    %76 = tpu.matmul %75, %1, %cst_23 {dimension_numbers = #tpu.dot_dimension_numbers<[1], [0], [0], [1], [0, 0, 1, 1], [], []>} : vector<2x4xf32>, vector<4x384xf32>, vector<2x384xf32> -> vector<2x384xf32>
    %77 = arith.addf %76, %4 : vector<2x384xf32>
    %c8_24 = arith.constant 8 : index
    %c0_25 = arith.constant 0 : index
    %78 = vector.load %arg3[%c8_24, %c0_25] : memref<144x512xf32, #tpu.memory_space<vmem>>, vector<128x384xf32>
    %cst_26 = arith.constant dense<0.000000e+00> : vector<2x384xf32>
    %79 = tpu.matmul %73, %78, %cst_26 {dimension_numbers = #tpu.dot_dimension_numbers<[1], [0], [0], [1], [0, 0, 1, 1], [], []>} : vector<2x128xf32>, vector<128x384xf32>, vector<2x384xf32> -> vector<2x384xf32>
    %80 = vector.extract_strided_slice %77 {offsets = [0, 0], sizes = [2, 128], strides = [1, 1]} : vector<2x384xf32> to vector<2x128xf32>
    %81 = vector.extract_strided_slice %79 {offsets = [0, 0], sizes = [2, 128], strides = [1, 1]} : vector<2x384xf32> to vector<2x128xf32>
    %82 = arith.addf %80, %81 : vector<2x128xf32>
    %83 = arith.negf %82 : vector<2x128xf32>
    %84 = math.exp %83 : vector<2x128xf32>
    %cst_27 = arith.constant 1.000000e+00 : f32
    %85 = vector.broadcast %cst_27 : f32 to vector<2x128xf32>
    %86 = arith.addf %85, %84 : vector<2x128xf32>
    %87 = arith.divf %85, %86 : vector<2x128xf32>
    %88 = vector.extract_strided_slice %77 {offsets = [0, 128], sizes = [2, 128], strides = [1, 1]} : vector<2x384xf32> to vector<2x128xf32>
    %89 = vector.extract_strided_slice %79 {offsets = [0, 128], sizes = [2, 128], strides = [1, 1]} : vector<2x384xf32> to vector<2x128xf32>
    %90 = arith.addf %88, %89 : vector<2x128xf32>
    %91 = arith.negf %90 : vector<2x128xf32>
    %92 = math.exp %91 : vector<2x128xf32>
    %cst_28 = arith.constant 1.000000e+00 : f32
    %93 = vector.broadcast %cst_28 : f32 to vector<2x128xf32>
    %94 = arith.addf %93, %92 : vector<2x128xf32>
    %95 = arith.divf %93, %94 : vector<2x128xf32>
    %96 = vector.extract_strided_slice %77 {offsets = [0, 256], sizes = [2, 128], strides = [1, 1]} : vector<2x384xf32> to vector<2x128xf32>
    %97 = vector.extract_strided_slice %79 {offsets = [0, 256], sizes = [2, 128], strides = [1, 1]} : vector<2x384xf32> to vector<2x128xf32>
    %98 = arith.addf %97, %7 : vector<2x128xf32>
    %99 = arith.mulf %87, %98 : vector<2x128xf32>
    %100 = arith.addf %96, %99 : vector<2x128xf32>
    %101 = math.tanh %100 : vector<2x128xf32>
    %cst_29 = arith.constant 1.000000e+00 : f32
    %102 = vector.broadcast %cst_29 : f32 to vector<2x128xf32>
    %103 = arith.subf %102, %95 : vector<2x128xf32>
    %104 = arith.mulf %103, %101 : vector<2x128xf32>
    %105 = arith.mulf %95, %73 : vector<2x128xf32>
    %106 = arith.addf %104, %105 : vector<2x128xf32>
    %c3 = arith.constant 3 : index
    %c0_30 = arith.constant 0 : index
    %c0_31 = arith.constant 0 : index
    %107 = vector.load %arg0[%c3, %c0_30, %c0_31] : memref<8x2x4xf32, #tpu.memory_space<vmem>>, vector<1x2x4xf32>
    %108 = vector.shape_cast %107 : vector<1x2x4xf32> to vector<2x4xf32>
    %cst_32 = arith.constant dense<0.000000e+00> : vector<2x384xf32>
    %109 = tpu.matmul %108, %1, %cst_32 {dimension_numbers = #tpu.dot_dimension_numbers<[1], [0], [0], [1], [0, 0, 1, 1], [], []>} : vector<2x4xf32>, vector<4x384xf32>, vector<2x384xf32> -> vector<2x384xf32>
    %110 = arith.addf %109, %4 : vector<2x384xf32>
    %c8_33 = arith.constant 8 : index
    %c0_34 = arith.constant 0 : index
    %111 = vector.load %arg3[%c8_33, %c0_34] : memref<144x512xf32, #tpu.memory_space<vmem>>, vector<128x384xf32>
    %cst_35 = arith.constant dense<0.000000e+00> : vector<2x384xf32>
    %112 = tpu.matmul %106, %111, %cst_35 {dimension_numbers = #tpu.dot_dimension_numbers<[1], [0], [0], [1], [0, 0, 1, 1], [], []>} : vector<2x128xf32>, vector<128x384xf32>, vector<2x384xf32> -> vector<2x384xf32>
    %113 = vector.extract_strided_slice %110 {offsets = [0, 0], sizes = [2, 128], strides = [1, 1]} : vector<2x384xf32> to vector<2x128xf32>
    %114 = vector.extract_strided_slice %112 {offsets = [0, 0], sizes = [2, 128], strides = [1, 1]} : vector<2x384xf32> to vector<2x128xf32>
    %115 = arith.addf %113, %114 : vector<2x128xf32>
    %116 = arith.negf %115 : vector<2x128xf32>
    %117 = math.exp %116 : vector<2x128xf32>
    %cst_36 = arith.constant 1.000000e+00 : f32
    %118 = vector.broadcast %cst_36 : f32 to vector<2x128xf32>
    %119 = arith.addf %118, %117 : vector<2x128xf32>
    %120 = arith.divf %118, %119 : vector<2x128xf32>
    %121 = vector.extract_strided_slice %110 {offsets = [0, 128], sizes = [2, 128], strides = [1, 1]} : vector<2x384xf32> to vector<2x128xf32>
    %122 = vector.extract_strided_slice %112 {offsets = [0, 128], sizes = [2, 128], strides = [1, 1]} : vector<2x384xf32> to vector<2x128xf32>
    %123 = arith.addf %121, %122 : vector<2x128xf32>
    %124 = arith.negf %123 : vector<2x128xf32>
    %125 = math.exp %124 : vector<2x128xf32>
    %cst_37 = arith.constant 1.000000e+00 : f32
    %126 = vector.broadcast %cst_37 : f32 to vector<2x128xf32>
    %127 = arith.addf %126, %125 : vector<2x128xf32>
    %128 = arith.divf %126, %127 : vector<2x128xf32>
    %129 = vector.extract_strided_slice %110 {offsets = [0, 256], sizes = [2, 128], strides = [1, 1]} : vector<2x384xf32> to vector<2x128xf32>
    %130 = vector.extract_strided_slice %112 {offsets = [0, 256], sizes = [2, 128], strides = [1, 1]} : vector<2x384xf32> to vector<2x128xf32>
    %131 = arith.addf %130, %7 : vector<2x128xf32>
    %132 = arith.mulf %120, %131 : vector<2x128xf32>
    %133 = arith.addf %129, %132 : vector<2x128xf32>
    %134 = math.tanh %133 : vector<2x128xf32>
    %cst_38 = arith.constant 1.000000e+00 : f32
    %135 = vector.broadcast %cst_38 : f32 to vector<2x128xf32>
    %136 = arith.subf %135, %128 : vector<2x128xf32>
    %137 = arith.mulf %136, %134 : vector<2x128xf32>
    %138 = arith.mulf %128, %106 : vector<2x128xf32>
    %139 = arith.addf %137, %138 : vector<2x128xf32>
    %c4 = arith.constant 4 : index
    %c0_39 = arith.constant 0 : index
    %c0_40 = arith.constant 0 : index
    %140 = vector.load %arg0[%c4, %c0_39, %c0_40] : memref<8x2x4xf32, #tpu.memory_space<vmem>>, vector<1x2x4xf32>
    %141 = vector.shape_cast %140 : vector<1x2x4xf32> to vector<2x4xf32>
    %cst_41 = arith.constant dense<0.000000e+00> : vector<2x384xf32>
    %142 = tpu.matmul %141, %1, %cst_41 {dimension_numbers = #tpu.dot_dimension_numbers<[1], [0], [0], [1], [0, 0, 1, 1], [], []>} : vector<2x4xf32>, vector<4x384xf32>, vector<2x384xf32> -> vector<2x384xf32>
    %143 = arith.addf %142, %4 : vector<2x384xf32>
    %c8_42 = arith.constant 8 : index
    %c0_43 = arith.constant 0 : index
    %144 = vector.load %arg3[%c8_42, %c0_43] : memref<144x512xf32, #tpu.memory_space<vmem>>, vector<128x384xf32>
    %cst_44 = arith.constant dense<0.000000e+00> : vector<2x384xf32>
    %145 = tpu.matmul %139, %144, %cst_44 {dimension_numbers = #tpu.dot_dimension_numbers<[1], [0], [0], [1], [0, 0, 1, 1], [], []>} : vector<2x128xf32>, vector<128x384xf32>, vector<2x384xf32> -> vector<2x384xf32>
    %146 = vector.extract_strided_slice %143 {offsets = [0, 0], sizes = [2, 128], strides = [1, 1]} : vector<2x384xf32> to vector<2x128xf32>
    %147 = vector.extract_strided_slice %145 {offsets = [0, 0], sizes = [2, 128], strides = [1, 1]} : vector<2x384xf32> to vector<2x128xf32>
    %148 = arith.addf %146, %147 : vector<2x128xf32>
    %149 = arith.negf %148 : vector<2x128xf32>
    %150 = math.exp %149 : vector<2x128xf32>
    %cst_45 = arith.constant 1.000000e+00 : f32
    %151 = vector.broadcast %cst_45 : f32 to vector<2x128xf32>
    %152 = arith.addf %151, %150 : vector<2x128xf32>
    %153 = arith.divf %151, %152 : vector<2x128xf32>
    %154 = vector.extract_strided_slice %143 {offsets = [0, 128], sizes = [2, 128], strides = [1, 1]} : vector<2x384xf32> to vector<2x128xf32>
    %155 = vector.extract_strided_slice %145 {offsets = [0, 128], sizes = [2, 128], strides = [1, 1]} : vector<2x384xf32> to vector<2x128xf32>
    %156 = arith.addf %154, %155 : vector<2x128xf32>
    %157 = arith.negf %156 : vector<2x128xf32>
    %158 = math.exp %157 : vector<2x128xf32>
    %cst_46 = arith.constant 1.000000e+00 : f32
    %159 = vector.broadcast %cst_46 : f32 to vector<2x128xf32>
    %160 = arith.addf %159, %158 : vector<2x128xf32>
    %161 = arith.divf %159, %160 : vector<2x128xf32>
    %162 = vector.extract_strided_slice %143 {offsets = [0, 256], sizes = [2, 128], strides = [1, 1]} : vector<2x384xf32> to vector<2x128xf32>
    %163 = vector.extract_strided_slice %145 {offsets = [0, 256], sizes = [2, 128], strides = [1, 1]} : vector<2x384xf32> to vector<2x128xf32>
    %164 = arith.addf %163, %7 : vector<2x128xf32>
    %165 = arith.mulf %153, %164 : vector<2x128xf32>
    %166 = arith.addf %162, %165 : vector<2x128xf32>
    %167 = math.tanh %166 : vector<2x128xf32>
    %cst_47 = arith.constant 1.000000e+00 : f32
    %168 = vector.broadcast %cst_47 : f32 to vector<2x128xf32>
    %169 = arith.subf %168, %161 : vector<2x128xf32>
    %170 = arith.mulf %169, %167 : vector<2x128xf32>
    %171 = arith.mulf %161, %139 : vector<2x128xf32>
    %172 = arith.addf %170, %171 : vector<2x128xf32>
    %c5 = arith.constant 5 : index
    %c0_48 = arith.constant 0 : index
    %c0_49 = arith.constant 0 : index
    %173 = vector.load %arg0[%c5, %c0_48, %c0_49] : memref<8x2x4xf32, #tpu.memory_space<vmem>>, vector<1x2x4xf32>
    %174 = vector.shape_cast %173 : vector<1x2x4xf32> to vector<2x4xf32>
    %cst_50 = arith.constant dense<0.000000e+00> : vector<2x384xf32>
    %175 = tpu.matmul %174, %1, %cst_50 {dimension_numbers = #tpu.dot_dimension_numbers<[1], [0], [0], [1], [0, 0, 1, 1], [], []>} : vector<2x4xf32>, vector<4x384xf32>, vector<2x384xf32> -> vector<2x384xf32>
    %176 = arith.addf %175, %4 : vector<2x384xf32>
    %c8_51 = arith.constant 8 : index
    %c0_52 = arith.constant 0 : index
    %177 = vector.load %arg3[%c8_51, %c0_52] : memref<144x512xf32, #tpu.memory_space<vmem>>, vector<128x384xf32>
    %cst_53 = arith.constant dense<0.000000e+00> : vector<2x384xf32>
    %178 = tpu.matmul %172, %177, %cst_53 {dimension_numbers = #tpu.dot_dimension_numbers<[1], [0], [0], [1], [0, 0, 1, 1], [], []>} : vector<2x128xf32>, vector<128x384xf32>, vector<2x384xf32> -> vector<2x384xf32>
    %179 = vector.extract_strided_slice %176 {offsets = [0, 0], sizes = [2, 128], strides = [1, 1]} : vector<2x384xf32> to vector<2x128xf32>
    %180 = vector.extract_strided_slice %178 {offsets = [0, 0], sizes = [2, 128], strides = [1, 1]} : vector<2x384xf32> to vector<2x128xf32>
    %181 = arith.addf %179, %180 : vector<2x128xf32>
    %182 = arith.negf %181 : vector<2x128xf32>
    %183 = math.exp %182 : vector<2x128xf32>
    %cst_54 = arith.constant 1.000000e+00 : f32
    %184 = vector.broadcast %cst_54 : f32 to vector<2x128xf32>
    %185 = arith.addf %184, %183 : vector<2x128xf32>
    %186 = arith.divf %184, %185 : vector<2x128xf32>
    %187 = vector.extract_strided_slice %176 {offsets = [0, 128], sizes = [2, 128], strides = [1, 1]} : vector<2x384xf32> to vector<2x128xf32>
    %188 = vector.extract_strided_slice %178 {offsets = [0, 128], sizes = [2, 128], strides = [1, 1]} : vector<2x384xf32> to vector<2x128xf32>
    %189 = arith.addf %187, %188 : vector<2x128xf32>
    %190 = arith.negf %189 : vector<2x128xf32>
    %191 = math.exp %190 : vector<2x128xf32>
    %cst_55 = arith.constant 1.000000e+00 : f32
    %192 = vector.broadcast %cst_55 : f32 to vector<2x128xf32>
    %193 = arith.addf %192, %191 : vector<2x128xf32>
    %194 = arith.divf %192, %193 : vector<2x128xf32>
    %195 = vector.extract_strided_slice %176 {offsets = [0, 256], sizes = [2, 128], strides = [1, 1]} : vector<2x384xf32> to vector<2x128xf32>
    %196 = vector.extract_strided_slice %178 {offsets = [0, 256], sizes = [2, 128], strides = [1, 1]} : vector<2x384xf32> to vector<2x128xf32>
    %197 = arith.addf %196, %7 : vector<2x128xf32>
    %198 = arith.mulf %186, %197 : vector<2x128xf32>
    %199 = arith.addf %195, %198 : vector<2x128xf32>
    %200 = math.tanh %199 : vector<2x128xf32>
    %cst_56 = arith.constant 1.000000e+00 : f32
    %201 = vector.broadcast %cst_56 : f32 to vector<2x128xf32>
    %202 = arith.subf %201, %194 : vector<2x128xf32>
    %203 = arith.mulf %202, %200 : vector<2x128xf32>
    %204 = arith.mulf %194, %172 : vector<2x128xf32>
    %205 = arith.addf %203, %204 : vector<2x128xf32>
    %c6 = arith.constant 6 : index
    %c0_57 = arith.constant 0 : index
    %c0_58 = arith.constant 0 : index
    %206 = vector.load %arg0[%c6, %c0_57, %c0_58] : memref<8x2x4xf32, #tpu.memory_space<vmem>>, vector<1x2x4xf32>
    %207 = vector.shape_cast %206 : vector<1x2x4xf32> to vector<2x4xf32>
    %cst_59 = arith.constant dense<0.000000e+00> : vector<2x384xf32>
    %208 = tpu.matmul %207, %1, %cst_59 {dimension_numbers = #tpu.dot_dimension_numbers<[1], [0], [0], [1], [0, 0, 1, 1], [], []>} : vector<2x4xf32>, vector<4x384xf32>, vector<2x384xf32> -> vector<2x384xf32>
    %209 = arith.addf %208, %4 : vector<2x384xf32>
    %c8_60 = arith.constant 8 : index
    %c0_61 = arith.constant 0 : index
    %210 = vector.load %arg3[%c8_60, %c0_61] : memref<144x512xf32, #tpu.memory_space<vmem>>, vector<128x384xf32>
    %cst_62 = arith.constant dense<0.000000e+00> : vector<2x384xf32>
    %211 = tpu.matmul %205, %210, %cst_62 {dimension_numbers = #tpu.dot_dimension_numbers<[1], [0], [0], [1], [0, 0, 1, 1], [], []>} : vector<2x128xf32>, vector<128x384xf32>, vector<2x384xf32> -> vector<2x384xf32>
    %212 = vector.extract_strided_slice %209 {offsets = [0, 0], sizes = [2, 128], strides = [1, 1]} : vector<2x384xf32> to vector<2x128xf32>
    %213 = vector.extract_strided_slice %211 {offsets = [0, 0], sizes = [2, 128], strides = [1, 1]} : vector<2x384xf32> to vector<2x128xf32>
    %214 = arith.addf %212, %213 : vector<2x128xf32>
    %215 = arith.negf %214 : vector<2x128xf32>
    %216 = math.exp %215 : vector<2x128xf32>
    %cst_63 = arith.constant 1.000000e+00 : f32
    %217 = vector.broadcast %cst_63 : f32 to vector<2x128xf32>
    %218 = arith.addf %217, %216 : vector<2x128xf32>
    %219 = arith.divf %217, %218 : vector<2x128xf32>
    %220 = vector.extract_strided_slice %209 {offsets = [0, 128], sizes = [2, 128], strides = [1, 1]} : vector<2x384xf32> to vector<2x128xf32>
    %221 = vector.extract_strided_slice %211 {offsets = [0, 128], sizes = [2, 128], strides = [1, 1]} : vector<2x384xf32> to vector<2x128xf32>
    %222 = arith.addf %220, %221 : vector<2x128xf32>
    %223 = arith.negf %222 : vector<2x128xf32>
    %224 = math.exp %223 : vector<2x128xf32>
    %cst_64 = arith.constant 1.000000e+00 : f32
    %225 = vector.broadcast %cst_64 : f32 to vector<2x128xf32>
    %226 = arith.addf %225, %224 : vector<2x128xf32>
    %227 = arith.divf %225, %226 : vector<2x128xf32>
    %228 = vector.extract_strided_slice %209 {offsets = [0, 256], sizes = [2, 128], strides = [1, 1]} : vector<2x384xf32> to vector<2x128xf32>
    %229 = vector.extract_strided_slice %211 {offsets = [0, 256], sizes = [2, 128], strides = [1, 1]} : vector<2x384xf32> to vector<2x128xf32>
    %230 = arith.addf %229, %7 : vector<2x128xf32>
    %231 = arith.mulf %219, %230 : vector<2x128xf32>
    %232 = arith.addf %228, %231 : vector<2x128xf32>
    %233 = math.tanh %232 : vector<2x128xf32>
    %cst_65 = arith.constant 1.000000e+00 : f32
    %234 = vector.broadcast %cst_65 : f32 to vector<2x128xf32>
    %235 = arith.subf %234, %227 : vector<2x128xf32>
    %236 = arith.mulf %235, %233 : vector<2x128xf32>
    %237 = arith.mulf %227, %205 : vector<2x128xf32>
    %238 = arith.addf %236, %237 : vector<2x128xf32>
    %c7 = arith.constant 7 : index
    %c0_66 = arith.constant 0 : index
    %c0_67 = arith.constant 0 : index
    %239 = vector.load %arg0[%c7, %c0_66, %c0_67] : memref<8x2x4xf32, #tpu.memory_space<vmem>>, vector<1x2x4xf32>
    %240 = vector.shape_cast %239 : vector<1x2x4xf32> to vector<2x4xf32>
    %cst_68 = arith.constant dense<0.000000e+00> : vector<2x384xf32>
    %241 = tpu.matmul %240, %1, %cst_68 {dimension_numbers = #tpu.dot_dimension_numbers<[1], [0], [0], [1], [0, 0, 1, 1], [], []>} : vector<2x4xf32>, vector<4x384xf32>, vector<2x384xf32> -> vector<2x384xf32>
    %242 = arith.addf %241, %4 : vector<2x384xf32>
    %c8_69 = arith.constant 8 : index
    %c0_70 = arith.constant 0 : index
    %243 = vector.load %arg3[%c8_69, %c0_70] : memref<144x512xf32, #tpu.memory_space<vmem>>, vector<128x384xf32>
    %cst_71 = arith.constant dense<0.000000e+00> : vector<2x384xf32>
    %244 = tpu.matmul %238, %243, %cst_71 {dimension_numbers = #tpu.dot_dimension_numbers<[1], [0], [0], [1], [0, 0, 1, 1], [], []>} : vector<2x128xf32>, vector<128x384xf32>, vector<2x384xf32> -> vector<2x384xf32>
    %245 = vector.extract_strided_slice %242 {offsets = [0, 0], sizes = [2, 128], strides = [1, 1]} : vector<2x384xf32> to vector<2x128xf32>
    %246 = vector.extract_strided_slice %244 {offsets = [0, 0], sizes = [2, 128], strides = [1, 1]} : vector<2x384xf32> to vector<2x128xf32>
    %247 = arith.addf %245, %246 : vector<2x128xf32>
    %248 = arith.negf %247 : vector<2x128xf32>
    %249 = math.exp %248 : vector<2x128xf32>
    %cst_72 = arith.constant 1.000000e+00 : f32
    %250 = vector.broadcast %cst_72 : f32 to vector<2x128xf32>
    %251 = arith.addf %250, %249 : vector<2x128xf32>
    %252 = arith.divf %250, %251 : vector<2x128xf32>
    %253 = vector.extract_strided_slice %242 {offsets = [0, 128], sizes = [2, 128], strides = [1, 1]} : vector<2x384xf32> to vector<2x128xf32>
    %254 = vector.extract_strided_slice %244 {offsets = [0, 128], sizes = [2, 128], strides = [1, 1]} : vector<2x384xf32> to vector<2x128xf32>
    %255 = arith.addf %253, %254 : vector<2x128xf32>
    %256 = arith.negf %255 : vector<2x128xf32>
    %257 = math.exp %256 : vector<2x128xf32>
    %cst_73 = arith.constant 1.000000e+00 : f32
    %258 = vector.broadcast %cst_73 : f32 to vector<2x128xf32>
    %259 = arith.addf %258, %257 : vector<2x128xf32>
    %260 = arith.divf %258, %259 : vector<2x128xf32>
    %261 = vector.extract_strided_slice %242 {offsets = [0, 256], sizes = [2, 128], strides = [1, 1]} : vector<2x384xf32> to vector<2x128xf32>
    %262 = vector.extract_strided_slice %244 {offsets = [0, 256], sizes = [2, 128], strides = [1, 1]} : vector<2x384xf32> to vector<2x128xf32>
    %263 = arith.addf %262, %7 : vector<2x128xf32>
    %264 = arith.mulf %252, %263 : vector<2x128xf32>
    %265 = arith.addf %261, %264 : vector<2x128xf32>
    %266 = math.tanh %265 : vector<2x128xf32>
    %cst_74 = arith.constant 1.000000e+00 : f32
    %267 = vector.broadcast %cst_74 : f32 to vector<2x128xf32>
    %268 = arith.subf %267, %260 : vector<2x128xf32>
    %269 = arith.mulf %268, %266 : vector<2x128xf32>
    %270 = arith.mulf %260, %238 : vector<2x128xf32>
    %271 = arith.addf %269, %270 : vector<2x128xf32>
    %c0_75 = arith.constant 0 : index
    %c0_76 = arith.constant 0 : index
    %272 = vector.load %arg2[%c0_75, %c0_76] : memref<2x8xf32, #tpu.memory_space<vmem>>, vector<2x8xf32>
    %c8_77 = arith.constant 8 : index
    %c384 = arith.constant 384 : index
    %273 = vector.load %arg3[%c8_77, %c384] : memref<144x512xf32, #tpu.memory_space<vmem>>, vector<128x16xf32>
    %c138 = arith.constant 138 : index
    %c0_78 = arith.constant 0 : index
    %274 = vector.load %arg3[%c138, %c0_78] : memref<144x512xf32, #tpu.memory_space<vmem>>, vector<1x16xf32>
    %cst_79 = arith.constant dense<0.000000e+00> : vector<2x16xf32>
    %275 = tpu.matmul %271, %273, %cst_79 {dimension_numbers = #tpu.dot_dimension_numbers<[1], [0], [0], [1], [0, 0, 1, 1], [], []>} : vector<2x128xf32>, vector<128x16xf32>, vector<2x16xf32> -> vector<2x16xf32>
    %276 = vector.broadcast %274 : vector<1x16xf32> to vector<2x16xf32>
    %277 = arith.addf %275, %276 : vector<2x16xf32>
    %278 = vector.extract_strided_slice %277 {offsets = [0, 0], sizes = [2, 8], strides = [1, 1]} : vector<2x16xf32> to vector<2x8xf32>
    %279 = vector.extract_strided_slice %277 {offsets = [0, 8], sizes = [2, 8], strides = [1, 1]} : vector<2x16xf32> to vector<2x8xf32>
    %280 = math.exp %279 : vector<2x8xf32>
    %cst_80 = arith.constant 5.000000e-01 : f32
    %281 = vector.broadcast %cst_80 : f32 to vector<2x8xf32>
    %282 = arith.mulf %280, %281 : vector<2x8xf32>
    %283 = arith.mulf %282, %272 : vector<2x8xf32>
    %284 = arith.addf %278, %283 : vector<2x8xf32>
    %c0_81 = arith.constant 0 : index
    %c384_82 = arith.constant 384 : index
    %285 = vector.load %arg3[%c0_81, %c384_82] : memref<144x512xf32, #tpu.memory_space<vmem>>, vector<8x128xf32>
    %c139 = arith.constant 139 : index
    %c0_83 = arith.constant 0 : index
    %286 = vector.load %arg3[%c139, %c0_83] : memref<144x512xf32, #tpu.memory_space<vmem>>, vector<1x128xf32>
    %cst_84 = arith.constant dense<0.000000e+00> : vector<2x128xf32>
    %287 = tpu.matmul %284, %285, %cst_84 {dimension_numbers = #tpu.dot_dimension_numbers<[1], [0], [0], [1], [0, 0, 1, 1], [], []>} : vector<2x8xf32>, vector<8x128xf32>, vector<2x128xf32> -> vector<2x128xf32>
    %288 = vector.broadcast %286 : vector<1x128xf32> to vector<2x128xf32>
    %289 = arith.addf %287, %288 : vector<2x128xf32>
    %290 = math.tanh %289 : vector<2x128xf32>
    %c0_85 = arith.constant 0 : index
    %c0_86 = arith.constant 0 : index
    %291 = vector.load %arg5[%c0_85, %c0_86] : memref<2x16xf32, #tpu.memory_space<vmem>>, vector<2x16xf32>
    tpu.vector_store %arg5[%c0_85, %c0_86], %277 {strides = array<i32>} : memref<2x16xf32, #tpu.memory_space<vmem>>, vector<2x16xf32>,
    %c0_87 = arith.constant 0 : index
    %c0_88 = arith.constant 0 : index
    %292 = vector.load %arg4[%c0_87, %c0_88] : memref<144x512xf32, #tpu.memory_space<vmem>>, vector<4x384xf32>
    %c136_89 = arith.constant 136 : index
    %c0_90 = arith.constant 0 : index
    %293 = vector.load %arg4[%c136_89, %c0_90] : memref<144x512xf32, #tpu.memory_space<vmem>>, vector<1x384xf32>
    %294 = vector.shape_cast %293 : vector<1x384xf32> to vector<1x384xf32>
    %295 = vector.broadcast %294 : vector<1x384xf32> to vector<2x384xf32>
    %c137_91 = arith.constant 137 : index
    %c0_92 = arith.constant 0 : index
    %296 = vector.load %arg4[%c137_91, %c0_92] : memref<144x512xf32, #tpu.memory_space<vmem>>, vector<1x128xf32>
    %297 = vector.shape_cast %296 : vector<1x128xf32> to vector<1x128xf32>
    %298 = vector.broadcast %297 : vector<1x128xf32> to vector<2x128xf32>
    %c7_93 = arith.constant 7 : index
    %c0_94 = arith.constant 0 : index
    %c0_95 = arith.constant 0 : index
    %299 = vector.load %arg0[%c7_93, %c0_94, %c0_95] : memref<8x2x4xf32, #tpu.memory_space<vmem>>, vector<1x2x4xf32>
    %300 = vector.shape_cast %299 : vector<1x2x4xf32> to vector<2x4xf32>
    %cst_96 = arith.constant dense<0.000000e+00> : vector<2x384xf32>
    %301 = tpu.matmul %300, %292, %cst_96 {dimension_numbers = #tpu.dot_dimension_numbers<[1], [0], [0], [1], [0, 0, 1, 1], [], []>} : vector<2x4xf32>, vector<4x384xf32>, vector<2x384xf32> -> vector<2x384xf32>
    %302 = arith.addf %301, %295 : vector<2x384xf32>
    %c8_97 = arith.constant 8 : index
    %c0_98 = arith.constant 0 : index
    %303 = vector.load %arg4[%c8_97, %c0_98] : memref<144x512xf32, #tpu.memory_space<vmem>>, vector<128x384xf32>
    %cst_99 = arith.constant dense<0.000000e+00> : vector<2x384xf32>
    %304 = tpu.matmul %290, %303, %cst_99 {dimension_numbers = #tpu.dot_dimension_numbers<[1], [0], [0], [1], [0, 0, 1, 1], [], []>} : vector<2x128xf32>, vector<128x384xf32>, vector<2x384xf32> -> vector<2x384xf32>
    %305 = vector.extract_strided_slice %302 {offsets = [0, 0], sizes = [2, 128], strides = [1, 1]} : vector<2x384xf32> to vector<2x128xf32>
    %306 = vector.extract_strided_slice %304 {offsets = [0, 0], sizes = [2, 128], strides = [1, 1]} : vector<2x384xf32> to vector<2x128xf32>
    %307 = arith.addf %305, %306 : vector<2x128xf32>
    %308 = arith.negf %307 : vector<2x128xf32>
    %309 = math.exp %308 : vector<2x128xf32>
    %cst_100 = arith.constant 1.000000e+00 : f32
    %310 = vector.broadcast %cst_100 : f32 to vector<2x128xf32>
    %311 = arith.addf %310, %309 : vector<2x128xf32>
    %312 = arith.divf %310, %311 : vector<2x128xf32>
    %313 = vector.extract_strided_slice %302 {offsets = [0, 128], sizes = [2, 128], strides = [1, 1]} : vector<2x384xf32> to vector<2x128xf32>
    %314 = vector.extract_strided_slice %304 {offsets = [0, 128], sizes = [2, 128], strides = [1, 1]} : vector<2x384xf32> to vector<2x128xf32>
    %315 = arith.addf %313, %314 : vector<2x128xf32>
    %316 = arith.negf %315 : vector<2x128xf32>
    %317 = math.exp %316 : vector<2x128xf32>
    %cst_101 = arith.constant 1.000000e+00 : f32
    %318 = vector.broadcast %cst_101 : f32 to vector<2x128xf32>
    %319 = arith.addf %318, %317 : vector<2x128xf32>
    %320 = arith.divf %318, %319 : vector<2x128xf32>
    %321 = vector.extract_strided_slice %302 {offsets = [0, 256], sizes = [2, 128], strides = [1, 1]} : vector<2x384xf32> to vector<2x128xf32>
    %322 = vector.extract_strided_slice %304 {offsets = [0, 256], sizes = [2, 128], strides = [1, 1]} : vector<2x384xf32> to vector<2x128xf32>
    %323 = arith.addf %322, %298 : vector<2x128xf32>
    %324 = arith.mulf %312, %323 : vector<2x128xf32>
    %325 = arith.addf %321, %324 : vector<2x128xf32>
    %326 = math.tanh %325 : vector<2x128xf32>
    %cst_102 = arith.constant 1.000000e+00 : f32
    %327 = vector.broadcast %cst_102 : f32 to vector<2x128xf32>
    %328 = arith.subf %327, %320 : vector<2x128xf32>
    %329 = arith.mulf %328, %326 : vector<2x128xf32>
    %330 = arith.mulf %320, %290 : vector<2x128xf32>
    %331 = arith.addf %329, %330 : vector<2x128xf32>
    %c0_103 = arith.constant 0 : index
    %c0_104 = arith.constant 0 : index
    %c0_105 = arith.constant 0 : index
    %332 = vector.load %arg1[%c0_103, %c0_104, %c0_105] : memref<8x2x4xf32, #tpu.memory_space<vmem>>, vector<1x2x4xf32>
    %333 = vector.shape_cast %332 : vector<1x2x4xf32> to vector<2x4xf32>
    %cst_106 = arith.constant dense<0.000000e+00> : vector<2x384xf32>
    %334 = tpu.matmul %333, %292, %cst_106 {dimension_numbers = #tpu.dot_dimension_numbers<[1], [0], [0], [1], [0, 0, 1, 1], [], []>} : vector<2x4xf32>, vector<4x384xf32>, vector<2x384xf32> -> vector<2x384xf32>
    %335 = arith.addf %334, %295 : vector<2x384xf32>
    %c8_107 = arith.constant 8 : index
    %c0_108 = arith.constant 0 : index
    %336 = vector.load %arg4[%c8_107, %c0_108] : memref<144x512xf32, #tpu.memory_space<vmem>>, vector<128x384xf32>
    %cst_109 = arith.constant dense<0.000000e+00> : vector<2x384xf32>
    %337 = tpu.matmul %331, %336, %cst_109 {dimension_numbers = #tpu.dot_dimension_numbers<[1], [0], [0], [1], [0, 0, 1, 1], [], []>} : vector<2x128xf32>, vector<128x384xf32>, vector<2x384xf32> -> vector<2x384xf32>
    %338 = vector.extract_strided_slice %335 {offsets = [0, 0], sizes = [2, 128], strides = [1, 1]} : vector<2x384xf32> to vector<2x128xf32>
    %339 = vector.extract_strided_slice %337 {offsets = [0, 0], sizes = [2, 128], strides = [1, 1]} : vector<2x384xf32> to vector<2x128xf32>
    %340 = arith.addf %338, %339 : vector<2x128xf32>
    %341 = arith.negf %340 : vector<2x128xf32>
    %342 = math.exp %341 : vector<2x128xf32>
    %cst_110 = arith.constant 1.000000e+00 : f32
    %343 = vector.broadcast %cst_110 : f32 to vector<2x128xf32>
    %344 = arith.addf %343, %342 : vector<2x128xf32>
    %345 = arith.divf %343, %344 : vector<2x128xf32>
    %346 = vector.extract_strided_slice %335 {offsets = [0, 128], sizes = [2, 128], strides = [1, 1]} : vector<2x384xf32> to vector<2x128xf32>
    %347 = vector.extract_strided_slice %337 {offsets = [0, 128], sizes = [2, 128], strides = [1, 1]} : vector<2x384xf32> to vector<2x128xf32>
    %348 = arith.addf %346, %347 : vector<2x128xf32>
    %349 = arith.negf %348 : vector<2x128xf32>
    %350 = math.exp %349 : vector<2x128xf32>
    %cst_111 = arith.constant 1.000000e+00 : f32
    %351 = vector.broadcast %cst_111 : f32 to vector<2x128xf32>
    %352 = arith.addf %351, %350 : vector<2x128xf32>
    %353 = arith.divf %351, %352 : vector<2x128xf32>
    %354 = vector.extract_strided_slice %335 {offsets = [0, 256], sizes = [2, 128], strides = [1, 1]} : vector<2x384xf32> to vector<2x128xf32>
    %355 = vector.extract_strided_slice %337 {offsets = [0, 256], sizes = [2, 128], strides = [1, 1]} : vector<2x384xf32> to vector<2x128xf32>
    %356 = arith.addf %355, %298 : vector<2x128xf32>
    %357 = arith.mulf %345, %356 : vector<2x128xf32>
    %358 = arith.addf %354, %357 : vector<2x128xf32>
    %359 = math.tanh %358 : vector<2x128xf32>
    %cst_112 = arith.constant 1.000000e+00 : f32
    %360 = vector.broadcast %cst_112 : f32 to vector<2x128xf32>
    %361 = arith.subf %360, %353 : vector<2x128xf32>
    %362 = arith.mulf %361, %359 : vector<2x128xf32>
    %363 = arith.mulf %353, %331 : vector<2x128xf32>
    %364 = arith.addf %362, %363 : vector<2x128xf32>
    %c1_113 = arith.constant 1 : index
    %c0_114 = arith.constant 0 : index
    %c0_115 = arith.constant 0 : index
    %365 = vector.load %arg1[%c1_113, %c0_114, %c0_115] : memref<8x2x4xf32, #tpu.memory_space<vmem>>, vector<1x2x4xf32>
    %366 = vector.shape_cast %365 : vector<1x2x4xf32> to vector<2x4xf32>
    %cst_116 = arith.constant dense<0.000000e+00> : vector<2x384xf32>
    %367 = tpu.matmul %366, %292, %cst_116 {dimension_numbers = #tpu.dot_dimension_numbers<[1], [0], [0], [1], [0, 0, 1, 1], [], []>} : vector<2x4xf32>, vector<4x384xf32>, vector<2x384xf32> -> vector<2x384xf32>
    %368 = arith.addf %367, %295 : vector<2x384xf32>
    %c8_117 = arith.constant 8 : index
    %c0_118 = arith.constant 0 : index
    %369 = vector.load %arg4[%c8_117, %c0_118] : memref<144x512xf32, #tpu.memory_space<vmem>>, vector<128x384xf32>
    %cst_119 = arith.constant dense<0.000000e+00> : vector<2x384xf32>
    %370 = tpu.matmul %364, %369, %cst_119 {dimension_numbers = #tpu.dot_dimension_numbers<[1], [0], [0], [1], [0, 0, 1, 1], [], []>} : vector<2x128xf32>, vector<128x384xf32>, vector<2x384xf32> -> vector<2x384xf32>
    %371 = vector.extract_strided_slice %368 {offsets = [0, 0], sizes = [2, 128], strides = [1, 1]} : vector<2x384xf32> to vector<2x128xf32>
    %372 = vector.extract_strided_slice %370 {offsets = [0, 0], sizes = [2, 128], strides = [1, 1]} : vector<2x384xf32> to vector<2x128xf32>
    %373 = arith.addf %371, %372 : vector<2x128xf32>
    %374 = arith.negf %373 : vector<2x128xf32>
    %375 = math.exp %374 : vector<2x128xf32>
    %cst_120 = arith.constant 1.000000e+00 : f32
    %376 = vector.broadcast %cst_120 : f32 to vector<2x128xf32>
    %377 = arith.addf %376, %375 : vector<2x128xf32>
    %378 = arith.divf %376, %377 : vector<2x128xf32>
    %379 = vector.extract_strided_slice %368 {offsets = [0, 128], sizes = [2, 128], strides = [1, 1]} : vector<2x384xf32> to vector<2x128xf32>
    %380 = vector.extract_strided_slice %370 {offsets = [0, 128], sizes = [2, 128], strides = [1, 1]} : vector<2x384xf32> to vector<2x128xf32>
    %381 = arith.addf %379, %380 : vector<2x128xf32>
    %382 = arith.negf %381 : vector<2x128xf32>
    %383 = math.exp %382 : vector<2x128xf32>
    %cst_121 = arith.constant 1.000000e+00 : f32
    %384 = vector.broadcast %cst_121 : f32 to vector<2x128xf32>
    %385 = arith.addf %384, %383 : vector<2x128xf32>
    %386 = arith.divf %384, %385 : vector<2x128xf32>
    %387 = vector.extract_strided_slice %368 {offsets = [0, 256], sizes = [2, 128], strides = [1, 1]} : vector<2x384xf32> to vector<2x128xf32>
    %388 = vector.extract_strided_slice %370 {offsets = [0, 256], sizes = [2, 128], strides = [1, 1]} : vector<2x384xf32> to vector<2x128xf32>
    %389 = arith.addf %388, %298 : vector<2x128xf32>
    %390 = arith.mulf %378, %389 : vector<2x128xf32>
    %391 = arith.addf %387, %390 : vector<2x128xf32>
    %392 = math.tanh %391 : vector<2x128xf32>
    %cst_122 = arith.constant 1.000000e+00 : f32
    %393 = vector.broadcast %cst_122 : f32 to vector<2x128xf32>
    %394 = arith.subf %393, %386 : vector<2x128xf32>
    %395 = arith.mulf %394, %392 : vector<2x128xf32>
    %396 = arith.mulf %386, %364 : vector<2x128xf32>
    %397 = arith.addf %395, %396 : vector<2x128xf32>
    %c2_123 = arith.constant 2 : index
    %c0_124 = arith.constant 0 : index
    %c0_125 = arith.constant 0 : index
    %398 = vector.load %arg1[%c2_123, %c0_124, %c0_125] : memref<8x2x4xf32, #tpu.memory_space<vmem>>, vector<1x2x4xf32>
    %399 = vector.shape_cast %398 : vector<1x2x4xf32> to vector<2x4xf32>
    %cst_126 = arith.constant dense<0.000000e+00> : vector<2x384xf32>
    %400 = tpu.matmul %399, %292, %cst_126 {dimension_numbers = #tpu.dot_dimension_numbers<[1], [0], [0], [1], [0, 0, 1, 1], [], []>} : vector<2x4xf32>, vector<4x384xf32>, vector<2x384xf32> -> vector<2x384xf32>
    %401 = arith.addf %400, %295 : vector<2x384xf32>
    %c8_127 = arith.constant 8 : index
    %c0_128 = arith.constant 0 : index
    %402 = vector.load %arg4[%c8_127, %c0_128] : memref<144x512xf32, #tpu.memory_space<vmem>>, vector<128x384xf32>
    %cst_129 = arith.constant dense<0.000000e+00> : vector<2x384xf32>
    %403 = tpu.matmul %397, %402, %cst_129 {dimension_numbers = #tpu.dot_dimension_numbers<[1], [0], [0], [1], [0, 0, 1, 1], [], []>} : vector<2x128xf32>, vector<128x384xf32>, vector<2x384xf32> -> vector<2x384xf32>
    %404 = vector.extract_strided_slice %401 {offsets = [0, 0], sizes = [2, 128], strides = [1, 1]} : vector<2x384xf32> to vector<2x128xf32>
    %405 = vector.extract_strided_slice %403 {offsets = [0, 0], sizes = [2, 128], strides = [1, 1]} : vector<2x384xf32> to vector<2x128xf32>
    %406 = arith.addf %404, %405 : vector<2x128xf32>
    %407 = arith.negf %406 : vector<2x128xf32>
    %408 = math.exp %407 : vector<2x128xf32>
    %cst_130 = arith.constant 1.000000e+00 : f32
    %409 = vector.broadcast %cst_130 : f32 to vector<2x128xf32>
    %410 = arith.addf %409, %408 : vector<2x128xf32>
    %411 = arith.divf %409, %410 : vector<2x128xf32>
    %412 = vector.extract_strided_slice %401 {offsets = [0, 128], sizes = [2, 128], strides = [1, 1]} : vector<2x384xf32> to vector<2x128xf32>
    %413 = vector.extract_strided_slice %403 {offsets = [0, 128], sizes = [2, 128], strides = [1, 1]} : vector<2x384xf32> to vector<2x128xf32>
    %414 = arith.addf %412, %413 : vector<2x128xf32>
    %415 = arith.negf %414 : vector<2x128xf32>
    %416 = math.exp %415 : vector<2x128xf32>
    %cst_131 = arith.constant 1.000000e+00 : f32
    %417 = vector.broadcast %cst_131 : f32 to vector<2x128xf32>
    %418 = arith.addf %417, %416 : vector<2x128xf32>
    %419 = arith.divf %417, %418 : vector<2x128xf32>
    %420 = vector.extract_strided_slice %401 {offsets = [0, 256], sizes = [2, 128], strides = [1, 1]} : vector<2x384xf32> to vector<2x128xf32>
    %421 = vector.extract_strided_slice %403 {offsets = [0, 256], sizes = [2, 128], strides = [1, 1]} : vector<2x384xf32> to vector<2x128xf32>
    %422 = arith.addf %421, %298 : vector<2x128xf32>
    %423 = arith.mulf %411, %422 : vector<2x128xf32>
    %424 = arith.addf %420, %423 : vector<2x128xf32>
    %425 = math.tanh %424 : vector<2x128xf32>
    %cst_132 = arith.constant 1.000000e+00 : f32
    %426 = vector.broadcast %cst_132 : f32 to vector<2x128xf32>
    %427 = arith.subf %426, %419 : vector<2x128xf32>
    %428 = arith.mulf %427, %425 : vector<2x128xf32>
    %429 = arith.mulf %419, %397 : vector<2x128xf32>
    %430 = arith.addf %428, %429 : vector<2x128xf32>
    %c3_133 = arith.constant 3 : index
    %c0_134 = arith.constant 0 : index
    %c0_135 = arith.constant 0 : index
    %431 = vector.load %arg1[%c3_133, %c0_134, %c0_135] : memref<8x2x4xf32, #tpu.memory_space<vmem>>, vector<1x2x4xf32>
    %432 = vector.shape_cast %431 : vector<1x2x4xf32> to vector<2x4xf32>
    %cst_136 = arith.constant dense<0.000000e+00> : vector<2x384xf32>
    %433 = tpu.matmul %432, %292, %cst_136 {dimension_numbers = #tpu.dot_dimension_numbers<[1], [0], [0], [1], [0, 0, 1, 1], [], []>} : vector<2x4xf32>, vector<4x384xf32>, vector<2x384xf32> -> vector<2x384xf32>
    %434 = arith.addf %433, %295 : vector<2x384xf32>
    %c8_137 = arith.constant 8 : index
    %c0_138 = arith.constant 0 : index
    %435 = vector.load %arg4[%c8_137, %c0_138] : memref<144x512xf32, #tpu.memory_space<vmem>>, vector<128x384xf32>
    %cst_139 = arith.constant dense<0.000000e+00> : vector<2x384xf32>
    %436 = tpu.matmul %430, %435, %cst_139 {dimension_numbers = #tpu.dot_dimension_numbers<[1], [0], [0], [1], [0, 0, 1, 1], [], []>} : vector<2x128xf32>, vector<128x384xf32>, vector<2x384xf32> -> vector<2x384xf32>
    %437 = vector.extract_strided_slice %434 {offsets = [0, 0], sizes = [2, 128], strides = [1, 1]} : vector<2x384xf32> to vector<2x128xf32>
    %438 = vector.extract_strided_slice %436 {offsets = [0, 0], sizes = [2, 128], strides = [1, 1]} : vector<2x384xf32> to vector<2x128xf32>
    %439 = arith.addf %437, %438 : vector<2x128xf32>
    %440 = arith.negf %439 : vector<2x128xf32>
    %441 = math.exp %440 : vector<2x128xf32>
    %cst_140 = arith.constant 1.000000e+00 : f32
    %442 = vector.broadcast %cst_140 : f32 to vector<2x128xf32>
    %443 = arith.addf %442, %441 : vector<2x128xf32>
    %444 = arith.divf %442, %443 : vector<2x128xf32>
    %445 = vector.extract_strided_slice %434 {offsets = [0, 128], sizes = [2, 128], strides = [1, 1]} : vector<2x384xf32> to vector<2x128xf32>
    %446 = vector.extract_strided_slice %436 {offsets = [0, 128], sizes = [2, 128], strides = [1, 1]} : vector<2x384xf32> to vector<2x128xf32>
    %447 = arith.addf %445, %446 : vector<2x128xf32>
    %448 = arith.negf %447 : vector<2x128xf32>
    %449 = math.exp %448 : vector<2x128xf32>
    %cst_141 = arith.constant 1.000000e+00 : f32
    %450 = vector.broadcast %cst_141 : f32 to vector<2x128xf32>
    %451 = arith.addf %450, %449 : vector<2x128xf32>
    %452 = arith.divf %450, %451 : vector<2x128xf32>
    %453 = vector.extract_strided_slice %434 {offsets = [0, 256], sizes = [2, 128], strides = [1, 1]} : vector<2x384xf32> to vector<2x128xf32>
    %454 = vector.extract_strided_slice %436 {offsets = [0, 256], sizes = [2, 128], strides = [1, 1]} : vector<2x384xf32> to vector<2x128xf32>
    %455 = arith.addf %454, %298 : vector<2x128xf32>
    %456 = arith.mulf %444, %455 : vector<2x128xf32>
    %457 = arith.addf %453, %456 : vector<2x128xf32>
    %458 = math.tanh %457 : vector<2x128xf32>
    %cst_142 = arith.constant 1.000000e+00 : f32
    %459 = vector.broadcast %cst_142 : f32 to vector<2x128xf32>
    %460 = arith.subf %459, %452 : vector<2x128xf32>
    %461 = arith.mulf %460, %458 : vector<2x128xf32>
    %462 = arith.mulf %452, %430 : vector<2x128xf32>
    %463 = arith.addf %461, %462 : vector<2x128xf32>
    %c4_143 = arith.constant 4 : index
    %c0_144 = arith.constant 0 : index
    %c0_145 = arith.constant 0 : index
    %464 = vector.load %arg1[%c4_143, %c0_144, %c0_145] : memref<8x2x4xf32, #tpu.memory_space<vmem>>, vector<1x2x4xf32>
    %465 = vector.shape_cast %464 : vector<1x2x4xf32> to vector<2x4xf32>
    %cst_146 = arith.constant dense<0.000000e+00> : vector<2x384xf32>
    %466 = tpu.matmul %465, %292, %cst_146 {dimension_numbers = #tpu.dot_dimension_numbers<[1], [0], [0], [1], [0, 0, 1, 1], [], []>} : vector<2x4xf32>, vector<4x384xf32>, vector<2x384xf32> -> vector<2x384xf32>
    %467 = arith.addf %466, %295 : vector<2x384xf32>
    %c8_147 = arith.constant 8 : index
    %c0_148 = arith.constant 0 : index
    %468 = vector.load %arg4[%c8_147, %c0_148] : memref<144x512xf32, #tpu.memory_space<vmem>>, vector<128x384xf32>
    %cst_149 = arith.constant dense<0.000000e+00> : vector<2x384xf32>
    %469 = tpu.matmul %463, %468, %cst_149 {dimension_numbers = #tpu.dot_dimension_numbers<[1], [0], [0], [1], [0, 0, 1, 1], [], []>} : vector<2x128xf32>, vector<128x384xf32>, vector<2x384xf32> -> vector<2x384xf32>
    %470 = vector.extract_strided_slice %467 {offsets = [0, 0], sizes = [2, 128], strides = [1, 1]} : vector<2x384xf32> to vector<2x128xf32>
    %471 = vector.extract_strided_slice %469 {offsets = [0, 0], sizes = [2, 128], strides = [1, 1]} : vector<2x384xf32> to vector<2x128xf32>
    %472 = arith.addf %470, %471 : vector<2x128xf32>
    %473 = arith.negf %472 : vector<2x128xf32>
    %474 = math.exp %473 : vector<2x128xf32>
    %cst_150 = arith.constant 1.000000e+00 : f32
    %475 = vector.broadcast %cst_150 : f32 to vector<2x128xf32>
    %476 = arith.addf %475, %474 : vector<2x128xf32>
    %477 = arith.divf %475, %476 : vector<2x128xf32>
    %478 = vector.extract_strided_slice %467 {offsets = [0, 128], sizes = [2, 128], strides = [1, 1]} : vector<2x384xf32> to vector<2x128xf32>
    %479 = vector.extract_strided_slice %469 {offsets = [0, 128], sizes = [2, 128], strides = [1, 1]} : vector<2x384xf32> to vector<2x128xf32>
    %480 = arith.addf %478, %479 : vector<2x128xf32>
    %481 = arith.negf %480 : vector<2x128xf32>
    %482 = math.exp %481 : vector<2x128xf32>
    %cst_151 = arith.constant 1.000000e+00 : f32
    %483 = vector.broadcast %cst_151 : f32 to vector<2x128xf32>
    %484 = arith.addf %483, %482 : vector<2x128xf32>
    %485 = arith.divf %483, %484 : vector<2x128xf32>
    %486 = vector.extract_strided_slice %467 {offsets = [0, 256], sizes = [2, 128], strides = [1, 1]} : vector<2x384xf32> to vector<2x128xf32>
    %487 = vector.extract_strided_slice %469 {offsets = [0, 256], sizes = [2, 128], strides = [1, 1]} : vector<2x384xf32> to vector<2x128xf32>
    %488 = arith.addf %487, %298 : vector<2x128xf32>
    %489 = arith.mulf %477, %488 : vector<2x128xf32>
    %490 = arith.addf %486, %489 : vector<2x128xf32>
    %491 = math.tanh %490 : vector<2x128xf32>
    %cst_152 = arith.constant 1.000000e+00 : f32
    %492 = vector.broadcast %cst_152 : f32 to vector<2x128xf32>
    %493 = arith.subf %492, %485 : vector<2x128xf32>
    %494 = arith.mulf %493, %491 : vector<2x128xf32>
    %495 = arith.mulf %485, %463 : vector<2x128xf32>
    %496 = arith.addf %494, %495 : vector<2x128xf32>
    %c5_153 = arith.constant 5 : index
    %c0_154 = arith.constant 0 : index
    %c0_155 = arith.constant 0 : index
    %497 = vector.load %arg1[%c5_153, %c0_154, %c0_155] : memref<8x2x4xf32, #tpu.memory_space<vmem>>, vector<1x2x4xf32>
    %498 = vector.shape_cast %497 : vector<1x2x4xf32> to vector<2x4xf32>
    %cst_156 = arith.constant dense<0.000000e+00> : vector<2x384xf32>
    %499 = tpu.matmul %498, %292, %cst_156 {dimension_numbers = #tpu.dot_dimension_numbers<[1], [0], [0], [1], [0, 0, 1, 1], [], []>} : vector<2x4xf32>, vector<4x384xf32>, vector<2x384xf32> -> vector<2x384xf32>
    %500 = arith.addf %499, %295 : vector<2x384xf32>
    %c8_157 = arith.constant 8 : index
    %c0_158 = arith.constant 0 : index
    %501 = vector.load %arg4[%c8_157, %c0_158] : memref<144x512xf32, #tpu.memory_space<vmem>>, vector<128x384xf32>
    %cst_159 = arith.constant dense<0.000000e+00> : vector<2x384xf32>
    %502 = tpu.matmul %496, %501, %cst_159 {dimension_numbers = #tpu.dot_dimension_numbers<[1], [0], [0], [1], [0, 0, 1, 1], [], []>} : vector<2x128xf32>, vector<128x384xf32>, vector<2x384xf32> -> vector<2x384xf32>
    %503 = vector.extract_strided_slice %500 {offsets = [0, 0], sizes = [2, 128], strides = [1, 1]} : vector<2x384xf32> to vector<2x128xf32>
    %504 = vector.extract_strided_slice %502 {offsets = [0, 0], sizes = [2, 128], strides = [1, 1]} : vector<2x384xf32> to vector<2x128xf32>
    %505 = arith.addf %503, %504 : vector<2x128xf32>
    %506 = arith.negf %505 : vector<2x128xf32>
    %507 = math.exp %506 : vector<2x128xf32>
    %cst_160 = arith.constant 1.000000e+00 : f32
    %508 = vector.broadcast %cst_160 : f32 to vector<2x128xf32>
    %509 = arith.addf %508, %507 : vector<2x128xf32>
    %510 = arith.divf %508, %509 : vector<2x128xf32>
    %511 = vector.extract_strided_slice %500 {offsets = [0, 128], sizes = [2, 128], strides = [1, 1]} : vector<2x384xf32> to vector<2x128xf32>
    %512 = vector.extract_strided_slice %502 {offsets = [0, 128], sizes = [2, 128], strides = [1, 1]} : vector<2x384xf32> to vector<2x128xf32>
    %513 = arith.addf %511, %512 : vector<2x128xf32>
    %514 = arith.negf %513 : vector<2x128xf32>
    %515 = math.exp %514 : vector<2x128xf32>
    %cst_161 = arith.constant 1.000000e+00 : f32
    %516 = vector.broadcast %cst_161 : f32 to vector<2x128xf32>
    %517 = arith.addf %516, %515 : vector<2x128xf32>
    %518 = arith.divf %516, %517 : vector<2x128xf32>
    %519 = vector.extract_strided_slice %500 {offsets = [0, 256], sizes = [2, 128], strides = [1, 1]} : vector<2x384xf32> to vector<2x128xf32>
    %520 = vector.extract_strided_slice %502 {offsets = [0, 256], sizes = [2, 128], strides = [1, 1]} : vector<2x384xf32> to vector<2x128xf32>
    %521 = arith.addf %520, %298 : vector<2x128xf32>
    %522 = arith.mulf %510, %521 : vector<2x128xf32>
    %523 = arith.addf %519, %522 : vector<2x128xf32>
    %524 = math.tanh %523 : vector<2x128xf32>
    %cst_162 = arith.constant 1.000000e+00 : f32
    %525 = vector.broadcast %cst_162 : f32 to vector<2x128xf32>
    %526 = arith.subf %525, %518 : vector<2x128xf32>
    %527 = arith.mulf %526, %524 : vector<2x128xf32>
    %528 = arith.mulf %518, %496 : vector<2x128xf32>
    %529 = arith.addf %527, %528 : vector<2x128xf32>
    %c6_163 = arith.constant 6 : index
    %c0_164 = arith.constant 0 : index
    %c0_165 = arith.constant 0 : index
    %530 = vector.load %arg1[%c6_163, %c0_164, %c0_165] : memref<8x2x4xf32, #tpu.memory_space<vmem>>, vector<1x2x4xf32>
    %531 = vector.shape_cast %530 : vector<1x2x4xf32> to vector<2x4xf32>
    %cst_166 = arith.constant dense<0.000000e+00> : vector<2x384xf32>
    %532 = tpu.matmul %531, %292, %cst_166 {dimension_numbers = #tpu.dot_dimension_numbers<[1], [0], [0], [1], [0, 0, 1, 1], [], []>} : vector<2x4xf32>, vector<4x384xf32>, vector<2x384xf32> -> vector<2x384xf32>
    %533 = arith.addf %532, %295 : vector<2x384xf32>
    %c8_167 = arith.constant 8 : index
    %c0_168 = arith.constant 0 : index
    %534 = vector.load %arg4[%c8_167, %c0_168] : memref<144x512xf32, #tpu.memory_space<vmem>>, vector<128x384xf32>
    %cst_169 = arith.constant dense<0.000000e+00> : vector<2x384xf32>
    %535 = tpu.matmul %529, %534, %cst_169 {dimension_numbers = #tpu.dot_dimension_numbers<[1], [0], [0], [1], [0, 0, 1, 1], [], []>} : vector<2x128xf32>, vector<128x384xf32>, vector<2x384xf32> -> vector<2x384xf32>
    %536 = vector.extract_strided_slice %533 {offsets = [0, 0], sizes = [2, 128], strides = [1, 1]} : vector<2x384xf32> to vector<2x128xf32>
    %537 = vector.extract_strided_slice %535 {offsets = [0, 0], sizes = [2, 128], strides = [1, 1]} : vector<2x384xf32> to vector<2x128xf32>
    %538 = arith.addf %536, %537 : vector<2x128xf32>
    %539 = arith.negf %538 : vector<2x128xf32>
    %540 = math.exp %539 : vector<2x128xf32>
    %cst_170 = arith.constant 1.000000e+00 : f32
    %541 = vector.broadcast %cst_170 : f32 to vector<2x128xf32>
    %542 = arith.addf %541, %540 : vector<2x128xf32>
    %543 = arith.divf %541, %542 : vector<2x128xf32>
    %544 = vector.extract_strided_slice %533 {offsets = [0, 128], sizes = [2, 128], strides = [1, 1]} : vector<2x384xf32> to vector<2x128xf32>
    %545 = vector.extract_strided_slice %535 {offsets = [0, 128], sizes = [2, 128], strides = [1, 1]} : vector<2x384xf32> to vector<2x128xf32>
    %546 = arith.addf %544, %545 : vector<2x128xf32>
    %547 = arith.negf %546 : vector<2x128xf32>
    %548 = math.exp %547 : vector<2x128xf32>
    %cst_171 = arith.constant 1.000000e+00 : f32
    %549 = vector.broadcast %cst_171 : f32 to vector<2x128xf32>
    %550 = arith.addf %549, %548 : vector<2x128xf32>
    %551 = arith.divf %549, %550 : vector<2x128xf32>
    %552 = vector.extract_strided_slice %533 {offsets = [0, 256], sizes = [2, 128], strides = [1, 1]} : vector<2x384xf32> to vector<2x128xf32>
    %553 = vector.extract_strided_slice %535 {offsets = [0, 256], sizes = [2, 128], strides = [1, 1]} : vector<2x384xf32> to vector<2x128xf32>
    %554 = arith.addf %553, %298 : vector<2x128xf32>
    %555 = arith.mulf %543, %554 : vector<2x128xf32>
    %556 = arith.addf %552, %555 : vector<2x128xf32>
    %557 = math.tanh %556 : vector<2x128xf32>
    %cst_172 = arith.constant 1.000000e+00 : f32
    %558 = vector.broadcast %cst_172 : f32 to vector<2x128xf32>
    %559 = arith.subf %558, %551 : vector<2x128xf32>
    %560 = arith.mulf %559, %557 : vector<2x128xf32>
    %561 = arith.mulf %551, %529 : vector<2x128xf32>
    %562 = arith.addf %560, %561 : vector<2x128xf32>
    %c8_173 = arith.constant 8 : index
    %c384_174 = arith.constant 384 : index
    %563 = vector.load %arg4[%c8_173, %c384_174] : memref<144x512xf32, #tpu.memory_space<vmem>>, vector<128x4xf32>
    %c138_175 = arith.constant 138 : index
    %c0_176 = arith.constant 0 : index
    %564 = vector.load %arg4[%c138_175, %c0_176] : memref<144x512xf32, #tpu.memory_space<vmem>>, vector<1x4xf32>
    %565 = vector.shape_cast %564 : vector<1x4xf32> to vector<1x4xf32>
    %566 = vector.broadcast %565 : vector<1x4xf32> to vector<2x4xf32>
    %cst_177 = arith.constant dense<0.000000e+00> : vector<2x4xf32>
    %567 = tpu.matmul %331, %563, %cst_177 {dimension_numbers = #tpu.dot_dimension_numbers<[1], [0], [0], [1], [0, 0, 1, 1], [], []>} : vector<2x128xf32>, vector<128x4xf32>, vector<2x4xf32> -> vector<2x4xf32>
    %568 = arith.addf %567, %566 : vector<2x4xf32>
    %cst_178 = arith.constant dense<0.000000e+00> : vector<2x4xf32>
    %569 = tpu.matmul %364, %563, %cst_178 {dimension_numbers = #tpu.dot_dimension_numbers<[1], [0], [0], [1], [0, 0, 1, 1], [], []>} : vector<2x128xf32>, vector<128x4xf32>, vector<2x4xf32> -> vector<2x4xf32>
    %570 = arith.addf %569, %566 : vector<2x4xf32>
    %cst_179 = arith.constant dense<0.000000e+00> : vector<2x4xf32>
    %571 = tpu.matmul %397, %563, %cst_179 {dimension_numbers = #tpu.dot_dimension_numbers<[1], [0], [0], [1], [0, 0, 1, 1], [], []>} : vector<2x128xf32>, vector<128x4xf32>, vector<2x4xf32> -> vector<2x4xf32>
    %572 = arith.addf %571, %566 : vector<2x4xf32>
    %cst_180 = arith.constant dense<0.000000e+00> : vector<2x4xf32>
    %573 = tpu.matmul %430, %563, %cst_180 {dimension_numbers = #tpu.dot_dimension_numbers<[1], [0], [0], [1], [0, 0, 1, 1], [], []>} : vector<2x128xf32>, vector<128x4xf32>, vector<2x4xf32> -> vector<2x4xf32>
    %574 = arith.addf %573, %566 : vector<2x4xf32>
    %cst_181 = arith.constant dense<0.000000e+00> : vector<2x4xf32>
    %575 = tpu.matmul %463, %563, %cst_181 {dimension_numbers = #tpu.dot_dimension_numbers<[1], [0], [0], [1], [0, 0, 1, 1], [], []>} : vector<2x128xf32>, vector<128x4xf32>, vector<2x4xf32> -> vector<2x4xf32>
    %576 = arith.addf %575, %566 : vector<2x4xf32>
    %cst_182 = arith.constant dense<0.000000e+00> : vector<2x4xf32>
    %577 = tpu.matmul %496, %563, %cst_182 {dimension_numbers = #tpu.dot_dimension_numbers<[1], [0], [0], [1], [0, 0, 1, 1], [], []>} : vector<2x128xf32>, vector<128x4xf32>, vector<2x4xf32> -> vector<2x4xf32>
    %578 = arith.addf %577, %566 : vector<2x4xf32>
    %cst_183 = arith.constant dense<0.000000e+00> : vector<2x4xf32>
    %579 = tpu.matmul %529, %563, %cst_183 {dimension_numbers = #tpu.dot_dimension_numbers<[1], [0], [0], [1], [0, 0, 1, 1], [], []>} : vector<2x128xf32>, vector<128x4xf32>, vector<2x4xf32> -> vector<2x4xf32>
    %580 = arith.addf %579, %566 : vector<2x4xf32>
    %cst_184 = arith.constant dense<0.000000e+00> : vector<2x4xf32>
    %581 = tpu.matmul %562, %563, %cst_184 {dimension_numbers = #tpu.dot_dimension_numbers<[1], [0], [0], [1], [0, 0, 1, 1], [], []>} : vector<2x128xf32>, vector<128x4xf32>, vector<2x4xf32> -> vector<2x4xf32>
    %582 = arith.addf %581, %566 : vector<2x4xf32>
    %c0_185 = arith.constant 0 : index
    %c0_186 = arith.constant 0 : index
    %c0_187 = arith.constant 0 : index
    %583 = vector.load %arg6[%c0_185, %c0_186, %c0_187] : memref<8x2x4xf32, #tpu.memory_space<vmem>>, vector<1x2x4xf32>
    %584 = vector.shape_cast %583 : vector<1x2x4xf32> to vector<2x4xf32>
    %585 = vector.shape_cast %568 : vector<2x4xf32> to vector<1x2x4xf32>
    tpu.vector_store %arg6[%c0_185, %c0_186, %c0_187], %585 {strides = array<i32>} : memref<8x2x4xf32, #tpu.memory_space<vmem>>, vector<1x2x4xf32>,
    %c1_188 = arith.constant 1 : index
    %c0_189 = arith.constant 0 : index
    %c0_190 = arith.constant 0 : index
    %586 = vector.load %arg6[%c1_188, %c0_189, %c0_190] : memref<8x2x4xf32, #tpu.memory_space<vmem>>, vector<1x2x4xf32>
    %587 = vector.shape_cast %586 : vector<1x2x4xf32> to vector<2x4xf32>
    %588 = vector.shape_cast %570 : vector<2x4xf32> to vector<1x2x4xf32>
    tpu.vector_store %arg6[%c1_188, %c0_189, %c0_190], %588 {strides = array<i32>} : memref<8x2x4xf32, #tpu.memory_space<vmem>>, vector<1x2x4xf32>,
    %c2_191 = arith.constant 2 : index
    %c0_192 = arith.constant 0 : index
    %c0_193 = arith.constant 0 : index
    %589 = vector.load %arg6[%c2_191, %c0_192, %c0_193] : memref<8x2x4xf32, #tpu.memory_space<vmem>>, vector<1x2x4xf32>
    %590 = vector.shape_cast %589 : vector<1x2x4xf32> to vector<2x4xf32>
    %591 = vector.shape_cast %572 : vector<2x4xf32> to vector<1x2x4xf32>
    tpu.vector_store %arg6[%c2_191, %c0_192, %c0_193], %591 {strides = array<i32>} : memref<8x2x4xf32, #tpu.memory_space<vmem>>, vector<1x2x4xf32>,
    %c3_194 = arith.constant 3 : index
    %c0_195 = arith.constant 0 : index
    %c0_196 = arith.constant 0 : index
    %592 = vector.load %arg6[%c3_194, %c0_195, %c0_196] : memref<8x2x4xf32, #tpu.memory_space<vmem>>, vector<1x2x4xf32>
    %593 = vector.shape_cast %592 : vector<1x2x4xf32> to vector<2x4xf32>
    %594 = vector.shape_cast %574 : vector<2x4xf32> to vector<1x2x4xf32>
    tpu.vector_store %arg6[%c3_194, %c0_195, %c0_196], %594 {strides = array<i32>} : memref<8x2x4xf32, #tpu.memory_space<vmem>>, vector<1x2x4xf32>,
    %c4_197 = arith.constant 4 : index
    %c0_198 = arith.constant 0 : index
    %c0_199 = arith.constant 0 : index
    %595 = vector.load %arg6[%c4_197, %c0_198, %c0_199] : memref<8x2x4xf32, #tpu.memory_space<vmem>>, vector<1x2x4xf32>
    %596 = vector.shape_cast %595 : vector<1x2x4xf32> to vector<2x4xf32>
    %597 = vector.shape_cast %576 : vector<2x4xf32> to vector<1x2x4xf32>
    tpu.vector_store %arg6[%c4_197, %c0_198, %c0_199], %597 {strides = array<i32>} : memref<8x2x4xf32, #tpu.memory_space<vmem>>, vector<1x2x4xf32>,
    %c5_200 = arith.constant 5 : index
    %c0_201 = arith.constant 0 : index
    %c0_202 = arith.constant 0 : index
    %598 = vector.load %arg6[%c5_200, %c0_201, %c0_202] : memref<8x2x4xf32, #tpu.memory_space<vmem>>, vector<1x2x4xf32>
    %599 = vector.shape_cast %598 : vector<1x2x4xf32> to vector<2x4xf32>
    %600 = vector.shape_cast %578 : vector<2x4xf32> to vector<1x2x4xf32>
    tpu.vector_store %arg6[%c5_200, %c0_201, %c0_202], %600 {strides = array<i32>} : memref<8x2x4xf32, #tpu.memory_space<vmem>>, vector<1x2x4xf32>,
    %c6_203 = arith.constant 6 : index
    %c0_204 = arith.constant 0 : index
    %c0_205 = arith.constant 0 : index
    %601 = vector.load %arg6[%c6_203, %c0_204, %c0_205] : memref<8x2x4xf32, #tpu.memory_space<vmem>>, vector<1x2x4xf32>
    %602 = vector.shape_cast %601 : vector<1x2x4xf32> to vector<2x4xf32>
    %603 = vector.shape_cast %580 : vector<2x4xf32> to vector<1x2x4xf32>
    tpu.vector_store %arg6[%c6_203, %c0_204, %c0_205], %603 {strides = array<i32>} : memref<8x2x4xf32, #tpu.memory_space<vmem>>, vector<1x2x4xf32>,
    %c7_206 = arith.constant 7 : index
    %c0_207 = arith.constant 0 : index
    %c0_208 = arith.constant 0 : index
    %604 = vector.load %arg6[%c7_206, %c0_207, %c0_208] : memref<8x2x4xf32, #tpu.memory_space<vmem>>, vector<1x2x4xf32>
    %605 = vector.shape_cast %604 : vector<1x2x4xf32> to vector<2x4xf32>
    %606 = vector.shape_cast %582 : vector<2x4xf32> to vector<1x2x4xf32>
    tpu.vector_store %arg6[%c7_206, %c0_207, %c0_208], %606 {strides = array<i32>} : memref<8x2x4xf32, #tpu.memory_space<vmem>>, vector<1x2x4xf32>,
    return
  }
}

</mosaic_0001>

<bundles_post_ra>
// kernel: crvae_forward.3
= control target key start
LH: loop header
LB: loop body
LE: loop exit
PB: predicated region body
PF: predicated region fallthrough
CT: control target
= control target key end

     0   :  { %12 = vsyncpa [#allocation3], 0  ;;  %s10181_s0 = inlined_call_operand.vmem [shape: f32[8,2,4], index: 0, kind: input, shape index: {}]   ;;  %s10182_s1 = inlined_call_operand.vmem [shape: f32[8,2,4], index: 1, kind: input, shape index: {}]   ;;  %s10183_s2 = inlined_call_operand.vmem [shape: f32[2,8], index: 2, kind: input, shape index: {}]   ;;  %s10184_s3 = inlined_call_operand.hbm [shape: f32[144,512], index: 3, kind: input, shape index: {}]   ;;  %s10185_s4 = inlined_call_operand.hbm [shape: f32[144,512], index: 4, kind: input, shape index: {}]   ;;  %s10186_s5 = inlined_call_operand.vmem [shape: f32[2,16], index: 5, kind: output, shape index: {0}]   ;;  %s10187_s6 = inlined_call_operand.vmem [shape: f32[8,2,4], index: 6, kind: output, shape index: {1}]  }
   0x1   :  { %13 = vsyncpa [#allocation5], 0  ;;  %s7807_s21 = smov [#allocation2]  }
   0x2   :  { %s25_s22 = sshll.u32 %s7807_s21, 4  ;;  %s26_s22 = int_to_ptr.vmem [resolvable:$true] %s25_s22 }
   0x3   :  { %s7771_s23 = scalar_lea.vmem %s26_s22, 9216  ;;  %p7776_p1 = scmp.lt.s32.totalorder %s26_s22, %s26_s22 }
   0x4   :  { %p7772_p0 = scmp.ne.s32.totalorder %s26_s22, %s7771_s23  ;;  %p7777_p2 = scmp.lt.s32.totalorder %s7771_s23, %s7771_s23 }
   0x6   :  { %p7778_p3 = por %p7777_p2, %p7776_p1 }
   0x8   :  { %p7779_p4 = pnand %p7778_p3, %p7772_p0 }
   0xa   :  { %7782 = shalt.err (!%p7779_p4)
}
   0xb   :  { %s7808_s24 = smov 512   ;;  %s7809_s25 = smov 32  }
   0xc   :  { %31 = dma.hbm_to_vmem [thread:$0]  %s10184_s3, 9216, %s26_s22, [#allocation3], %s7808_s24, %s7808_s24, %s7809_s25  }
   0xd   :  { %s7810_s28 = smov [#allocation4]  }
   0xe   :  { %s37_s29 = sshll.u32 %s7810_s28, 4  ;;  %s38_s29 = int_to_ptr.vmem [resolvable:$true] %s37_s29 }
   0xf   :  { %s7791_s30 = scalar_lea.vmem %s38_s29, 9216  ;;  %p7796_p6 = scmp.lt.s32.totalorder %s38_s29, %s38_s29 }
  0x10   :  { %p7792_p5 = scmp.ne.s32.totalorder %s38_s29, %s7791_s30  ;;  %p7797_p7 = scmp.lt.s32.totalorder %s7791_s30, %s7791_s30 }
  0x12   :  { %p7798_p8 = por %p7797_p7, %p7796_p6 }
  0x14   :  { %p7799_p9 = pnand %p7798_p8, %p7792_p5 }
  0x16   :  { %7802 = shalt.err (!%p7799_p9)
}
  0x17   :  { %43 = dma.hbm_to_vmem [thread:$0]  %s10185_s4, 9216, %s38_s29, [#allocation5], %s7808_s24, %s7808_s24, %s7809_s25  }
  0x18   :  { %7803 = dma.done.wait [#allocation3], 9216  }
  0x19   :  { %7804 = vsyncadd [#allocation3], 4294958080 }
  0x1a   :  { %7805 = dma.done.wait [#allocation5], 9216  }
  0x1b   :  { %7806 = vsyncadd [#allocation5], 4294958080  ;;  %v10188_v0 = vmov 0.0   ;;  %vm7812_vm0 = vmmov 0   ;;  %vm77_vm1 = vcmask 1043456   ;;  %vm73_vm2 = vcmask 31744  }
  0x1c   :  { %151 = vmatprep.mubr.f32.mxu0 %v10188_v0  ;;  %6527 = vmatprep.subr.mxu1 %v10188_v0  ;;  %v7860_v1 = vld [vmem:[#allocation2 + $0x8] sm:$0xf]  ;;  %v7862_v2 = vld [vmem:[#allocation2] sm:$0xf]  ;;  %v7903_v15 = vld [vmem:[#allocation2 + $0x10] sm:$0xf]  ;;  %v56_v56 = vlaneseq }
  0x1d   :  { %6529 = vmatprep.mubr.msk.f32.mxu1 %vm7812_vm0, %v10188_v0  ;;  %10298 = vst [vmem:[#allocation8_spill] sm:$0xff] %v7860_v1  ;;  %v72_v3 = vld [vmem:[%s10181_s0] sm:$0x3]  ;;  %5934 = vmatprep.subr.msk.mxu0 %vm77_vm1, %v7860_v1  ;;  %v7869_v4 = vld [vmem:[#allocation2 + $0x208] sm:$0xff]  ;;  %v7914_v18 = vld [vmem:[#allocation2 + $0x210] sm:$0xff]  ;;  %s7813_s25 = smov 8  }
  0x1e   :  { %v7871_v5 = vld [vmem:[#allocation2 + $0x200] sm:$0xff]  ;;  %5935 = vmatpush1.msk.msra.mxu0 %vm77_vm1, %v7862_v2  ;;  %v7875_v6 = vld [vmem:[#allocation2 + $0x1e8] sm:$0xff]  ;;  %6528 = vmatpush3.msk.msra.mxu1 %vm77_vm1, %v7903_v15  ;;  %v7920_v20 = vld [vmem:[#allocation2 + $0x1f0] sm:$0xff]  ;;  %v8127_v57 = vshrl.u32 %v56_v56, 7  ;;  %vm2780_vm3 = vcmask 123904   ;;  %s7814_s27 = smov 120  }
  0x1f   :  { %5936 = vmatmul.mubr.msk.f32.vlgmr.msra.gmra.mxu0 %vm73_vm2, %v72_v3  ;;  %276 = vmatprep.subr.mxu0 %v7869_v4  ;;  %v7879_v7 = vld [vmem:[#allocation2 + $0x1e0] sm:$0xff]  ;;  %v7882_v8 = vld [vmem:[#allocation2 + $0x1c8] sm:$0xff]  ;;  %v7930_v23 = vld [vmem:[#allocation2 + $0x1d0] sm:$0xff]  ;;  %vm2705_vm4 = vcmask 64512   ;;  %vm5908_vm5 = vcmask 25600  }
  0x20   :  { %277 = vmatpush1.msra.mxu0 %v7871_v5  ;;  %340 = vmatprep.mubr.f32.mxu0 %v10188_v0  ;;  %v7886_v9 = vld [vmem:[#allocation2 + $0x1c0] sm:$0xff]  ;;  %v7889_v10 = vld [vmem:[#allocation2 + $0x1a8] sm:$0xff]  ;;  %v7940_v26 = vld [vmem:[#allocation2 + $0x1b0] sm:$0xff]  ;;  %10309 = vst [vmem:[#allocation19_spill] sm:$0xff] %v8127_v57  ;;  %v10198_v58 = vsub.s32 0, %v8127_v57  ;;  %v10209_v62 = vsub.s32 1, %v8127_v57 }
  0x21   :  { %278 = vmatprep.subr.mxu0 %v7875_v6  ;;  %v7892_v11 = vld [vmem:[#allocation2 + $0x1a0] sm:$0xff]  ;;  %v7895_v12 = vld [vmem:[#allocation2 + $0x188] sm:$0xff]  ;;  %6532 = vmatprep.subr.mxu1 %v10188_v0  ;;  %v7950_v29 = vld [vmem:[#allocation2 + $0x190] sm:$0xff] }
  0x22   :  { %279 = vmatpush1.msra.mxu0 %v7879_v7  ;;  %v7898_v13 = vld [vmem:[#allocation2 + $0x180] sm:$0xff]  ;;  %v7901_v14 = vld [vmem:[#allocation2 + $0x168] sm:$0xff]  ;;  %6530 = vmatmul.mubr.msk.f32.vlgmr.msra.gmra.mxu1 %vm73_vm2, %v72_v3  ;;  %v7960_v32 = vld [vmem:[#allocation2 + $0x170] sm:$0xff] }
  0x23   :  { %280 = vmatprep.subr.mxu0 %v7882_v8  ;;  %v7906_v16 = vld [vmem:[#allocation2 + $0x160] sm:$0xff]  ;;  %v7911_v17 = vld [vmem:[#allocation2 + $0x148] sm:$0xff]  ;;  %6533 = vmatpush3.msra.mxu1 %v7914_v18  ;;  %v7970_v35 = vld [vmem:[#allocation2 + $0x150] sm:$0xff] }
  0x24   :  { %281 = vmatpush1.msra.mxu0 %v7886_v9  ;;  %v7917_v19 = vld [vmem:[#allocation2 + $0x140] sm:$0xff]  ;;  %v7923_v21 = vld [vmem:[#allocation2 + $0x128] sm:$0xff]  ;;  %6534 = vmatprep.subr.mxu1 %v10188_v0  ;;  %v7980_v38 = vld [vmem:[#allocation2 + $0x130] sm:$0xff] }
  0x25   :  { %282 = vmatprep.subr.mxu0 %v7889_v10  ;;  %v7927_v22 = vld [vmem:[#allocation2 + $0x120] sm:$0xff]  ;;  %v7933_v24 = vld [vmem:[#allocation2 + $0x108] sm:$0xff]  ;;  %6535 = vmatpush3.msra.mxu1 %v7920_v20  ;;  %v7990_v41 = vld [vmem:[#allocation2 + $0x110] sm:$0xff] }
  0x26   :  { %283 = vmatpush1.msra.mxu0 %v7892_v11  ;;  %v7937_v25 = vld [vmem:[#allocation2 + $0x100] sm:$0xff]  ;;  %6536 = vmatprep.subr.mxu1 %v10188_v0  ;;  %v7943_v27 = vld [vmem:[#allocation2 + $0xe8] sm:$0xff]  ;;  %v8000_v44 = vld [vmem:[#allocation2 + $0xf0] sm:$0xff] }
  0x27   :  { %284 = vmatprep.subr.mxu0 %v7895_v12  ;;  %6537 = vmatpush3.msra.mxu1 %v7930_v23  ;;  %v7947_v28 = vld [vmem:[#allocation2 + $0xe0] sm:$0xff]  ;;  %v7953_v30 = vld [vmem:[#allocation2 + $0xc8] sm:$0xff]  ;;  %v8010_v47 = vld [vmem:[#allocation2 + $0xd0] sm:$0xff] }
  0x28   :  { %285 = vmatpush1.msra.mxu0 %v7898_v13  ;;  %6538 = vmatprep.subr.mxu1 %v10188_v0  ;;  %v7957_v31 = vld [vmem:[#allocation2 + $0xc0] sm:$0xff]  ;;  %v7963_v33 = vld [vmem:[#allocation2 + $0xa8] sm:$0xff]  ;;  %v8016_v48 = vld [vmem:[#allocation2 + $0xb0] sm:$0xff] }
  0x29   :  { %286 = vmatprep.subr.mxu0 %v7901_v14  ;;  %6539 = vmatpush3.msra.mxu1 %v7940_v26  ;;  %v7967_v34 = vld [vmem:[#allocation2 + $0xa0] sm:$0xff]  ;;  %v7973_v36 = vld [vmem:[#allocation2 + $0x88] sm:$0xff]  ;;  %v8022_v49 = vld [vmem:[#allocation2 + $0x90] sm:$0xff] }
  0x2a   :  { %287 = vmatpush1.msra.mxu0 %v7906_v16  ;;  %6540 = vmatprep.subr.mxu1 %v10188_v0  ;;  %v7977_v37 = vld [vmem:[#allocation2 + $0x80] sm:$0xff]  ;;  %v7983_v39 = vld [vmem:[#allocation2 + $0x68] sm:$0xff]  ;;  %10305 = vst [vmem:[#allocation15_spill] sm:$0xff] %v8022_v49  ;;  %v8028_v50 = vld [vmem:[#allocation2 + $0x70] sm:$0xff] }
  0x2b   :  { %288 = vmatprep.subr.mxu0 %v7911_v17  ;;  %6541 = vmatpush3.msra.mxu1 %v7950_v29  ;;  %10299 = vst [vmem:[#allocation9_spill] sm:$0xff] %v7983_v39  ;;  %v7987_v40 = vld [vmem:[#allocation2 + $0x60] sm:$0xff]  ;;  %v7993_v42 = vld [vmem:[#allocation2 + $0x48] sm:$0xff]  ;;  %10306 = vst [vmem:[#allocation16_spill] sm:$0xff] %v8028_v50 }
  0x2c   :  { %289 = vmatpush1.msra.mxu0 %v7917_v19  ;;  %6542 = vmatprep.subr.mxu1 %v10188_v0  ;;  %10300 = vst [vmem:[#allocation10_spill] sm:$0xff] %v7987_v40  ;;  %10301 = vst [vmem:[#allocation11_spill] sm:$0xff] %v7993_v42  ;;  %v7997_v43 = vld [vmem:[#allocation2 + $0x40] sm:$0xff]  ;;  %v8003_v45 = vld [vmem:[#allocation2 + $0x28] sm:$0xff] }
  0x2d   :  { %290 = vmatprep.subr.mxu0 %v7923_v21  ;;  %6543 = vmatpush3.msra.mxu1 %v7960_v32  ;;  %10302 = vst [vmem:[#allocation12_spill] sm:$0xff] %v7997_v43  ;;  %10303 = vst [vmem:[#allocation13_spill] sm:$0xff] %v8003_v45  ;;  %v8007_v46 = vld [vmem:[#allocation2 + $0x20] sm:$0xff]  ;;  %v8036_v51 = vld [vmem:[#allocation2 + $0x50] sm:$0xff] }
  0x2e   :  { %291 = vmatpush1.msra.mxu0 %v7927_v22  ;;  %6544 = vmatprep.subr.mxu1 %v10188_v0  ;;  %10304 = vst [vmem:[#allocation14_spill] sm:$0xff] %v8007_v46  ;;  %10307 = vst [vmem:[#allocation17_spill] sm:$0xff] %v8036_v51  ;;  %v8042_v52 = vld [vmem:[#allocation2 + $0x30] sm:$0xff]  ;;  %v5941_v53 = vld [vmem:[%s10181_s0 + $0x2] sm:$0x3] }
  0x2f   :  { %292 = vmatprep.subr.mxu0 %v7933_v24  ;;  %6545 = vmatpush3.msra.mxu1 %v7970_v35  ;;  %10308 = vst [vmem:[#allocation18_spill] sm:$0xff] %v8042_v52  ;;  %v54_v59 = vld [vmem:[#allocation2 + $0x220] ss:$8 sm:$0x7] }
  0x30   :  { %293 = vmatpush1.msra.mxu0 %v7937_v25  ;;  %6546 = vmatprep.subr.mxu1 %v10188_v0  ;;  %v8132_v61 = vrot.slane %v54_v59, %v10198_v58 }
  0x31   :  { %294 = vmatprep.subr.mxu0 %v7943_v27  ;;  %6547 = vmatpush3.msra.mxu1 %v7980_v38 }
  0x32   :  { %295 = vmatpush1.msra.mxu0 %v7947_v28  ;;  %6548 = vmatprep.subr.mxu1 %v10188_v0  ;;  %10310 = vst [vmem:[#allocation20_spill] sm:$0xff] %v8132_v61 }
  0x33   :  { %296 = vmatprep.subr.mxu0 %v7953_v30  ;;  %6549 = vmatpush3.msra.mxu1 %v7990_v41 }
  0x34   :  { %297 = vmatpush1.msra.mxu0 %v7957_v31  ;;  %6550 = vmatprep.subr.mxu1 %v10188_v0 }
  0x35   :  { %298 = vmatprep.subr.mxu0 %v7963_v33  ;;  %6551 = vmatpush3.msra.mxu1 %v8000_v44 }
  0x36   :  { %299 = vmatpush1.msra.mxu0 %v7967_v34  ;;  %6552 = vmatprep.subr.mxu1 %v10188_v0 }
  0x37   :  { %300 = vmatprep.subr.mxu0 %v7973_v36  ;;  %6553 = vmatpush3.msra.mxu1 %v8010_v47 }
  0x38   :  { %301 = vmatpush1.msra.mxu0 %v7977_v37  ;;  %6554 = vmatprep.subr.mxu1 %v10188_v0 }
  0x39   :  { %302 = vmatprep.subr.mxu0 %v7983_v39  ;;  %6555 = vmatpush3.msra.mxu1 %v8016_v48 }
  0x3a   :  { %303 = vmatpush1.msra.mxu0 %v7987_v40  ;;  %6564 = vmatprep.mubr.msk.f32.mxu1 %vm7812_vm0, %v10188_v0 }
  0x3b   :  { %304 = vmatprep.subr.mxu0 %v7993_v42  ;;  %6556 = vmatprep.subr.mxu1 %v10188_v0 }
  0x3c   :  { %305 = vmatpush1.msra.mxu0 %v7997_v43  ;;  %6557 = vmatpush3.msra.mxu1 %v8022_v49 }
  0x3d   :  { %306 = vmatprep.subr.mxu0 %v8003_v45  ;;  %6558 = vmatprep.subr.mxu1 %v10188_v0 }
  0x3e   :  { %307 = vmatpush1.msra.mxu0 %v8007_v46  ;;  %6559 = vmatpush3.msra.mxu1 %v8028_v50 }
  0x3f   :  { %341 = vmatmul.mubr.f32.vlgmr.msra.gmra.mxu0 %v10188_v0  ;;  %5942 = vmatprep.subr.msk.mxu0 %vm77_vm1, %v7860_v1 }
  0x40   :  { %5943 = vmatpush1.msk.msra.mxu0 %vm77_vm1, %v7862_v2  ;;  %508 = vmatprep.mubr.f32.mxu0 %v10188_v0 }
  0x41   :  { %585 = vmatprep.subr.mxu0 %v7869_v4  ;;  %6560 = vmatprep.subr.mxu1 %v10188_v0 }
  0x42   :  { %6561 = vmatpush3.msra.mxu1 %v8036_v51 }
  0x43   :  { %6562 = vmatprep.subr.mxu1 %v10188_v0  ;;  %5944 = vmatmul.mubr.msk.f32.vlgmr.msra.gmra.mxu0 %vm73_vm2, %v5941_v53 }
  0x44   :  { %6563 = vmatpush3.msra.mxu1 %v8042_v52  ;;  %586 = vmatpush1.msra.mxu0 %v7871_v5 }
  0x45   :  { %6565 = vmatmul.mubr.f32.vlgmr.msra.gmra.mxu1 %v10188_v0  ;;  %6567 = vmatprep.subr.mxu1 %v10188_v0 }
  0x46   :  { %6568 = vmatpush3.msk.msra.mxu1 %vm77_vm1, %v7903_v15  ;;  %6569 = vmatprep.mubr.msk.f32.mxu1 %vm7812_vm0, %v10188_v0 }
  0x47   :  { %6572 = vmatprep.subr.mxu1 %v10188_v0  ;;  %587 = vmatprep.subr.mxu0 %v7875_v6 }
  0x48   :  { %588 = vmatpush1.msra.mxu0 %v7879_v7  ;;  %649 = vmatprep.mubr.f32.mxu0 %v10188_v0 }
  0x49   :  { %6570 = vmatmul.mubr.msk.f32.vlgmr.msra.gmra.mxu1 %vm73_vm2, %v5941_v53  ;;  %589 = vmatprep.subr.mxu0 %v7882_v8 }
  0x4a   :  { %6573 = vmatpush3.msra.mxu1 %v7914_v18  ;;  %590 = vmatpush1.msra.mxu0 %v7886_v9 }
  0x4b   :  { %6574 = vmatprep.subr.mxu1 %v10188_v0  ;;  %591 = vmatprep.subr.mxu0 %v7889_v10 }
  0x4c   :  { %6575 = vmatpush3.msra.mxu1 %v7920_v20  ;;  %592 = vmatpush1.msra.mxu0 %v7892_v11 }
  0x4d   :  { %6576 = vmatprep.subr.mxu1 %v10188_v0  ;;  %593 = vmatprep.subr.mxu0 %v7895_v12 }
  0x4e   :  { %6577 = vmatpush3.msra.mxu1 %v7930_v23  ;;  %594 = vmatpush1.msra.mxu0 %v7898_v13 }
  0x4f   :  { %6578 = vmatprep.subr.mxu1 %v10188_v0  ;;  %595 = vmatprep.subr.mxu0 %v7901_v14 }
  0x50   :  { %6579 = vmatpush3.msra.mxu1 %v7940_v26  ;;  %596 = vmatpush1.msra.mxu0 %v7906_v16 }
  0x51   :  { %6580 = vmatprep.subr.mxu1 %v10188_v0  ;;  %597 = vmatprep.subr.mxu0 %v7911_v17 }
  0x52   :  { %6581 = vmatpush3.msra.mxu1 %v7950_v29  ;;  %598 = vmatpush1.msra.mxu0 %v7917_v19 }
  0x53   :  { %6582 = vmatprep.subr.mxu1 %v10188_v0  ;;  %599 = vmatprep.subr.mxu0 %v7923_v21 }
  0x54   :  { %6583 = vmatpush3.msra.mxu1 %v7960_v32  ;;  %600 = vmatpush1.msra.mxu0 %v7927_v22 }
  0x55   :  { %6584 = vmatprep.subr.mxu1 %v10188_v0  ;;  %601 = vmatprep.subr.mxu0 %v7933_v24 }
  0x56   :  { %6585 = vmatpush3.msra.mxu1 %v7970_v35  ;;  %602 = vmatpush1.msra.mxu0 %v7937_v25 }
  0x57   :  { %6586 = vmatprep.subr.mxu1 %v10188_v0  ;;  %603 = vmatprep.subr.mxu0 %v7943_v27 }
  0x58   :  { %6587 = vmatpush3.msra.mxu1 %v7980_v38  ;;  %604 = vmatpush1.msra.mxu0 %v7947_v28 }
  0x59   :  { %6588 = vmatprep.subr.mxu1 %v10188_v0  ;;  %605 = vmatprep.subr.mxu0 %v7953_v30 }
  0x5a   :  { %6589 = vmatpush3.msra.mxu1 %v7990_v41  ;;  %606 = vmatpush1.msra.mxu0 %v7957_v31 }
  0x5b   :  { %6590 = vmatprep.subr.mxu1 %v10188_v0  ;;  %607 = vmatprep.subr.mxu0 %v7963_v33 }
  0x5c   :  { %6591 = vmatpush3.msra.mxu1 %v8000_v44  ;;  %608 = vmatpush1.msra.mxu0 %v7967_v34 }
  0x5d   :  { %6592 = vmatprep.subr.mxu1 %v10188_v0  ;;  %609 = vmatprep.subr.mxu0 %v7973_v36 }
  0x5e   :  { %6593 = vmatpush3.msra.mxu1 %v8010_v47  ;;  %610 = vmatpush1.msra.mxu0 %v7977_v37 }
  0x5f   :  { %6594 = vmatprep.subr.mxu1 %v10188_v0  ;;  %611 = vmatprep.subr.mxu0 %v7983_v39 }
  0x60   :  { %6595 = vmatpush3.msra.mxu1 %v8016_v48  ;;  %612 = vmatpush1.msra.mxu0 %v7987_v40 }
  0x61   :  { %6596 = vmatprep.subr.mxu1 %v10188_v0  ;;  %613 = vmatprep.subr.mxu0 %v7993_v42 }
  0x62   :  { %6597 = vmatpush3.msra.mxu1 %v8022_v49  ;;  %614 = vmatpush1.msra.mxu0 %v7997_v43 }
  0x63   :  { %6598 = vmatprep.subr.mxu1 %v10188_v0  ;;  %615 = vmatprep.subr.mxu0 %v8003_v45 }
  0x64   :  { %6599 = vmatpush3.msra.mxu1 %v8028_v50  ;;  %616 = vmatpush1.msra.mxu0 %v8007_v46  ;;  %v8142_v50 = vld [vmem:[#allocation2 + $0x221] ss:$0 sm:$0xff] }
  0x65   :  { %6600 = vmatprep.subr.mxu1 %v10188_v0  ;;  %6604 = vmatprep.mubr.msk.f32.mxu1 %vm7812_vm0, %v10188_v0 }
  0x66   :  { %6601 = vmatpush3.msra.mxu1 %v8036_v51  ;;  %5950 = vmatprep.subr.msk.mxu0 %vm77_vm1, %v7860_v1 }
  0x67   :  { %6602 = vmatprep.subr.mxu1 %v10188_v0 }
  0x68   :  { %6603 = vmatpush3.msra.mxu1 %v8042_v52 }
  0x69   :  { %6607 = vmatprep.subr.mxu1 %v10188_v0 }
  0xdf   :  { %v153_v60 = vpop.f32.mrf.mxu0 }
  0xe0   :  { %v154_v3 = vadd.f32 %v153_v60, %v8132_v61  ;;  %v10210_v60 = vsub.s32 2, %v8127_v57 }
  0xe1   :  { %v155_v63 = vpop.f32.mrf.mxu0 }
  0xe2   :  { %v224_v54 = vpop.f32.mrf.mxu1 }
  0xe4   :  { %v6531_v55 = vpop.f32.mrf.mxu1 }
  0xe5   :  { %v8138_v55 = vrot.slane %v54_v59, %v10209_v62 }
  0xe7   :  { %v156_v52 = vadd.f32 %v155_v63, %v8138_v55 }
  0xff   :  { %v342_v53 = vpop.f32.mrf.mxu0 }
 0x100   :  { %v417_v56 = vadd.f32 %v342_v53, %v154_v3  ;;  %v8146_v3 = vrot.slane %v54_v59, %v10210_v60 }
 0x101   :  { %v344_v1 = vpop.f32.mrf.mxu0 }
 0x102   :  { %v5939_v0 = vmul.f32 -1.442695, %v417_v56  ;;  %v424_v46 = vadd.f32 %v344_v1, %v156_v52 }
 0x104   :  { %7495 = vpow2.f32 %v5939_v0  ;;  %v5940_v58 = vmul.f32 -1.442695, %v424_v46  ;;  %v225_v46 = vadd.f32 %v224_v54, %v8146_v3 }
 0x105   :  { %v413_v45 = vpop.f32.mrf.mxu1 }
 0x106   :  { %7497 = vpow2.f32 %v5940_v58  ;;  %v431_v0 = vadd.f32 %v413_v45, %v8142_v50  ;;  %v10311_v45 = vmov 0.0  }
 0x107   :  { %v6566_v51 = vpop.f32.mrf.mxu1 }
 0x109   :  { %v8163_v54 = vpop.f32.mrf.mxu1 }
 0x10b   :  { %v6571_v59 = vpop.f32.mrf.mxu1 }
 0x111   :  { %v7496_v43 = vpop.eup %7495 }
 0x112   :  { %v421_v42 = vadd.f32 1.0, %v7496_v43 }
 0x113   :  { %v7498_v61 = vpop.eup %7497 }
 0x114   :  { %7499 = vrcp.f32 %v421_v42  ;;  %v428_v53 = vadd.f32 1.0, %v7498_v61  ;;  %v5949_v61 = vld [vmem:[%s10181_s0 + $0x4] sm:$0x3] }
 0x116   :  { %7501 = vrcp.f32 %v428_v53  ;;  %v10312_v53 = vld [vmem:[#allocation16_spill] sm:$0xff] }
 0x121   :  { %v7500_v1 = vpop.eup %7499 }
 0x122   :  { %v432_v51 = vmul.f32 %v7500_v1, %v431_v0  ;;  %v10313_v0 = vld [vmem:[#allocation11_spill] sm:$0xff]  ;;  %v10314_v1 = vld [vmem:[#allocation12_spill] sm:$0xff] }
 0x123   :  { %v7502_v42 = vpop.eup %7501 }
 0x124   :  { %v433_v52 = vadd.f32 %v432_v51, %v225_v46  ;;  %v435_v43 = vsub.f32 1.0, %v7502_v42  ;;  %v437_v56 = vmul.f32 0.0, %v7502_v42  ;;  %v10315_v46 = vld [vmem:[#allocation17_spill] sm:$0xff]  ;;  %v10318_v42 = vld [vmem:[#allocation18_spill] sm:$0xff] }
 0x125   :  { %v10316_v51 = vld [vmem:[#allocation13_spill] sm:$0xff] }
 0x126   :  { %7503 = vtanh.f32 %v433_v52  ;;  %v10317_v52 = vld [vmem:[#allocation14_spill] sm:$0xff] }
 0x133   :  { %v7504_v58 = vpop.eup %7503 }
 0x134   :  { %v436_v63 = vmul.f32 %v7504_v58, %v435_v43  ;;  %v10319_v43 = vld [vmem:[#allocation8_spill] sm:$0xff]  ;;  %v510_v58 = vpop.f32.mrf.mxu0 }
 0x136   :  { %v8150_v62 = vadd.f32 %v437_v56, %v436_v63  ;;  %v512_v63 = vpop.f32.mrf.mxu0  ;;  %v10320_v56 = vld [vmem:[#allocation20_spill] sm:$0xff] }
 0x137   :  { %v511_v59 = vadd.f32 %v510_v58, %v10320_v56 }
 0x138   :  { %650 = vmatmul.mubr.f32.vlgmr.msra.gmra.mxu0 %v8150_v62  ;;  %6605 = vmatmul.mubr.f32.vlgmr.msra.gmra.mxu1 %v8150_v62 }
 0x139   :  { %5951 = vmatpush1.msk.msra.mxu0 %vm77_vm1, %v7862_v2  ;;  %817 = vmatprep.mubr.f32.mxu0 %v10311_v45 }
 0x13a   :  { %6608 = vmatpush3.msk.msra.mxu1 %vm77_vm1, %v7903_v15  ;;  %6609 = vmatprep.mubr.msk.f32.mxu1 %vm7812_vm0, %v10311_v45 }
 0x13b   :  { %894 = vmatprep.subr.mxu0 %v7869_v4  ;;  %6612 = vmatprep.subr.mxu1 %v10311_v45 }
 0x13c   :  { %5952 = vmatmul.mubr.msk.f32.vlgmr.msra.gmra.mxu0 %vm73_vm2, %v5949_v61  ;;  %6610 = vmatmul.mubr.msk.f32.vlgmr.msra.gmra.mxu1 %vm73_vm2, %v5949_v61 }
 0x13d   :  { %895 = vmatpush1.msra.mxu0 %v7871_v5  ;;  %6613 = vmatpush3.msra.mxu1 %v7914_v18 }
 0x13e   :  { %896 = vmatprep.subr.mxu0 %v7875_v6  ;;  %6614 = vmatprep.subr.mxu1 %v10311_v45 }
 0x13f   :  { %897 = vmatpush1.msra.mxu0 %v7879_v7  ;;  %6615 = vmatpush3.msra.mxu1 %v7920_v20 }
 0x140   :  { %898 = vmatprep.subr.mxu0 %v7882_v8  ;;  %6616 = vmatprep.subr.mxu1 %v10311_v45 }
 0x141   :  { %899 = vmatpush1.msra.mxu0 %v7886_v9  ;;  %6617 = vmatpush3.msra.mxu1 %v7930_v23 }
 0x142   :  { %900 = vmatprep.subr.mxu0 %v7889_v10  ;;  %6618 = vmatprep.subr.mxu1 %v10311_v45 }
 0x143   :  { %901 = vmatpush1.msra.mxu0 %v7892_v11  ;;  %6619 = vmatpush3.msra.mxu1 %v7940_v26 }
 0x144   :  { %902 = vmatprep.subr.mxu0 %v7895_v12  ;;  %6620 = vmatprep.subr.mxu1 %v10311_v45 }
 0x145   :  { %903 = vmatpush1.msra.mxu0 %v7898_v13  ;;  %6621 = vmatpush3.msra.mxu1 %v7950_v29 }
 0x146   :  { %904 = vmatprep.subr.mxu0 %v7901_v14  ;;  %6622 = vmatprep.subr.mxu1 %v10311_v45 }
 0x147   :  { %905 = vmatpush1.msra.mxu0 %v7906_v16  ;;  %6623 = vmatpush3.msra.mxu1 %v7960_v32 }
 0x148   :  { %906 = vmatprep.subr.mxu0 %v7911_v17  ;;  %6624 = vmatprep.subr.mxu1 %v10311_v45 }
 0x149   :  { %907 = vmatpush1.msra.mxu0 %v7917_v19  ;;  %6625 = vmatpush3.msra.mxu1 %v7970_v35 }
 0x14a   :  { %908 = vmatprep.subr.mxu0 %v7923_v21  ;;  %6626 = vmatprep.subr.mxu1 %v10311_v45 }
 0x14b   :  { %909 = vmatpush1.msra.mxu0 %v7927_v22  ;;  %6627 = vmatpush3.msra.mxu1 %v7980_v38 }
 0x14c   :  { %910 = vmatprep.subr.mxu0 %v7933_v24  ;;  %6628 = vmatprep.subr.mxu1 %v10311_v45 }
 0x14d   :  { %911 = vmatpush1.msra.mxu0 %v7937_v25  ;;  %6629 = vmatpush3.msra.mxu1 %v7990_v41 }
 0x14e   :  { %912 = vmatprep.subr.mxu0 %v7943_v27  ;;  %6630 = vmatprep.subr.mxu1 %v10311_v45 }
 0x14f   :  { %913 = vmatpush1.msra.mxu0 %v7947_v28  ;;  %6631 = vmatpush3.msra.mxu1 %v8000_v44 }
 0x150   :  { %914 = vmatprep.subr.mxu0 %v7953_v30  ;;  %6632 = vmatprep.subr.mxu1 %v10311_v45 }
 0x151   :  { %915 = vmatpush1.msra.mxu0 %v7957_v31  ;;  %6633 = vmatpush3.msra.mxu1 %v8010_v47 }
 0x152   :  { %916 = vmatprep.subr.mxu0 %v7963_v33  ;;  %6634 = vmatprep.subr.mxu1 %v10311_v45 }
 0x153   :  { %917 = vmatpush1.msra.mxu0 %v7967_v34  ;;  %6635 = vmatpush3.msra.mxu1 %v8016_v48 }
 0x154   :  { %918 = vmatprep.subr.mxu0 %v7973_v36  ;;  %6636 = vmatprep.subr.mxu1 %v10311_v45 }
 0x155   :  { %919 = vmatpush1.msra.mxu0 %v7977_v37  ;;  %6637 = vmatpush3.msra.mxu1 %v8022_v49 }
 0x156   :  { %920 = vmatprep.subr.mxu0 %v7983_v39  ;;  %6638 = vmatprep.subr.mxu1 %v10311_v45 }
 0x157   :  { %921 = vmatpush1.msra.mxu0 %v7987_v40  ;;  %6639 = vmatpush3.msra.mxu1 %v10312_v53 }
 0x158   :  { %922 = vmatprep.subr.mxu0 %v10313_v0  ;;  %6640 = vmatprep.subr.mxu1 %v10311_v45 }
 0x159   :  { %923 = vmatpush1.msra.mxu0 %v10314_v1  ;;  %6641 = vmatpush3.msra.mxu1 %v10315_v46 }
 0x15a   :  { %924 = vmatprep.subr.mxu0 %v10316_v51  ;;  %6642 = vmatprep.subr.mxu1 %v10311_v45 }
 0x15b   :  { %925 = vmatpush1.msra.mxu0 %v10317_v52  ;;  %958 = vmatprep.mubr.f32.mxu0 %v10311_v45 }
 0x15c   :  { %6643 = vmatpush3.msra.mxu1 %v10318_v42  ;;  %6644 = vmatprep.mubr.msk.f32.mxu1 %vm7812_vm0, %v10311_v45  ;;  %v513_v42 = vadd.f32 %v512_v63, %v8138_v55 }
 0x15d   :  { %5958 = vmatprep.subr.msk.mxu0 %vm77_vm1, %v10319_v43  ;;  %6647 = vmatprep.subr.mxu1 %v10311_v45 }
 0x1f8   :  { %v651_v61 = vpop.f32.mrf.mxu0  ;;  %v722_v60 = vpop.f32.mrf.mxu1 }
 0x1f9   :  { %v726_v57 = vadd.f32 %v651_v61, %v511_v59  ;;  %v740_v49 = vadd.f32 %v722_v60, %v8142_v50  ;;  %v582_v59 = vadd.f32 %v8163_v54, %v8146_v3  ;;  %v10322_v60 = vld [vmem:[#allocation9_spill] sm:$0xff]  ;;  %v10323_v54 = vld [vmem:[#allocation10_spill] sm:$0xff]  ;;  %v10326_v61 = vld [vmem:[#allocation12_spill] sm:$0xff] }
 0x1fa   :  { %v6606_v52 = vpop.f32.mrf.mxu1  ;;  %v653_v46 = vpop.f32.mrf.mxu0 }
 0x1fb   :  { %v5947_v51 = vmul.f32 -1.442695, %v726_v57  ;;  %v733_v1 = vadd.f32 %v653_v46, %v513_v42  ;;  %v10324_v42 = vld [vmem:[#allocation16_spill] sm:$0xff] }
 0x1fd   :  { %7505 = vpow2.f32 %v5947_v51  ;;  %v5948_v0 = vmul.f32 -1.442695, %v733_v1 }
 0x1ff   :  { %7507 = vpow2.f32 %v5948_v0 }
 0x20a   :  { %v7506_v53 = vpop.eup %7505 }
 0x20b   :  { %v730_v43 = vadd.f32 1.0, %v7506_v53 }
 0x20c   :  { %v7508_v40 = vpop.eup %7507 }
 0x20d   :  { %7509 = vrcp.f32 %v730_v43  ;;  %v737_v39 = vadd.f32 1.0, %v7508_v40  ;;  %v10325_v43 = vld [vmem:[#allocation11_spill] sm:$0xff] }
 0x20f   :  { %7511 = vrcp.f32 %v737_v39  ;;  %v8257_v39 = vpop.f32.mrf.mxu1 }
 0x211   :  { %v6611_v40 = vpop.f32.mrf.mxu1 }
 0x21a   :  { %v7510_v58 = vpop.eup %7509 }
 0x21b   :  { %v741_v52 = vmul.f32 %v7510_v58, %v740_v49  ;;  %v5957_v49 = vld [vmem:[%s10181_s0 + $0x6] sm:$0x3]  ;;  %v10327_v58 = vld [vmem:[#allocation17_spill] sm:$0xff] }
 0x21c   :  { %v7512_v63 = vpop.eup %7511 }
 0x21d   :  { %v742_v57 = vadd.f32 %v741_v52, %v582_v59  ;;  %v744_v51 = vsub.f32 1.0, %v7512_v63  ;;  %v746_v0 = vmul.f32 %v7512_v63, %v8150_v62  ;;  %v10321_v62 = vld [vmem:[#allocation15_spill] sm:$0xff]  ;;  %v10328_v59 = vld [vmem:[#allocation13_spill] sm:$0xff]  ;;  %v10329_v52 = vld [vmem:[#allocation14_spill] sm:$0xff] }
 0x21e   :  { %v10331_v63 = vld [vmem:[#allocation8_spill] sm:$0xff] }
 0x21f   :  { %7513 = vtanh.f32 %v742_v57  ;;  %v10330_v57 = vld [vmem:[#allocation18_spill] sm:$0xff] }
 0x22c   :  { %v7514_v46 = vpop.eup %7513 }
 0x22d   :  { %v745_v1 = vmul.f32 %v7514_v46, %v744_v51  ;;  %v819_v51 = vpop.f32.mrf.mxu0 }
 0x22f   :  { %v8244_v53 = vadd.f32 %v746_v0, %v745_v1  ;;  %v821_v46 = vpop.f32.mrf.mxu0  ;;  %v820_v1 = vadd.f32 %v819_v51, %v10320_v56 }
 0x231   :  { %959 = vmatmul.mubr.f32.vlgmr.msra.gmra.mxu0 %v8244_v53  ;;  %6645 = vmatmul.mubr.f32.vlgmr.msra.gmra.mxu1 %v8244_v53 }
 0x232   :  { %5959 = vmatpush1.msk.msra.mxu0 %vm77_vm1, %v7862_v2  ;;  %1126 = vmatprep.mubr.f32.mxu0 %v10311_v45 }
 0x233   :  { %6648 = vmatpush3.msk.msra.mxu1 %vm77_vm1, %v7903_v15  ;;  %6649 = vmatprep.mubr.msk.f32.mxu1 %vm7812_vm0, %v10311_v45 }
 0x234   :  { %1203 = vmatprep.subr.mxu0 %v7869_v4  ;;  %6652 = vmatprep.subr.mxu1 %v10311_v45 }
 0x235   :  { %5960 = vmatmul.mubr.msk.f32.vlgmr.msra.gmra.mxu0 %vm73_vm2, %v5957_v49  ;;  %6650 = vmatmul.mubr.msk.f32.vlgmr.msra.gmra.mxu1 %vm73_vm2, %v5957_v49 }
 0x236   :  { %1204 = vmatpush1.msra.mxu0 %v7871_v5  ;;  %6653 = vmatpush3.msra.mxu1 %v7914_v18 }
 0x237   :  { %1205 = vmatprep.subr.mxu0 %v7875_v6  ;;  %6654 = vmatprep.subr.mxu1 %v10311_v45 }
 0x238   :  { %1206 = vmatpush1.msra.mxu0 %v7879_v7  ;;  %6655 = vmatpush3.msra.mxu1 %v7920_v20 }
 0x239   :  { %1207 = vmatprep.subr.mxu0 %v7882_v8  ;;  %6656 = vmatprep.subr.mxu1 %v10311_v45 }
 0x23a   :  { %1208 = vmatpush1.msra.mxu0 %v7886_v9  ;;  %6657 = vmatpush3.msra.mxu1 %v7930_v23 }
 0x23b   :  { %1209 = vmatprep.subr.mxu0 %v7889_v10  ;;  %6658 = vmatprep.subr.mxu1 %v10311_v45 }
 0x23c   :  { %1210 = vmatpush1.msra.mxu0 %v7892_v11  ;;  %6659 = vmatpush3.msra.mxu1 %v7940_v26 }
 0x23d   :  { %1211 = vmatprep.subr.mxu0 %v7895_v12  ;;  %6660 = vmatprep.subr.mxu1 %v10311_v45 }
 0x23e   :  { %1212 = vmatpush1.msra.mxu0 %v7898_v13  ;;  %6661 = vmatpush3.msra.mxu1 %v7950_v29 }
 0x23f   :  { %1213 = vmatprep.subr.mxu0 %v7901_v14  ;;  %6662 = vmatprep.subr.mxu1 %v10311_v45 }
 0x240   :  { %1214 = vmatpush1.msra.mxu0 %v7906_v16  ;;  %6663 = vmatpush3.msra.mxu1 %v7960_v32 }
 0x241   :  { %1215 = vmatprep.subr.mxu0 %v7911_v17  ;;  %6664 = vmatprep.subr.mxu1 %v10311_v45 }
 0x242   :  { %1216 = vmatpush1.msra.mxu0 %v7917_v19  ;;  %6665 = vmatpush3.msra.mxu1 %v7970_v35 }
 0x243   :  { %1217 = vmatprep.subr.mxu0 %v7923_v21  ;;  %6666 = vmatprep.subr.mxu1 %v10311_v45 }
 0x244   :  { %1218 = vmatpush1.msra.mxu0 %v7927_v22  ;;  %6667 = vmatpush3.msra.mxu1 %v7980_v38 }
 0x245   :  { %1219 = vmatprep.subr.mxu0 %v7933_v24  ;;  %6668 = vmatprep.subr.mxu1 %v10311_v45 }
 0x246   :  { %1220 = vmatpush1.msra.mxu0 %v7937_v25  ;;  %6669 = vmatpush3.msra.mxu1 %v7990_v41 }
 0x247   :  { %1221 = vmatprep.subr.mxu0 %v7943_v27  ;;  %6670 = vmatprep.subr.mxu1 %v10311_v45 }
 0x248   :  { %1222 = vmatpush1.msra.mxu0 %v7947_v28  ;;  %6671 = vmatpush3.msra.mxu1 %v8000_v44 }
 0x249   :  { %1223 = vmatprep.subr.mxu0 %v7953_v30  ;;  %6672 = vmatprep.subr.mxu1 %v10311_v45 }
 0x24a   :  { %1224 = vmatpush1.msra.mxu0 %v7957_v31  ;;  %6673 = vmatpush3.msra.mxu1 %v8010_v47 }
 0x24b   :  { %1225 = vmatprep.subr.mxu0 %v7963_v33  ;;  %6674 = vmatprep.subr.mxu1 %v10311_v45 }
 0x24c   :  { %1226 = vmatpush1.msra.mxu0 %v7967_v34  ;;  %6675 = vmatpush3.msra.mxu1 %v8016_v48 }
 0x24d   :  { %1227 = vmatprep.subr.mxu0 %v7973_v36  ;;  %6676 = vmatprep.subr.mxu1 %v10311_v45 }
 0x24e   :  { %1228 = vmatpush1.msra.mxu0 %v7977_v37  ;;  %6677 = vmatpush3.msra.mxu1 %v10321_v62 }
 0x24f   :  { %1229 = vmatprep.subr.mxu0 %v10322_v60  ;;  %6678 = vmatprep.subr.mxu1 %v10311_v45 }
 0x250   :  { %1230 = vmatpush1.msra.mxu0 %v10323_v54  ;;  %6679 = vmatpush3.msra.mxu1 %v10324_v42 }
 0x251   :  { %1231 = vmatprep.subr.mxu0 %v10325_v43  ;;  %6680 = vmatprep.subr.mxu1 %v10311_v45 }
 0x252   :  { %1232 = vmatpush1.msra.mxu0 %v10326_v61  ;;  %6681 = vmatpush3.msra.mxu1 %v10327_v58 }
 0x253   :  { %1233 = vmatprep.subr.mxu0 %v10328_v59  ;;  %6682 = vmatprep.subr.mxu1 %v10311_v45 }
 0x254   :  { %1234 = vmatpush1.msra.mxu0 %v10329_v52  ;;  %1267 = vmatprep.mubr.f32.mxu0 %v10311_v45 }
 0x255   :  { %6683 = vmatpush3.msra.mxu1 %v10330_v57  ;;  %6684 = vmatprep.mubr.msk.f32.mxu1 %vm7812_vm0, %v10311_v45  ;;  %v822_v57 = vadd.f32 %v821_v46, %v8138_v55 }
 0x256   :  { %5966 = vmatprep.subr.msk.mxu0 %vm77_vm1, %v10331_v63  ;;  %6687 = vmatprep.subr.mxu1 %v10311_v45 }
 0x2f1   :  { %v960_v0 = vpop.f32.mrf.mxu0  ;;  %v1031_v40 = vpop.f32.mrf.mxu1 }
 0x2f2   :  { %v1035_v49 = vadd.f32 %v960_v0, %v820_v1  ;;  %v1049_v62 = vadd.f32 %v1031_v40, %v8142_v50  ;;  %v891_v1 = vadd.f32 %v8257_v39, %v8146_v3  ;;  %v5973_v40 = vld [vmem:[%s10181_s0 + $0xa] sm:$0x3] }
 0x2f3   :  { %v6646_v52 = vpop.f32.mrf.mxu1  ;;  %v962_v58 = vpop.f32.mrf.mxu0 }
 0x2f4   :  { %v5955_v59 = vmul.f32 -1.442695, %v1035_v49  ;;  %v1042_v61 = vadd.f32 %v962_v58, %v822_v57  ;;  %v8460_v49 = vld [vmem:[#allocation2 + $0x200] sm:$0xff] }
 0x2f6   :  { %7515 = vpow2.f32 %v5955_v59  ;;  %v5956_v43 = vmul.f32 -1.442695, %v1042_v61 }
 0x2f8   :  { %7517 = vpow2.f32 %v5956_v43 }
 0x303   :  { %v7516_v42 = vpop.eup %7515 }
 0x304   :  { %v1039_v63 = vadd.f32 1.0, %v7516_v42 }
 0x305   :  { %v7518_v54 = vpop.eup %7517 }
 0x306   :  { %7519 = vrcp.f32 %v1039_v63  ;;  %v1046_v60 = vadd.f32 1.0, %v7518_v54  ;;  %v8463_v63 = vld [vmem:[#allocation2 + $0x210] sm:$0xff] }
 0x308   :  { %7521 = vrcp.f32 %v1046_v60  ;;  %v8449_v60 = vld [vmem:[#allocation2 + $0x208] sm:$0xff] }
 0x313   :  { %v7520_v51 = vpop.eup %7519 }
 0x314   :  { %v1050_v52 = vmul.f32 %v7520_v51, %v1049_v62  ;;  %v5965_v62 = vld [vmem:[%s10181_s0 + $0x8] sm:$0x3] }
 0x315   :  { %v7522_v46 = vpop.eup %7521  ;;  %v8466_v51 = vld [vmem:[#allocation2 + $0x1e8] sm:$0xff] }
 0x316   :  { %v1051_v0 = vadd.f32 %v1050_v52, %v891_v1  ;;  %v1053_v59 = vsub.f32 1.0, %v7522_v46  ;;  %v1055_v43 = vmul.f32 %v7522_v46, %v8244_v53  ;;  %v8351_v53 = vpop.f32.mrf.mxu1  ;;  %v8470_v1 = vld [vmem:[#allocation2 + $0x1e0] sm:$0xff]  ;;  %v8473_v52 = vld [vmem:[#allocation2 + $0x1f0] sm:$0xff] }
 0x317   :  { %v8480_v46 = vld [vmem:[#allocation2 + $0x1c0] sm:$0xff] }
 0x318   :  { %7523 = vtanh.f32 %v1051_v0  ;;  %v6651_v39 = vpop.f32.mrf.mxu1  ;;  %v8476_v0 = vld [vmem:[#allocation2 + $0x1c8] sm:$0xff] }
 0x319   :  { %v8503_v39 = vld [vmem:[#allocation2 + $0x190] sm:$0xff] }
 0x325   :  { %v7524_v58 = vpop.eup %7523 }
 0x326   :  { %v1054_v61 = vmul.f32 %v7524_v58, %v1053_v59  ;;  %v8483_v59 = vld [vmem:[#allocation2 + $0x1d0] sm:$0xff]  ;;  %v8486_v58 = vld [vmem:[#allocation2 + $0x1a8] sm:$0xff] }
 0x328   :  { %v8338_v42 = vadd.f32 %v1055_v43, %v1054_v61  ;;  %v8490_v61 = vld [vmem:[#allocation2 + $0x1a0] sm:$0xff]  ;;  %v8493_v43 = vld [vmem:[#allocation2 + $0x1b0] sm:$0xff] }
 0x32a   :  { %1268 = vmatmul.mubr.f32.vlgmr.msra.gmra.mxu0 %v8338_v42  ;;  %6685 = vmatmul.mubr.f32.vlgmr.msra.gmra.mxu1 %v8338_v42 }
 0x32b   :  { %5967 = vmatpush1.msk.msra.mxu0 %vm77_vm1, %v7862_v2  ;;  %1435 = vmatprep.mubr.f32.mxu0 %v10311_v45  ;;  %v10332_v2 = vld [vmem:[#allocation15_spill] sm:$0xff] }
 0x32c   :  { %6688 = vmatpush3.msk.msra.mxu1 %vm77_vm1, %v7903_v15  ;;  %6689 = vmatprep.mubr.msk.f32.mxu1 %vm7812_vm0, %v10311_v45 }
 0x32d   :  { %1512 = vmatprep.subr.mxu0 %v7869_v4  ;;  %6692 = vmatprep.subr.mxu1 %v10311_v45  ;;  %v10333_v4 = vld [vmem:[#allocation9_spill] sm:$0xff] }
 0x32e   :  { %5968 = vmatmul.mubr.msk.f32.vlgmr.msra.gmra.mxu0 %vm73_vm2, %v5965_v62  ;;  %6690 = vmatmul.mubr.msk.f32.vlgmr.msra.gmra.mxu1 %vm73_vm2, %v5965_v62  ;;  %v8506_v62 = vld [vmem:[#allocation2 + $0x168] sm:$0xff] }
 0x32f   :  { %1513 = vmatpush1.msra.mxu0 %v7871_v5  ;;  %6693 = vmatpush3.msra.mxu1 %v7914_v18  ;;  %v10334_v5 = vld [vmem:[#allocation10_spill] sm:$0xff] }
 0x330   :  { %1514 = vmatprep.subr.mxu0 %v7875_v6  ;;  %6694 = vmatprep.subr.mxu1 %v10311_v45  ;;  %v10335_v6 = vld [vmem:[#allocation16_spill] sm:$0xff] }
 0x331   :  { %1515 = vmatpush1.msra.mxu0 %v7879_v7  ;;  %6695 = vmatpush3.msra.mxu1 %v7920_v20  ;;  %v10336_v7 = vld [vmem:[#allocation11_spill] sm:$0xff] }
 0x332   :  { %1516 = vmatprep.subr.mxu0 %v7882_v8  ;;  %6696 = vmatprep.subr.mxu1 %v10311_v45  ;;  %v10337_v8 = vld [vmem:[#allocation12_spill] sm:$0xff] }
 0x333   :  { %1517 = vmatpush1.msra.mxu0 %v7886_v9  ;;  %6697 = vmatpush3.msra.mxu1 %v7930_v23  ;;  %v10338_v9 = vld [vmem:[#allocation17_spill] sm:$0xff] }
 0x334   :  { %1518 = vmatprep.subr.mxu0 %v7889_v10  ;;  %6698 = vmatprep.subr.mxu1 %v10311_v45  ;;  %v10339_v10 = vld [vmem:[#allocation13_spill] sm:$0xff] }
 0x335   :  { %1519 = vmatpush1.msra.mxu0 %v7892_v11  ;;  %6699 = vmatpush3.msra.mxu1 %v7940_v26  ;;  %v10340_v11 = vld [vmem:[#allocation14_spill] sm:$0xff] }
 0x336   :  { %1520 = vmatprep.subr.mxu0 %v7895_v12  ;;  %6700 = vmatprep.subr.mxu1 %v10311_v45  ;;  %v10341_v12 = vld [vmem:[#allocation18_spill] sm:$0xff] }
 0x337   :  { %1521 = vmatpush1.msra.mxu0 %v7898_v13  ;;  %6701 = vmatpush3.msra.mxu1 %v7950_v29  ;;  %v8423_v13 = vld [vmem:[#allocation2 + $0x8] sm:$0xf] }
 0x338   :  { %1522 = vmatprep.subr.mxu0 %v7901_v14  ;;  %6702 = vmatprep.subr.mxu1 %v10311_v45  ;;  %10342 = vst [vmem:[#allocation8_spill] sm:$0xff] %v8423_v13  ;;  %v1128_v14 = vpop.f32.mrf.mxu0 }
 0x339   :  { %1523 = vmatpush1.msra.mxu0 %v7906_v16  ;;  %6703 = vmatpush3.msra.mxu1 %v7960_v32  ;;  %v1129_v16 = vadd.f32 %v1128_v14, %v10320_v56  ;;  %v1200_v32 = vadd.f32 %v8351_v53, %v8146_v3  ;;  %v8500_v53 = vld [vmem:[#allocation2 + $0x180] sm:$0xff]  ;;  %v8543_v14 = vld [vmem:[#allocation2 + $0x110] sm:$0xff] }
 0x33a   :  { %1524 = vmatprep.subr.mxu0 %v7911_v17  ;;  %6704 = vmatprep.subr.mxu1 %v10311_v45  ;;  %v1130_v15 = vpop.f32.mrf.mxu0 }
 0x33b   :  { %1525 = vmatpush1.msra.mxu0 %v7917_v19  ;;  %6705 = vmatpush3.msra.mxu1 %v7970_v35  ;;  %v1131_v23 = vadd.f32 %v1130_v15, %v8138_v55  ;;  %v8546_v15 = vld [vmem:[#allocation2 + $0xe8] sm:$0xff] }
 0x33c   :  { %1526 = vmatprep.subr.mxu0 %v7923_v21  ;;  %6706 = vmatprep.subr.mxu1 %v10311_v45 }
 0x33d   :  { %1527 = vmatpush1.msra.mxu0 %v7927_v22  ;;  %6707 = vmatpush3.msra.mxu1 %v7980_v38 }
 0x33e   :  { %1528 = vmatprep.subr.mxu0 %v7933_v24  ;;  %6708 = vmatprep.subr.mxu1 %v10311_v45 }
 0x33f   :  { %1529 = vmatpush1.msra.mxu0 %v7937_v25  ;;  %6709 = vmatpush3.msra.mxu1 %v7990_v41 }
 0x340   :  { %1530 = vmatprep.subr.mxu0 %v7943_v27  ;;  %6710 = vmatprep.subr.mxu1 %v10311_v45 }
 0x341   :  { %1531 = vmatpush1.msra.mxu0 %v7947_v28  ;;  %6711 = vmatpush3.msra.mxu1 %v8000_v44 }
 0x342   :  { %1532 = vmatprep.subr.mxu0 %v7953_v30  ;;  %6712 = vmatprep.subr.mxu1 %v10311_v45 }
 0x343   :  { %1533 = vmatpush1.msra.mxu0 %v7957_v31  ;;  %6713 = vmatpush3.msra.mxu1 %v8010_v47  ;;  %v8438_v47 = vld [vmem:[#allocation2] sm:$0xf] }
 0x344   :  { %1534 = vmatprep.subr.mxu0 %v7963_v33  ;;  %6714 = vmatprep.subr.mxu1 %v10311_v45 }
 0x345   :  { %1535 = vmatpush1.msra.mxu0 %v7967_v34  ;;  %6715 = vmatpush3.msra.mxu1 %v8016_v48  ;;  %v8443_v48 = vld [vmem:[#allocation2 + $0x10] sm:$0xf] }
 0x346   :  { %1536 = vmatprep.subr.mxu0 %v7973_v36  ;;  %6716 = vmatprep.subr.mxu1 %v10311_v45 }
 0x347   :  { %1537 = vmatpush1.msra.mxu0 %v7977_v37  ;;  %6717 = vmatpush3.msra.mxu1 %v10332_v2  ;;  %v8510_v2 = vld [vmem:[#allocation2 + $0x160] sm:$0xff] }
 0x348   :  { %1538 = vmatprep.subr.mxu0 %v10333_v4  ;;  %6718 = vmatprep.subr.mxu1 %v10311_v45  ;;  %v8513_v4 = vld [vmem:[#allocation2 + $0x170] sm:$0xff] }
 0x349   :  { %1539 = vmatpush1.msra.mxu0 %v10334_v5  ;;  %6719 = vmatpush3.msra.mxu1 %v10335_v6  ;;  %v8516_v5 = vld [vmem:[#allocation2 + $0x148] sm:$0xff]  ;;  %v8520_v6 = vld [vmem:[#allocation2 + $0x140] sm:$0xff] }
 0x34a   :  { %1540 = vmatprep.subr.mxu0 %v10336_v7  ;;  %6720 = vmatprep.subr.mxu1 %v10311_v45  ;;  %v8523_v7 = vld [vmem:[#allocation2 + $0x150] sm:$0xff] }
 0x34b   :  { %1541 = vmatpush1.msra.mxu0 %v10337_v8  ;;  %6721 = vmatpush3.msra.mxu1 %v10338_v9  ;;  %v8526_v8 = vld [vmem:[#allocation2 + $0x128] sm:$0xff]  ;;  %v8530_v9 = vld [vmem:[#allocation2 + $0x120] sm:$0xff] }
 0x34c   :  { %1542 = vmatprep.subr.mxu0 %v10339_v10  ;;  %6722 = vmatprep.subr.mxu1 %v10311_v45  ;;  %v8533_v10 = vld [vmem:[#allocation2 + $0x130] sm:$0xff] }
 0x34d   :  { %1543 = vmatpush1.msra.mxu0 %v10340_v11  ;;  %1576 = vmatprep.mubr.f32.mxu0 %v10311_v45  ;;  %v8536_v11 = vld [vmem:[#allocation2 + $0x108] sm:$0xff] }
 0x34e   :  { %6723 = vmatpush3.msra.mxu1 %v10341_v12  ;;  %6724 = vmatprep.mubr.msk.f32.mxu1 %vm7812_vm0, %v10311_v45  ;;  %v8540_v12 = vld [vmem:[#allocation2 + $0x100] sm:$0xff] }
 0x34f   :  { %5974 = vmatprep.subr.msk.mxu0 %vm77_vm1, %v8423_v13  ;;  %6727 = vmatprep.subr.mxu1 %v10311_v45 }
 0x3ea   :  { %v1269_v17 = vpop.f32.mrf.mxu0  ;;  %v1340_v18 = vpop.f32.mrf.mxu1 }
 0x3eb   :  { %v1344_v19 = vadd.f32 %v1269_v17, %v1129_v16  ;;  %v1358_v30 = vadd.f32 %v1340_v18, %v8142_v50  ;;  %v8550_v16 = vld [vmem:[#allocation2 + $0xe0] sm:$0xff]  ;;  %v8553_v17 = vld [vmem:[#allocation2 + $0xf0] sm:$0xff]  ;;  %v8556_v18 = vld [vmem:[#allocation2 + $0xc8] sm:$0xff] }
 0x3ec   :  { %v6686_v20 = vpop.f32.mrf.mxu1  ;;  %v1271_v22 = vpop.f32.mrf.mxu0 }
 0x3ed   :  { %v5963_v21 = vmul.f32 -1.442695, %v1344_v19  ;;  %v1351_v24 = vadd.f32 %v1271_v22, %v1131_v23  ;;  %v8560_v19 = vld [vmem:[#allocation2 + $0xc0] sm:$0xff]  ;;  %v8563_v20 = vld [vmem:[#allocation2 + $0xd0] sm:$0xff] }
 0x3ee   :  { %v8453_v54 = vpop.f32.mrf.mxu1  ;;  %v8570_v22 = vld [vmem:[#allocation2 + $0xa0] sm:$0xff]  ;;  %v8573_v23 = vld [vmem:[#allocation2 + $0xb0] sm:$0xff] }
 0x3ef   :  { %7525 = vpow2.f32 %v5963_v21  ;;  %v5964_v25 = vmul.f32 -1.442695, %v1351_v24  ;;  %v8566_v21 = vld [vmem:[#allocation2 + $0xa8] sm:$0xff] }
 0x3f0   :  { %v6691_v57 = vpop.f32.mrf.mxu1  ;;  %v8576_v24 = vld [vmem:[#allocation2 + $0x88] sm:$0xff] }
 0x3f1   :  { %7527 = vpow2.f32 %v5964_v25  ;;  %v8580_v25 = vld [vmem:[#allocation2 + $0x80] sm:$0xff] }
 0x3fc   :  { %v7526_v26 = vpop.eup %7525 }
 0x3fd   :  { %v1348_v27 = vadd.f32 1.0, %v7526_v26  ;;  %v8583_v26 = vld [vmem:[#allocation2 + $0x90] sm:$0xff] }
 0x3fe   :  { %v7528_v28 = vpop.eup %7527  ;;  %10343 = vst [vmem:[#allocation15_spill] sm:$0xff] %v8583_v26 }
 0x3ff   :  { %7529 = vrcp.f32 %v1348_v27  ;;  %v1355_v29 = vadd.f32 1.0, %v7528_v28  ;;  %v8586_v27 = vld [vmem:[#allocation2 + $0x68] sm:$0xff]  ;;  %v8590_v28 = vld [vmem:[#allocation2 + $0x60] sm:$0xff] }
 0x400   :  { %10344 = vst [vmem:[#allocation9_spill] sm:$0xff] %v8586_v27  ;;  %10345 = vst [vmem:[#allocation10_spill] sm:$0xff] %v8590_v28 }
 0x401   :  { %7531 = vrcp.f32 %v1355_v29  ;;  %v8593_v29 = vld [vmem:[#allocation2 + $0x70] sm:$0xff] }
 0x402   :  { %10346 = vst [vmem:[#allocation16_spill] sm:$0xff] %v8593_v29 }
 0x40c   :  { %v7530_v31 = vpop.eup %7529 }
 0x40d   :  { %v1359_v33 = vmul.f32 %v7530_v31, %v1358_v30  ;;  %v8596_v30 = vld [vmem:[#allocation2 + $0x48] sm:$0xff]  ;;  %v8600_v31 = vld [vmem:[#allocation2 + $0x40] sm:$0xff] }
 0x40e   :  { %v7532_v35 = vpop.eup %7531  ;;  %10347 = vst [vmem:[#allocation11_spill] sm:$0xff] %v8596_v30  ;;  %10348 = vst [vmem:[#allocation12_spill] sm:$0xff] %v8600_v31 }
 0x40f   :  { %v1360_v34 = vadd.f32 %v1359_v33, %v1200_v32  ;;  %v1362_v36 = vsub.f32 1.0, %v7532_v35  ;;  %v1364_v41 = vmul.f32 %v7532_v35, %v8338_v42  ;;  %v8496_v42 = vld [vmem:[#allocation2 + $0x188] sm:$0xff]  ;;  %v8603_v32 = vld [vmem:[#allocation2 + $0x50] sm:$0xff] }
 0x410   :  { %10349 = vst [vmem:[#allocation17_spill] sm:$0xff] %v8603_v32  ;;  %v8606_v33 = vld [vmem:[#allocation2 + $0x28] sm:$0xff]  ;;  %v8614_v35 = vld [vmem:[#allocation2 + $0x30] sm:$0xff] }
 0x411   :  { %7533 = vtanh.f32 %v1360_v34  ;;  %10350 = vst [vmem:[#allocation13_spill] sm:$0xff] %v8606_v33  ;;  %v8610_v34 = vld [vmem:[#allocation2 + $0x20] sm:$0xff]  ;;  %10352 = vst [vmem:[#allocation18_spill] sm:$0xff] %v8614_v35 }
 0x412   :  { %10351 = vst [vmem:[#allocation14_spill] sm:$0xff] %v8610_v34 }
 0x41e   :  { %v7534_v37 = vpop.eup %7533 }
 0x41f   :  { %v1363_v38 = vmul.f32 %v7534_v37, %v1362_v36  ;;  %v1437_v36 = vpop.f32.mrf.mxu0 }
 0x421   :  { %v8434_v44 = vadd.f32 %v1364_v41, %v1363_v38  ;;  %v1439_v37 = vpop.f32.mrf.mxu0  ;;  %v1438_v38 = vadd.f32 %v1437_v36, %v10320_v56 }
 0x423   :  { %1577 = vmatmul.mubr.f32.vlgmr.msra.gmra.mxu0 %v8434_v44  ;;  %6725 = vmatmul.mubr.f32.vlgmr.msra.gmra.mxu1 %v8434_v44 }
 0x424   :  { %5975 = vmatpush1.msk.msra.mxu0 %vm77_vm1, %v8438_v47  ;;  %1744 = vmatprep.mubr.f32.mxu0 %v10311_v45 }
 0x425   :  { %6728 = vmatpush3.msk.msra.mxu1 %vm77_vm1, %v8443_v48  ;;  %6729 = vmatprep.mubr.msk.f32.mxu1 %vm7812_vm0, %v10311_v45 }
 0x426   :  { %1821 = vmatprep.subr.mxu0 %v8449_v60  ;;  %6732 = vmatprep.subr.mxu1 %v10311_v45 }
 0x427   :  { %5976 = vmatmul.mubr.msk.f32.vlgmr.msra.gmra.mxu0 %vm73_vm2, %v5973_v40  ;;  %6730 = vmatmul.mubr.msk.f32.vlgmr.msra.gmra.mxu1 %vm73_vm2, %v5973_v40 }
 0x428   :  { %1822 = vmatpush1.msra.mxu0 %v8460_v49  ;;  %6733 = vmatpush3.msra.mxu1 %v8463_v63 }
 0x429   :  { %1823 = vmatprep.subr.mxu0 %v8466_v51  ;;  %6734 = vmatprep.subr.mxu1 %v10311_v45 }
 0x42a   :  { %1824 = vmatpush1.msra.mxu0 %v8470_v1  ;;  %6735 = vmatpush3.msra.mxu1 %v8473_v52 }
 0x42b   :  { %1825 = vmatprep.subr.mxu0 %v8476_v0  ;;  %6736 = vmatprep.subr.mxu1 %v10311_v45 }
 0x42c   :  { %1826 = vmatpush1.msra.mxu0 %v8480_v46  ;;  %6737 = vmatpush3.msra.mxu1 %v8483_v59 }
 0x42d   :  { %1827 = vmatprep.subr.mxu0 %v8486_v58  ;;  %6738 = vmatprep.subr.mxu1 %v10311_v45 }
 0x42e   :  { %1828 = vmatpush1.msra.mxu0 %v8490_v61  ;;  %6739 = vmatpush3.msra.mxu1 %v8493_v43 }
 0x42f   :  { %1829 = vmatprep.subr.mxu0 %v8496_v42  ;;  %6740 = vmatprep.subr.mxu1 %v10311_v45 }
 0x430   :  { %1830 = vmatpush1.msra.mxu0 %v8500_v53  ;;  %6741 = vmatpush3.msra.mxu1 %v8503_v39 }
 0x431   :  { %1831 = vmatprep.subr.mxu0 %v8506_v62  ;;  %6742 = vmatprep.subr.mxu1 %v10311_v45 }
 0x432   :  { %1832 = vmatpush1.msra.mxu0 %v8510_v2  ;;  %6743 = vmatpush3.msra.mxu1 %v8513_v4 }
 0x433   :  { %1833 = vmatprep.subr.mxu0 %v8516_v5  ;;  %6744 = vmatprep.subr.mxu1 %v10311_v45 }
 0x434   :  { %1834 = vmatpush1.msra.mxu0 %v8520_v6  ;;  %6745 = vmatpush3.msra.mxu1 %v8523_v7 }
 0x435   :  { %1835 = vmatprep.subr.mxu0 %v8526_v8  ;;  %6746 = vmatprep.subr.mxu1 %v10311_v45 }
 0x436   :  { %1836 = vmatpush1.msra.mxu0 %v8530_v9  ;;  %6747 = vmatpush3.msra.mxu1 %v8533_v10 }
 0x437   :  { %1837 = vmatprep.subr.mxu0 %v8536_v11  ;;  %6748 = vmatprep.subr.mxu1 %v10311_v45 }
 0x438   :  { %1838 = vmatpush1.msra.mxu0 %v8540_v12  ;;  %6749 = vmatpush3.msra.mxu1 %v8543_v14 }
 0x439   :  { %1839 = vmatprep.subr.mxu0 %v8546_v15  ;;  %6750 = vmatprep.subr.mxu1 %v10311_v45 }
 0x43a   :  { %1840 = vmatpush1.msra.mxu0 %v8550_v16  ;;  %6751 = vmatpush3.msra.mxu1 %v8553_v17 }
 0x43b   :  { %1841 = vmatprep.subr.mxu0 %v8556_v18  ;;  %6752 = vmatprep.subr.mxu1 %v10311_v45 }
 0x43c   :  { %1842 = vmatpush1.msra.mxu0 %v8560_v19  ;;  %6753 = vmatpush3.msra.mxu1 %v8563_v20 }
 0x43d   :  { %1843 = vmatprep.subr.mxu0 %v8566_v21  ;;  %6754 = vmatprep.subr.mxu1 %v10311_v45 }
 0x43e   :  { %1844 = vmatpush1.msra.mxu0 %v8570_v22  ;;  %6755 = vmatpush3.msra.mxu1 %v8573_v23 }
 0x43f   :  { %1845 = vmatprep.subr.mxu0 %v8576_v24  ;;  %6756 = vmatprep.subr.mxu1 %v10311_v45 }
 0x440   :  { %1846 = vmatpush1.msra.mxu0 %v8580_v25  ;;  %6757 = vmatpush3.msra.mxu1 %v8583_v26 }
 0x441   :  { %1847 = vmatprep.subr.mxu0 %v8586_v27  ;;  %6758 = vmatprep.subr.mxu1 %v10311_v45 }
 0x442   :  { %1848 = vmatpush1.msra.mxu0 %v8590_v28  ;;  %6759 = vmatpush3.msra.mxu1 %v8593_v29 }
 0x443   :  { %1849 = vmatprep.subr.mxu0 %v8596_v30  ;;  %6760 = vmatprep.subr.mxu1 %v10311_v45 }
 0x444   :  { %1850 = vmatpush1.msra.mxu0 %v8600_v31  ;;  %6761 = vmatpush3.msra.mxu1 %v8603_v32 }
 0x445   :  { %1851 = vmatprep.subr.mxu0 %v8606_v33  ;;  %6762 = vmatprep.subr.mxu1 %v10311_v45 }
 0x446   :  { %1852 = vmatpush1.msra.mxu0 %v8610_v34  ;;  %1885 = vmatprep.mubr.f32.mxu0 %v10311_v45 }
 0x447   :  { %6763 = vmatpush3.msra.mxu1 %v8614_v35  ;;  %6764 = vmatprep.mubr.msk.f32.mxu1 %vm7812_vm0, %v10311_v45  ;;  %v1440_v35 = vadd.f32 %v1439_v37, %v8138_v55 }
 0x448   :  { %5982 = vmatprep.subr.msk.mxu0 %vm77_vm1, %v8423_v13  ;;  %6767 = vmatprep.subr.mxu1 %v10311_v45 }
 0x4e3   :  { %v1578_v41 = vpop.f32.mrf.mxu0  ;;  %v1649_v57 = vpop.f32.mrf.mxu1 }
 0x4e4   :  { %v1653_v40 = vadd.f32 %v1578_v41, %v1438_v38  ;;  %v1667_v26 = vadd.f32 %v1649_v57, %v8142_v50  ;;  %v1509_v38 = vadd.f32 %v8453_v54, %v8146_v3  ;;  %v10353_v54 = vld [vmem:[#allocation15_spill] sm:$0xff]  ;;  %v10358_v57 = vld [vmem:[#allocation12_spill] sm:$0xff] }
 0x4e5   :  { %v6726_v34 = vpop.f32.mrf.mxu1  ;;  %v1580_v32 = vpop.f32.mrf.mxu0 }
 0x4e6   :  { %v5971_v33 = vmul.f32 -1.442695, %v1653_v40  ;;  %v1660_v31 = vadd.f32 %v1580_v32, %v1440_v35  ;;  %v10357_v35 = vld [vmem:[#allocation11_spill] sm:$0xff]  ;;  %v10359_v40 = vld [vmem:[#allocation17_spill] sm:$0xff] }
 0x4e7   :  { %v8641_v50 = vpop.f32.mrf.mxu1 }
 0x4e8   :  { %7535 = vpow2.f32 %v5971_v33  ;;  %v5972_v30 = vmul.f32 -1.442695, %v1660_v31 }
 0x4ea   :  { %7537 = vpow2.f32 %v5972_v30 }
 0x4f5   :  { %v7536_v29 = vpop.eup %7535 }
 0x4f6   :  { %v1657_v13 = vadd.f32 1.0, %v7536_v29 }
 0x4f7   :  { %v7538_v28 = vpop.eup %7537 }
 0x4f8   :  { %7539 = vrcp.f32 %v1657_v13  ;;  %v1664_v27 = vadd.f32 1.0, %v7538_v28  ;;  %v6731_v13 = vpop.f32.mrf.mxu1  ;;  %v10356_v28 = vld [vmem:[#allocation16_spill] sm:$0xff] }
 0x4fa   :  { %7541 = vrcp.f32 %v1664_v27  ;;  %v10355_v27 = vld [vmem:[#allocation10_spill] sm:$0xff] }
 0x505   :  { %v7540_v36 = vpop.eup %7539 }
 0x506   :  { %v1668_v34 = vmul.f32 %v7540_v36, %v1667_v26  ;;  %v10354_v26 = vld [vmem:[#allocation9_spill] sm:$0xff] }
 0x507   :  { %v7542_v37 = vpop.eup %7541  ;;  %v10360_v36 = vld [vmem:[#allocation13_spill] sm:$0xff] }
 0x508   :  { %v1669_v41 = vadd.f32 %v1668_v34, %v1509_v38  ;;  %v1671_v33 = vsub.f32 1.0, %v7542_v37  ;;  %v1673_v30 = vmul.f32 %v7542_v37, %v8434_v44  ;;  %v5981_v44 = vld [vmem:[%s10181_s0 + $0xc] sm:$0x3]  ;;  %v10361_v38 = vld [vmem:[#allocation14_spill] sm:$0xff]  ;;  %v1746_v37 = vpop.f32.mrf.mxu0 }
 0x509   :  { %v10362_v34 = vld [vmem:[#allocation18_spill] sm:$0xff] }
 0x50a   :  { %7543 = vtanh.f32 %v1669_v41  ;;  %v10363_v41 = vld [vmem:[#allocation8_spill] sm:$0xff] }
 0x517   :  { %v7544_v32 = vpop.eup %7543 }
 0x518   :  { %v1672_v31 = vmul.f32 %v7544_v32, %v1671_v33  ;;  %v1748_v33 = vpop.f32.mrf.mxu0  ;;  %v1747_v32 = vadd.f32 %v1746_v37, %v10320_v56 }
 0x51a   :  { %v8628_v29 = vadd.f32 %v1673_v30, %v1672_v31 }
 0x51c   :  { %1886 = vmatmul.mubr.f32.vlgmr.msra.gmra.mxu0 %v8628_v29  ;;  %6765 = vmatmul.mubr.f32.vlgmr.msra.gmra.mxu1 %v8628_v29 }
 0x51d   :  { %5983 = vmatpush1.msk.msra.mxu0 %vm77_vm1, %v8438_v47  ;;  %2053 = vmatprep.mubr.f32.mxu0 %v10311_v45 }
 0x51e   :  { %6768 = vmatpush3.msk.msra.mxu1 %vm77_vm1, %v8443_v48  ;;  %6769 = vmatprep.mubr.msk.f32.mxu1 %vm7812_vm0, %v10311_v45 }
 0x51f   :  { %2130 = vmatprep.subr.mxu0 %v8449_v60  ;;  %6772 = vmatprep.subr.mxu1 %v10311_v45 }
 0x520   :  { %5984 = vmatmul.mubr.msk.f32.vlgmr.msra.gmra.mxu0 %vm73_vm2, %v5981_v44  ;;  %6770 = vmatmul.mubr.msk.f32.vlgmr.msra.gmra.mxu1 %vm73_vm2, %v5981_v44 }
 0x521   :  { %2131 = vmatpush1.msra.mxu0 %v8460_v49  ;;  %6773 = vmatpush3.msra.mxu1 %v8463_v63 }
 0x522   :  { %2132 = vmatprep.subr.mxu0 %v8466_v51  ;;  %6774 = vmatprep.subr.mxu1 %v10311_v45 }
 0x523   :  { %2133 = vmatpush1.msra.mxu0 %v8470_v1  ;;  %6775 = vmatpush3.msra.mxu1 %v8473_v52 }
 0x524   :  { %2134 = vmatprep.subr.mxu0 %v8476_v0  ;;  %6776 = vmatprep.subr.mxu1 %v10311_v45 }
 0x525   :  { %2135 = vmatpush1.msra.mxu0 %v8480_v46  ;;  %6777 = vmatpush3.msra.mxu1 %v8483_v59 }
 0x526   :  { %2136 = vmatprep.subr.mxu0 %v8486_v58  ;;  %6778 = vmatprep.subr.mxu1 %v10311_v45 }
 0x527   :  { %2137 = vmatpush1.msra.mxu0 %v8490_v61  ;;  %6779 = vmatpush3.msra.mxu1 %v8493_v43 }
 0x528   :  { %2138 = vmatprep.subr.mxu0 %v8496_v42  ;;  %6780 = vmatprep.subr.mxu1 %v10311_v45 }
 0x529   :  { %2139 = vmatpush1.msra.mxu0 %v8500_v53  ;;  %6781 = vmatpush3.msra.mxu1 %v8503_v39 }
 0x52a   :  { %2140 = vmatprep.subr.mxu0 %v8506_v62  ;;  %6782 = vmatprep.subr.mxu1 %v10311_v45 }
 0x52b   :  { %2141 = vmatpush1.msra.mxu0 %v8510_v2  ;;  %6783 = vmatpush3.msra.mxu1 %v8513_v4 }
 0x52c   :  { %2142 = vmatprep.subr.mxu0 %v8516_v5  ;;  %6784 = vmatprep.subr.mxu1 %v10311_v45 }
 0x52d   :  { %2143 = vmatpush1.msra.mxu0 %v8520_v6  ;;  %6785 = vmatpush3.msra.mxu1 %v8523_v7 }
 0x52e   :  { %2144 = vmatprep.subr.mxu0 %v8526_v8  ;;  %6786 = vmatprep.subr.mxu1 %v10311_v45 }
 0x52f   :  { %2145 = vmatpush1.msra.mxu0 %v8530_v9  ;;  %6787 = vmatpush3.msra.mxu1 %v8533_v10 }
 0x530   :  { %2146 = vmatprep.subr.mxu0 %v8536_v11  ;;  %6788 = vmatprep.subr.mxu1 %v10311_v45 }
 0x531   :  { %2147 = vmatpush1.msra.mxu0 %v8540_v12  ;;  %6789 = vmatpush3.msra.mxu1 %v8543_v14 }
 0x532   :  { %2148 = vmatprep.subr.mxu0 %v8546_v15  ;;  %6790 = vmatprep.subr.mxu1 %v10311_v45 }
 0x533   :  { %2149 = vmatpush1.msra.mxu0 %v8550_v16  ;;  %6791 = vmatpush3.msra.mxu1 %v8553_v17 }
 0x534   :  { %2150 = vmatprep.subr.mxu0 %v8556_v18  ;;  %6792 = vmatprep.subr.mxu1 %v10311_v45 }
 0x535   :  { %2151 = vmatpush1.msra.mxu0 %v8560_v19  ;;  %6793 = vmatpush3.msra.mxu1 %v8563_v20 }
 0x536   :  { %2152 = vmatprep.subr.mxu0 %v8566_v21  ;;  %6794 = vmatprep.subr.mxu1 %v10311_v45 }
 0x537   :  { %2153 = vmatpush1.msra.mxu0 %v8570_v22  ;;  %6795 = vmatpush3.msra.mxu1 %v8573_v23 }
 0x538   :  { %2154 = vmatprep.subr.mxu0 %v8576_v24  ;;  %6796 = vmatprep.subr.mxu1 %v10311_v45 }
 0x539   :  { %2155 = vmatpush1.msra.mxu0 %v8580_v25  ;;  %6797 = vmatpush3.msra.mxu1 %v10353_v54 }
 0x53a   :  { %2156 = vmatprep.subr.mxu0 %v10354_v26  ;;  %6798 = vmatprep.subr.mxu1 %v10311_v45  ;;  %v8718_v26 = vld [vmem:[#allocation2 + $0x221] ss:$0 sm:$0xff] }
 0x53b   :  { %2157 = vmatpush1.msra.mxu0 %v10355_v27  ;;  %6799 = vmatpush3.msra.mxu1 %v10356_v28 }
 0x53c   :  { %2158 = vmatprep.subr.mxu0 %v10357_v35  ;;  %6800 = vmatprep.subr.mxu1 %v10311_v45 }
 0x53d   :  { %2159 = vmatpush1.msra.mxu0 %v10358_v57  ;;  %6801 = vmatpush3.msra.mxu1 %v10359_v40 }
 0x53e   :  { %2160 = vmatprep.subr.mxu0 %v10360_v36  ;;  %6802 = vmatprep.subr.mxu1 %v10311_v45 }
 0x53f   :  { %2161 = vmatpush1.msra.mxu0 %v10361_v38  ;;  %2194 = vmatprep.mubr.f32.mxu0 %v10311_v45 }
 0x540   :  { %6803 = vmatpush3.msra.mxu1 %v10362_v34  ;;  %6804 = vmatprep.mubr.msk.f32.mxu1 %vm7812_vm0, %v10311_v45  ;;  %v1749_v34 = vadd.f32 %v1748_v33, %v8138_v55 }
 0x541   :  { %5990 = vmatprep.subr.msk.mxu0 %vm77_vm1, %v10363_v41  ;;  %6807 = vmatprep.subr.mxu1 %v10311_v45 }
 0x5dc   :  { %v1887_v31 = vpop.f32.mrf.mxu0  ;;  %v1958_v30 = vpop.f32.mrf.mxu1 }
 0x5dd   :  { %v1962_v13 = vadd.f32 %v1887_v31, %v1747_v32  ;;  %v1976_v37 = vadd.f32 %v8718_v26, %v1958_v30  ;;  %v1818_v32 = vadd.f32 %v8641_v50, %v8146_v3  ;;  %v5989_v50 = vld [vmem:[%s10181_s0 + $0xe] sm:$0x3]  ;;  %v2614_v30 = vld [vmem:[#allocation2 + $0x198] sm:$0xff] }
 0x5de   :  { %v6766_v44 = vpop.f32.mrf.mxu1  ;;  %v1889_v36 = vpop.f32.mrf.mxu0 }
 0x5df   :  { %v5979_v38 = vmul.f32 -1.442695, %v1962_v13  ;;  %v1969_v40 = vadd.f32 %v1889_v36, %v1749_v34  ;;  %v2613_v13 = vld [vmem:[#allocation2 + $0x178] sm:$0xff] }
 0x5e0   :  { %v2612_v44 = vld [vmem:[#allocation2 + $0x158] sm:$0xff] }
 0x5e1   :  { %7545 = vpow2.f32 %v5979_v38  ;;  %v5980_v57 = vmul.f32 -1.442695, %v1969_v40 }
 0x5e3   :  { %7547 = vpow2.f32 %v5980_v57 }
 0x5ee   :  { %v7546_v35 = vpop.eup %7545 }
 0x5ef   :  { %v1966_v41 = vadd.f32 1.0, %v7546_v35 }
 0x5f0   :  { %v7548_v28 = vpop.eup %7547 }
 0x5f1   :  { %7549 = vrcp.f32 %v1966_v41  ;;  %v1973_v27 = vadd.f32 1.0, %v7548_v28  ;;  %v2615_v28 = vld [vmem:[#allocation2 + $0x1b8] sm:$0xff] }
 0x5f2   :  { %v2611_v41 = vld [vmem:[#allocation2 + $0x138] sm:$0xff] }
 0x5f3   :  { %7551 = vrcp.f32 %v1973_v27  ;;  %v2616_v27 = vld [vmem:[#allocation2 + $0x1d8] sm:$0xff] }
 0x5fe   :  { %v7550_v56 = vpop.eup %7549 }
 0x5ff   :  { %v1977_v31 = vmul.f32 %v7550_v56, %v1976_v37  ;;  %v8737_v56 = vpop.f32.mrf.mxu1  ;;  %v2610_v37 = vld [vmem:[#allocation2 + $0x118] sm:$0xff] }
 0x600   :  { %v7552_v36 = vpop.eup %7551 }
 0x601   :  { %v1978_v33 = vadd.f32 %v1977_v31, %v1818_v32  ;;  %v1980_v40 = vsub.f32 1.0, %v7552_v36  ;;  %v1982_v35 = vmul.f32 %v7552_v36, %v8628_v29  ;;  %v6771_v29 = vpop.f32.mrf.mxu1  ;;  %v2609_v32 = vld [vmem:[#allocation2 + $0xf8] sm:$0xff] }
 0x602   :  { %v2608_v31 = vld [vmem:[#allocation2 + $0xd8] sm:$0xff] }
 0x603   :  { %7553 = vtanh.f32 %v1978_v33  ;;  %v2607_v33 = vld [vmem:[#allocation2 + $0xb8] sm:$0xff] }
 0x604   :  { %v2606_v36 = vld [vmem:[#allocation2 + $0x98] sm:$0xff] }
 0x610   :  { %v7554_v57 = vpop.eup %7553 }
 0x611   :  { %v1981_v38 = vmul.f32 %v7554_v57, %v1980_v40  ;;  %v2605_v40 = vld [vmem:[#allocation2 + $0x78] sm:$0xff] }
 0x612   :  { %v2604_v57 = vld [vmem:[#allocation2 + $0x58] sm:$0xff] }
 0x613   :  { %v8724_v34 = vadd.f32 %v1982_v35, %v1981_v38  ;;  %v2603_v38 = vld [vmem:[#allocation2 + $0x38] sm:$0xff]  ;;  %v2602_v35 = vld [vmem:[%s10183_s2] sm:$0x3] }
 0x614   :  { %2694 = vrot.lane.b32.xlu0 %v2602_v35, %s7813_s25  ;;  %v8941_v35 = vld [vmem:[#allocation4 + $0x148] sm:$0xff] }
 0x615   :  { %2195 = vmatmul.mubr.f32.vlgmr.msra.gmra.mxu0 %v8724_v34  ;;  %6805 = vmatmul.mubr.f32.vlgmr.msra.gmra.mxu1 %v8724_v34 }
 0x616   :  { %5991 = vmatpush1.msk.msra.mxu0 %vm77_vm1, %v8438_v47  ;;  %2362 = vmatprep.mubr.f32.mxu0 %v10311_v45  ;;  %v10364_v47 = vld [vmem:[#allocation9_spill] sm:$0xff] }
 0x617   :  { %6808 = vmatpush3.msk.msra.mxu1 %vm77_vm1, %v8443_v48  ;;  %6809 = vmatprep.mubr.msk.f32.mxu1 %vm7812_vm0, %v10311_v45  ;;  %v10365_v48 = vld [vmem:[#allocation10_spill] sm:$0xff] }
 0x618   :  { %2439 = vmatprep.subr.mxu0 %v8449_v60  ;;  %6812 = vmatprep.subr.mxu1 %v10311_v45  ;;  %v10366_v60 = vld [vmem:[#allocation16_spill] sm:$0xff] }
 0x619   :  { %5992 = vmatmul.mubr.msk.f32.vlgmr.msra.gmra.mxu0 %vm73_vm2, %v5989_v50  ;;  %6810 = vmatmul.mubr.msk.f32.vlgmr.msra.gmra.mxu1 %vm73_vm2, %v5989_v50 }
 0x61a   :  { %2440 = vmatpush1.msra.mxu0 %v8460_v49  ;;  %6813 = vmatpush3.msra.mxu1 %v8463_v63  ;;  %v10367_v49 = vld [vmem:[#allocation11_spill] sm:$0xff]  ;;  %v10368_v63 = vld [vmem:[#allocation12_spill] sm:$0xff] }
 0x61b   :  { %2441 = vmatprep.subr.mxu0 %v8466_v51  ;;  %6814 = vmatprep.subr.mxu1 %v10311_v45  ;;  %v10369_v51 = vld [vmem:[#allocation17_spill] sm:$0xff] }
 0x61c   :  { %2442 = vmatpush1.msra.mxu0 %v8470_v1  ;;  %6815 = vmatpush3.msra.mxu1 %v8473_v52  ;;  %v10370_v1 = vld [vmem:[#allocation13_spill] sm:$0xff]  ;;  %v10371_v52 = vld [vmem:[#allocation14_spill] sm:$0xff] }
 0x61d   :  { %2443 = vmatprep.subr.mxu0 %v8476_v0  ;;  %6816 = vmatprep.subr.mxu1 %v10311_v45  ;;  %v10372_v0 = vld [vmem:[#allocation18_spill] sm:$0xff] }
 0x61e   :  { %2444 = vmatpush1.msra.mxu0 %v8480_v46  ;;  %6817 = vmatpush3.msra.mxu1 %v8483_v59  ;;  %v2055_v46 = vpop.f32.mrf.mxu0 }
 0x61f   :  { %2445 = vmatprep.subr.mxu0 %v8486_v58  ;;  %6818 = vmatprep.subr.mxu1 %v10311_v45  ;;  %v10373_v58 = vld [vmem:[#allocation20_spill] sm:$0xff] }
 0x620   :  { %2446 = vmatpush1.msra.mxu0 %v8490_v61  ;;  %6819 = vmatpush3.msra.mxu1 %v8493_v43  ;;  %v2057_v59 = vpop.f32.mrf.mxu0  ;;  %v2056_v61 = vadd.f32 %v2055_v46, %v10373_v58 }
 0x621   :  { %2447 = vmatprep.subr.mxu0 %v8496_v42  ;;  %6820 = vmatprep.subr.mxu1 %v10311_v45 }
 0x622   :  { %2448 = vmatpush1.msra.mxu0 %v8500_v53  ;;  %6821 = vmatpush3.msra.mxu1 %v8503_v39 }
 0x623   :  { %2449 = vmatprep.subr.mxu0 %v8506_v62  ;;  %6822 = vmatprep.subr.mxu1 %v10311_v45 }
 0x624   :  { %2450 = vmatpush1.msra.mxu0 %v8510_v2  ;;  %6823 = vmatpush3.msra.mxu1 %v8513_v4  ;;  %v2058_v4 = vadd.f32 %v2057_v59, %v8138_v55 }
 0x625   :  { %2451 = vmatprep.subr.mxu0 %v8516_v5  ;;  %6824 = vmatprep.subr.mxu1 %v10311_v45 }
 0x626   :  { %2452 = vmatpush1.msra.mxu0 %v8520_v6  ;;  %6825 = vmatpush3.msra.mxu1 %v8523_v7 }
 0x627   :  { %2453 = vmatprep.subr.mxu0 %v8526_v8  ;;  %6826 = vmatprep.subr.mxu1 %v10311_v45 }
 0x628   :  { %2454 = vmatpush1.msra.mxu0 %v8530_v9  ;;  %6827 = vmatpush3.msra.mxu1 %v8533_v10 }
 0x629   :  { %2455 = vmatprep.subr.mxu0 %v8536_v11  ;;  %6828 = vmatprep.subr.mxu1 %v10311_v45 }
 0x62a   :  { %2456 = vmatpush1.msra.mxu0 %v8540_v12  ;;  %6829 = vmatpush3.msra.mxu1 %v8543_v14  ;;  %v2127_v14 = vadd.f32 %v8737_v56, %v8146_v3 }
 0x62b   :  { %2457 = vmatprep.subr.mxu0 %v8546_v15  ;;  %6830 = vmatprep.subr.mxu1 %v10311_v45 }
 0x62c   :  { %2458 = vmatpush1.msra.mxu0 %v8550_v16  ;;  %6831 = vmatpush3.msra.mxu1 %v8553_v17 }
 0x62d   :  { %2459 = vmatprep.subr.mxu0 %v8556_v18  ;;  %6832 = vmatprep.subr.mxu1 %v10311_v45 }
 0x62e   :  { %2460 = vmatpush1.msra.mxu0 %v8560_v19  ;;  %6833 = vmatpush3.msra.mxu1 %v8563_v20 }
 0x62f   :  { %2461 = vmatprep.subr.mxu0 %v8566_v21  ;;  %6834 = vmatprep.subr.mxu1 %v10311_v45 }
 0x630   :  { %2462 = vmatpush1.msra.mxu0 %v8570_v22  ;;  %6835 = vmatpush3.msra.mxu1 %v8573_v23 }
 0x631   :  { %2463 = vmatprep.subr.mxu0 %v8576_v24  ;;  %6836 = vmatprep.subr.mxu1 %v10311_v45 }
 0x632   :  { %2464 = vmatpush1.msra.mxu0 %v8580_v25  ;;  %6837 = vmatpush3.msra.mxu1 %v10353_v54  ;;  %v2618_v25 = vld [vmem:[#allocation2 + $0x218] sm:$0xff] }
 0x633   :  { %2465 = vmatprep.subr.mxu0 %v10364_v47  ;;  %6838 = vmatprep.subr.mxu1 %v10311_v45  ;;  %v2617_v54 = vld [vmem:[#allocation2 + $0x1f8] sm:$0xff] }
 0x634   :  { %2466 = vmatpush1.msra.mxu0 %v10365_v48  ;;  %6839 = vmatpush3.msra.mxu1 %v10366_v60 }
 0x635   :  { %2467 = vmatprep.subr.mxu0 %v10367_v49  ;;  %6840 = vmatprep.subr.mxu1 %v10311_v45 }
 0x636   :  { %2468 = vmatpush1.msra.mxu0 %v10368_v63  ;;  %6841 = vmatpush3.msra.mxu1 %v10369_v51 }
 0x637   :  { %2469 = vmatprep.subr.mxu0 %v10370_v1  ;;  %6842 = vmatprep.subr.mxu1 %v10311_v45 }
 0x638   :  { %2470 = vmatpush1.msra.mxu0 %v10371_v52  ;;  %2503 = vmatprep.mubr.f32.mxu0 %v10311_v45 }
 0x639   :  { %6843 = vmatpush3.msra.mxu1 %v10372_v0  ;;  %6844 = vmatprep.mubr.msk.f32.mxu1 %vm7812_vm0, %v10311_v45 }
 0x63a   :  { %6847 = vmatprep.subr.mxu0 %v10311_v45  ;;  %6882 = vmatprep.subr.mxu1 %v10311_v45 }
 0x6d5   :  { %v2196_v43 = vpop.f32.mrf.mxu0  ;;  %v2267_v42 = vpop.f32.mrf.mxu1 }
 0x6d6   :  { %v2271_v53 = vadd.f32 %v2196_v43, %v2056_v61  ;;  %v2285_v11 = vadd.f32 %v8718_v26, %v2267_v42 }
 0x6d7   :  { %v6806_v39 = vpop.f32.mrf.mxu1  ;;  %v2198_v2 = vpop.f32.mrf.mxu0 }
 0x6d8   :  { %v5987_v62 = vmul.f32 -1.442695, %v2271_v53  ;;  %v2278_v5 = vadd.f32 %v2198_v2, %v2058_v4 }
 0x6d9   :  { %v8825_v23 = vpop.f32.mrf.mxu1 }
 0x6da   :  { %7555 = vpow2.f32 %v5987_v62  ;;  %v5988_v6 = vmul.f32 -1.442695, %v2278_v5  ;;  %v2436_v42 = vadd.f32 %v8825_v23, %v8146_v3  ;;  %v8885_v23 = vld [vmem:[#allocation4 + $0x150] sm:$0xff] }
 0x6db   :  { %v6811_v24 = vpop.f32.mrf.mxu1 }
 0x6dc   :  { %7557 = vpow2.f32 %v5988_v6 }
 0x6e7   :  { %v7556_v7 = vpop.eup %7555 }
 0x6e8   :  { %v2275_v8 = vadd.f32 1.0, %v7556_v7  ;;  %v2619_v7 = vld [vmem:[#allocation2 + $0x222] ss:$0 sm:$0xff] }
 0x6e9   :  { %v7558_v9 = vpop.eup %7557 }
 0x6ea   :  { %7559 = vrcp.f32 %v2275_v8  ;;  %v2282_v10 = vadd.f32 1.0, %v7558_v9 }
 0x6ec   :  { %7561 = vrcp.f32 %v2282_v10 }
 0x6f7   :  { %v7560_v12 = vpop.eup %7559 }
 0x6f8   :  { %v2286_v15 = vmul.f32 %v7560_v12, %v2285_v11  ;;  %v8857_v11 = vld [vmem:[#allocation4 + $0x8] sm:$0xf] }
 0x6f9   :  { %v7562_v17 = vpop.eup %7561  ;;  %10374 = vst [vmem:[#allocation15_spill] sm:$0xff] %v8857_v11 }
 0x6fa   :  { %v2287_v16 = vadd.f32 %v2286_v15, %v2127_v14  ;;  %v2289_v18 = vsub.f32 1.0, %v7562_v17  ;;  %v2291_v21 = vmul.f32 %v7562_v17, %v8724_v34  ;;  %v2364_v34 = vpop.f32.mrf.mxu0  ;;  %v2695_v14 = vpop.permute.xlu0 %2694  ;;  %v8861_v17 = vld [vmem:[#allocation4 + $0x210] sm:$0xff] }
 0x6fb   :  { %v2365_v29 = vadd.f32 %v2364_v34, %v10373_v58  ;;  %v8944_v34 = vld [vmem:[#allocation4 + $0x140] sm:$0xff] }
 0x6fc   :  { %7563 = vtanh.f32 %v2287_v16  ;;  %v2366_v56 = vpop.f32.mrf.mxu0 }
 0x6fd   :  { %v2367_v51 = vadd.f32 %v2366_v56, %v8138_v55  ;;  %v8947_v56 = vld [vmem:[#allocation4 + $0x128] sm:$0xff] }
 0x709   :  { %v7564_v19 = vpop.eup %7563 }
 0x70a   :  { %v2290_v20 = vmul.f32 %v7564_v19, %v2289_v18  ;;  %v8865_v18 = vld [vmem:[#allocation4 + $0x1f0] sm:$0xff] }
 0x70b   :  { %v8869_v19 = vld [vmem:[#allocation4 + $0x1d0] sm:$0xff] }
 0x70c   :  { %v8817_v22 = vadd.f32 %v2291_v21, %v2290_v20  ;;  %v8873_v20 = vld [vmem:[#allocation4 + $0x1b0] sm:$0xff] }
 0x70d   :  { %v8877_v21 = vld [vmem:[#allocation4 + $0x190] sm:$0xff] }
 0x70e   :  { %2504 = vmatmul.mubr.f32.vlgmr.msra.gmra.mxu0 %v8817_v22  ;;  %6845 = vmatmul.mubr.f32.vlgmr.msra.gmra.mxu1 %v8817_v22 }
 0x70f   :  { %6879 = vmatprep.mubr.msk.f32.mxu0 %vm7812_vm0, %v10311_v45  ;;  %6884 = vmatprep.mubr.msk.f32.mxu1 %vm7812_vm0, %v10311_v45 }
 0x710   :  { %6848 = vmatpush3.msra.mxu0 %v2618_v25 }
 0x711   :  { %6849 = vmatprep.subr.mxu0 %v10311_v45 }
 0x712   :  { %6850 = vmatpush3.msra.mxu0 %v2617_v54  ;;  %v8889_v54 = vld [vmem:[#allocation4] sm:$0xf] }
 0x713   :  { %6851 = vmatprep.subr.mxu0 %v10311_v45 }
 0x714   :  { %6852 = vmatpush3.msra.mxu0 %v2616_v27  ;;  %v5998_v27 = vld [vmem:[%s10181_s0 + $0xe] sm:$0x3] }
 0x715   :  { %6853 = vmatprep.subr.mxu0 %v10311_v45 }
 0x716   :  { %6854 = vmatpush3.msra.mxu0 %v2615_v28  ;;  %v8898_v28 = vld [vmem:[#allocation4 + $0x10] sm:$0xf] }
 0x717   :  { %6855 = vmatprep.subr.mxu0 %v10311_v45 }
 0x718   :  { %6856 = vmatpush3.msra.mxu0 %v2614_v30  ;;  %v8900_v30 = vld [vmem:[#allocation4 + $0x208] sm:$0xff] }
 0x719   :  { %6857 = vmatprep.subr.mxu0 %v10311_v45 }
 0x71a   :  { %6858 = vmatpush3.msra.mxu0 %v2613_v13  ;;  %v8908_v13 = vld [vmem:[#allocation4 + $0x200] sm:$0xff] }
 0x71b   :  { %6859 = vmatprep.subr.mxu0 %v10311_v45 }
 0x71c   :  { %6860 = vmatpush3.msra.mxu0 %v2612_v44  ;;  %v8910_v44 = vld [vmem:[#allocation4 + $0x1e8] sm:$0xff] }
 0x71d   :  { %6861 = vmatprep.subr.mxu0 %v10311_v45 }
 0x71e   :  { %6862 = vmatpush3.msra.mxu0 %v2611_v41  ;;  %v8913_v41 = vld [vmem:[#allocation4 + $0x1e0] sm:$0xff] }
 0x71f   :  { %6863 = vmatprep.subr.mxu0 %v10311_v45 }
 0x720   :  { %6864 = vmatpush3.msra.mxu0 %v2610_v37  ;;  %v8916_v37 = vld [vmem:[#allocation4 + $0x1c8] sm:$0xff] }
 0x721   :  { %6865 = vmatprep.subr.mxu0 %v10311_v45 }
 0x722   :  { %6866 = vmatpush3.msra.mxu0 %v2609_v32  ;;  %v8920_v32 = vld [vmem:[#allocation4 + $0x1c0] sm:$0xff] }
 0x723   :  { %6867 = vmatprep.subr.mxu0 %v10311_v45 }
 0x724   :  { %6868 = vmatpush3.msra.mxu0 %v2608_v31  ;;  %v8923_v31 = vld [vmem:[#allocation4 + $0x1a8] sm:$0xff] }
 0x725   :  { %6869 = vmatprep.subr.mxu0 %v10311_v45 }
 0x726   :  { %6870 = vmatpush3.msra.mxu0 %v2607_v33  ;;  %v8926_v33 = vld [vmem:[#allocation4 + $0x1a0] sm:$0xff] }
 0x727   :  { %6871 = vmatprep.subr.mxu0 %v10311_v45 }
 0x728   :  { %6872 = vmatpush3.msra.mxu0 %v2606_v36  ;;  %v8929_v36 = vld [vmem:[#allocation4 + $0x188] sm:$0xff] }
 0x729   :  { %6873 = vmatprep.subr.mxu0 %v10311_v45 }
 0x72a   :  { %6874 = vmatpush3.msra.mxu0 %v2605_v40  ;;  %v8932_v40 = vld [vmem:[#allocation4 + $0x180] sm:$0xff] }
 0x72b   :  { %6875 = vmatprep.subr.mxu0 %v10311_v45 }
 0x72c   :  { %6876 = vmatpush3.msra.mxu0 %v2604_v57  ;;  %v8935_v57 = vld [vmem:[#allocation4 + $0x168] sm:$0xff] }
 0x72d   :  { %6877 = vmatprep.subr.mxu0 %v10311_v45 }
 0x72e   :  { %6878 = vmatpush3.msra.mxu0 %v2603_v38  ;;  %v8938_v38 = vld [vmem:[#allocation4 + $0x160] sm:$0xff] }
 0x72f   :  { %6892 = vmatprep.subr.mxu0 %v10311_v45 }
 0x7ce   :  { %v2505_v50 = vpop.f32.mrf.mxu0  ;;  %v2576_v47 = vpop.f32.mrf.mxu1 }
 0x7cf   :  { %v2580_v48 = vadd.f32 %v2505_v50, %v2365_v29  ;;  %v2594_v43 = vadd.f32 %v8718_v26, %v2576_v47  ;;  %v2703_v26 = vld [vmem:[#allocation2 + $0x18] sm:$0xff]  ;;  %v8952_v29 = vld [vmem:[#allocation4 + $0x120] sm:$0xff]  ;;  %v8954_v50 = vld [vmem:[#allocation4 + $0x130] sm:$0xff] }
 0x7d0   :  { %v6846_v60 = vpop.f32.mrf.mxu1  ;;  %v2507_v63 = vpop.f32.mrf.mxu0  ;;  %6883 = vmatpush3.msra.mxu1 %v2703_v26  ;;  %v8958_v47 = vld [vmem:[#allocation4 + $0x108] sm:$0xff]  ;;  %v9030_v26 = vld [vmem:[#allocation4 + $0x30] sm:$0xff] }
 0x7d1   :  { %v5995_v49 = vmul.f32 -1.442695, %v2580_v48  ;;  %v2587_v1 = vadd.f32 %v2507_v63, %v2367_v51  ;;  %5999 = vmatprep.subr.msk.mxu1 %vm77_vm1, %v8857_v11  ;;  %v8962_v48 = vld [vmem:[#allocation4 + $0x100] sm:$0xff]  ;;  %v8964_v60 = vld [vmem:[#allocation4 + $0x110] sm:$0xff]  ;;  %10387 = vst [vmem:[#allocation22_spill] sm:$0xff] %v9030_v26 }
 0x7d2   :  { %v8972_v63 = vld [vmem:[#allocation4 + $0xe0] sm:$0xff]  ;;  %v8974_v51 = vld [vmem:[#allocation4 + $0xf0] sm:$0xff] }
 0x7d3   :  { %7565 = vpow2.f32 %v5995_v49  ;;  %v5996_v52 = vmul.f32 -1.442695, %v2587_v1  ;;  %v8968_v49 = vld [vmem:[#allocation4 + $0xe8] sm:$0xff] }
 0x7d4   :  { %v8976_v1 = vld [vmem:[#allocation4 + $0xc8] sm:$0xff] }
 0x7d5   :  { %7567 = vpow2.f32 %v5996_v52  ;;  %v8980_v52 = vld [vmem:[#allocation4 + $0xc0] sm:$0xff] }
 0x7e0   :  { %v7566_v0 = vpop.eup %7565 }
 0x7e1   :  { %v2584_v46 = vadd.f32 1.0, %v7566_v0  ;;  %v8982_v0 = vld [vmem:[#allocation4 + $0xd0] sm:$0xff] }
 0x7e2   :  { %v7568_v59 = vpop.eup %7567 }
 0x7e3   :  { %7569 = vrcp.f32 %v2584_v46  ;;  %v2591_v61 = vadd.f32 1.0, %v7568_v59  ;;  %v8984_v46 = vld [vmem:[#allocation4 + $0xa8] sm:$0xff]  ;;  %v8988_v59 = vld [vmem:[#allocation4 + $0xa0] sm:$0xff] }
 0x7e4   :  { %10375 = vst [vmem:[#allocation8_spill] sm:$0xff] %v8988_v59 }
 0x7e5   :  { %7571 = vrcp.f32 %v2591_v61  ;;  %v8990_v61 = vld [vmem:[#allocation4 + $0xb0] sm:$0xff] }
 0x7f0   :  { %v7570_v58 = vpop.eup %7569 }
 0x7f1   :  { %v2595_v53 = vmul.f32 %v7570_v58, %v2594_v43  ;;  %v8994_v43 = vld [vmem:[#allocation4 + $0x88] sm:$0xff]  ;;  %v8998_v58 = vld [vmem:[#allocation4 + $0x80] sm:$0xff] }
 0x7f2   :  { %v7572_v55 = vpop.eup %7571  ;;  %10376 = vst [vmem:[#allocation9_spill] sm:$0xff] %v8994_v43  ;;  %10377 = vst [vmem:[#allocation10_spill] sm:$0xff] %v8998_v58 }
 0x7f3   :  { %v2596_v39 = vadd.f32 %v2595_v53, %v2436_v42  ;;  %v2598_v62 = vsub.f32 1.0, %v7572_v55  ;;  %v2600_v5 = vmul.f32 %v7572_v55, %v8817_v22  ;;  %v8881_v22 = vld [vmem:[#allocation4 + $0x170] sm:$0xff]  ;;  %v9004_v53 = vld [vmem:[#allocation4 + $0x68] sm:$0xff] }
 0x7f4   :  { %v9000_v42 = vld [vmem:[#allocation4 + $0x90] sm:$0xff]  ;;  %10379 = vst [vmem:[#allocation11_spill] sm:$0xff] %v9004_v53 }
 0x7f5   :  { %7573 = vtanh.f32 %v2596_v39  ;;  %10378 = vst [vmem:[#allocation16_spill] sm:$0xff] %v9000_v42  ;;  %v9008_v39 = vld [vmem:[#allocation4 + $0x60] sm:$0xff]  ;;  %v9010_v55 = vld [vmem:[#allocation4 + $0x70] sm:$0xff] }
 0x7f6   :  { %10380 = vst [vmem:[#allocation12_spill] sm:$0xff] %v9008_v39  ;;  %10381 = vst [vmem:[#allocation17_spill] sm:$0xff] %v9010_v55 }
 0x802   :  { %v7574_v2 = vpop.eup %7573 }
 0x803   :  { %v2599_v4 = vmul.f32 %v7574_v2, %v2598_v62  ;;  %v9014_v62 = vld [vmem:[#allocation4 + $0x48] sm:$0xff]  ;;  %v9018_v2 = vld [vmem:[#allocation4 + $0x40] sm:$0xff] }
 0x804   :  { %10382 = vst [vmem:[#allocation13_spill] sm:$0xff] %v9014_v62  ;;  %10383 = vst [vmem:[#allocation14_spill] sm:$0xff] %v9018_v2 }
 0x805   :  { %v2601_v6 = vadd.f32 %v2600_v5, %v2599_v4  ;;  %v9020_v4 = vld [vmem:[#allocation4 + $0x50] sm:$0xff]  ;;  %v9024_v5 = vld [vmem:[#allocation4 + $0x28] sm:$0xff] }
 0x806   :  { %10384 = vst [vmem:[#allocation18_spill] sm:$0xff] %v9020_v4  ;;  %10385 = vst [vmem:[#allocation20_spill] sm:$0xff] %v9024_v5 }
 0x807   :  { %6880 = vmatmul.mubr.f32.vlgmr.msra.gmra.mxu0 %v2601_v6  ;;  %v9028_v6 = vld [vmem:[#allocation4 + $0x20] sm:$0xff] }
 0x808   :  { %6924 = vmatprep.mubr.msk.f32.mxu0 %vm7812_vm0, %v10311_v45  ;;  %6893 = vmatpush3.msra.mxu0 %v8861_v17  ;;  %10386 = vst [vmem:[#allocation21_spill] sm:$0xff] %v9028_v6 }
 0x809   :  { %6894 = vmatprep.subr.mxu0 %v10311_v45 }
 0x80a   :  { %6895 = vmatpush3.msra.mxu0 %v8865_v18 }
 0x80b   :  { %6896 = vmatprep.subr.mxu0 %v10311_v45 }
 0x80c   :  { %6897 = vmatpush3.msra.mxu0 %v8869_v19 }
 0x80d   :  { %6898 = vmatprep.subr.mxu0 %v10311_v45 }
 0x80e   :  { %6899 = vmatpush3.msra.mxu0 %v8873_v20 }
 0x80f   :  { %6900 = vmatprep.subr.mxu0 %v10311_v45 }
 0x810   :  { %6901 = vmatpush3.msra.mxu0 %v8877_v21 }
 0x811   :  { %6902 = vmatprep.subr.mxu0 %v10311_v45 }
 0x812   :  { %6903 = vmatpush3.msra.mxu0 %v8881_v22 }
 0x813   :  { %6904 = vmatprep.subr.mxu0 %v10311_v45 }
 0x814   :  { %6905 = vmatpush3.msra.mxu0 %v8885_v23 }
 0x815   :  { %6906 = vmatprep.subr.mxu0 %v10311_v45 }
 0x816   :  { %6907 = vmatpush3.msra.mxu0 %v8954_v50 }
 0x817   :  { %6908 = vmatprep.subr.mxu0 %v10311_v45 }
 0x818   :  { %6909 = vmatpush3.msra.mxu0 %v8964_v60 }
 0x819   :  { %6910 = vmatprep.subr.mxu0 %v10311_v45 }
 0x81a   :  { %6911 = vmatpush3.msra.mxu0 %v8974_v51 }
 0x81b   :  { %6912 = vmatprep.subr.mxu0 %v10311_v45 }
 0x81c   :  { %6913 = vmatpush3.msra.mxu0 %v8982_v0 }
 0x81d   :  { %6914 = vmatprep.subr.mxu0 %v10311_v45 }
 0x81e   :  { %6915 = vmatpush3.msra.mxu0 %v8990_v61 }
 0x81f   :  { %6916 = vmatprep.subr.mxu0 %v10311_v45 }
 0x820   :  { %6917 = vmatpush3.msra.mxu0 %v9000_v42 }
 0x821   :  { %6918 = vmatprep.subr.mxu0 %v10311_v45 }
 0x822   :  { %6919 = vmatpush3.msra.mxu0 %v9010_v55 }
 0x823   :  { %6920 = vmatprep.subr.mxu0 %v10311_v45 }
 0x824   :  { %6921 = vmatpush3.msra.mxu0 %v9020_v4 }
 0x825   :  { %6922 = vmatprep.subr.mxu0 %v10311_v45 }
 0x826   :  { %6923 = vmatpush3.msra.mxu0 %v9030_v26 }
 0x827   :  { %6932 = vmatprep.subr.mxu0 %v10311_v45 }
 0x8c7   :  { %v2686_v8 = vpop.f32.mrf.mxu0 }
 0x8c8   :  { %v2687_v3 = vadd.f32 %v2686_v8, %v2619_v7  ;;  %v2704_v7 = vld [vmem:[#allocation2 + $0x223] ss:$0 sm:$0xff] }
 0x8c9   :  { %v6881_v9 = vpop.f32.mrf.mxu0 }
 0x8ca   :  { %v2690_v10 = vmul.f32 1.442695, %v2687_v3  ;;  %2781 = vst.msk [vmem:[%s10186_s5] sm:$0x3] %vm2780_vm3, %v2687_v3 }
 0x8cc   :  { %7575 = vpow2.f32 %v2690_v10 }
 0x8d9   :  { %v7576_v12 = vpop.eup %7575 }
 0x8da   :  { %v2692_v15 = vmul.f32 0.5, %v7576_v12 }
 0x8dc   :  { %v2697_v16 = vmul.f32 %v2695_v14, %v2692_v15 }
 0x8de   :  { %2699 = vrot.lane.b32.xlu0 %v2697_v16, %s7814_s27 }
 0x950   :  { %v2700_v24 = vpop.permute.xlu0 %2699 }
 0x951   :  { %v2702_v25 = vadd.f32 %v2700_v24, %v2687_v3  ;;  %v3169_v24 = vld [vmem:[%s10182_s1] sm:$0x3] }
 0x953   :  { %6885 = vmatmul.mubr.msk.f32.vlgmr.msra.gmra.mxu1 %vm2705_vm4, %v2702_v25  ;;  %v2786_v25 = vld [vmem:[#allocation4 + $0x220] ss:$8 sm:$0x7] }
 0x954   :  { %6000 = vmatpush1.msk.msra.mxu1 %vm77_vm1, %v8889_v54  ;;  %2881 = vmatprep.mubr.f32.mxu1 %v10311_v45 }
 0x955   :  { %6887 = vmatprep.subr.mxu1 %v10311_v45 }
 0x957   :  { %6001 = vmatmul.mubr.msk.f32.vlgmr.msra.gmra.mxu1 %vm73_vm2, %v5998_v27 }
 0x958   :  { %6888 = vmatpush3.msk.msra.mxu1 %vm77_vm1, %v8898_v28  ;;  %6889 = vmatprep.mubr.msk.f32.mxu1 %vm7812_vm0, %v10311_v45 }
 0x959   :  { %3006 = vmatprep.subr.mxu1 %v8900_v30 }
 0x95b   :  { %6890 = vmatmul.mubr.msk.f32.vlgmr.msra.gmra.mxu1 %vm73_vm2, %v5998_v27  ;;  %v10388_v27 = vld [vmem:[#allocation19_spill] sm:$0xff] }
 0x95c   :  { %3007 = vmatpush1.msra.mxu1 %v8908_v13  ;;  %3070 = vmatprep.mubr.f32.mxu1 %v10311_v45 }
 0x95d   :  { %3008 = vmatprep.subr.mxu1 %v8910_v44 }
 0x95e   :  { %3009 = vmatpush1.msra.mxu1 %v8913_v41 }
 0x95f   :  { %3010 = vmatprep.subr.mxu1 %v8916_v37 }
 0x960   :  { %3011 = vmatpush1.msra.mxu1 %v8920_v32 }
 0x961   :  { %3012 = vmatprep.subr.mxu1 %v8923_v31 }
 0x962   :  { %3013 = vmatpush1.msra.mxu1 %v8926_v33 }
 0x963   :  { %3014 = vmatprep.subr.mxu1 %v8929_v36 }
 0x964   :  { %3015 = vmatpush1.msra.mxu1 %v8932_v40 }
 0x965   :  { %3016 = vmatprep.subr.mxu1 %v8935_v57 }
 0x966   :  { %3017 = vmatpush1.msra.mxu1 %v8938_v38 }
 0x967   :  { %3018 = vmatprep.subr.mxu1 %v8941_v35 }
 0x968   :  { %3019 = vmatpush1.msra.mxu1 %v8944_v34 }
 0x969   :  { %3020 = vmatprep.subr.mxu1 %v8947_v56 }
 0x96a   :  { %3021 = vmatpush1.msra.mxu1 %v8952_v29 }
 0x96b   :  { %3022 = vmatprep.subr.mxu1 %v8958_v47 }
 0x96c   :  { %3023 = vmatpush1.msra.mxu1 %v8962_v48 }
 0x96d   :  { %3024 = vmatprep.subr.mxu1 %v8968_v49 }
 0x96e   :  { %3025 = vmatpush1.msra.mxu1 %v8972_v63 }
 0x96f   :  { %3026 = vmatprep.subr.mxu1 %v8976_v1 }
 0x970   :  { %3027 = vmatpush1.msra.mxu1 %v8980_v52 }
 0x971   :  { %3028 = vmatprep.subr.mxu1 %v8984_v46 }
 0x972   :  { %3029 = vmatpush1.msra.mxu1 %v8988_v59 }
 0x973   :  { %3030 = vmatprep.subr.mxu1 %v8994_v43 }
 0x974   :  { %3031 = vmatpush1.msra.mxu1 %v8998_v58 }
 0x975   :  { %3032 = vmatprep.subr.mxu1 %v9004_v53 }
 0x976   :  { %3033 = vmatpush1.msra.mxu1 %v9008_v39 }
 0x977   :  { %3034 = vmatprep.subr.mxu1 %v9014_v62 }
 0x978   :  { %3035 = vmatpush1.msra.mxu1 %v9018_v2 }
 0x979   :  { %3036 = vmatprep.subr.mxu1 %v9024_v5 }
 0x97a   :  { %3037 = vmatpush1.msra.mxu1 %v9028_v6 }
 0x97b   :  { %6006 = vmatprep.subr.msk.mxu1 %vm77_vm1, %v8857_v11 }
 0xa13   :  { %v2775_v8 = vpop.f32.mrf.mxu1 }
 0xa14   :  { %v2776_v3 = vadd.f32 %v2775_v8, %v2704_v7  ;;  %v10389_v7 = vsub.s32 0, %v10388_v27 }
 0xa15   :  { %v6886_v9 = vpop.f32.mrf.mxu1 }
 0xa16   :  { %7577 = vtanh.f32 %v2776_v3  ;;  %v9135_v8 = vrot.slane %v2786_v25, %v10389_v7 }
 0xa17   :  { %v9041_v10 = vpop.f32.mrf.mxu1 }
 0xa18   :  { %10390 = vst [vmem:[#allocation19_spill] sm:$0xff] %v9135_v8  ;;  %v2884_v3 = vadd.f32 %v9041_v10, %v9135_v8  ;;  %v9145_v8 = vld [vmem:[#allocation4 + $0x221] ss:$0 sm:$0xff] }
 0xa19   :  { %v9043_v12 = vpop.f32.mrf.mxu1 }
 0xa1b   :  { %v9045_v14 = vpop.f32.mrf.mxu1 }
 0xa1d   :  { %v6891_v15 = vpop.f32.mrf.mxu1 }
 0xa23   :  { %v9047_v16 = vpop.eup %7577 }
 0xa24   :  { %3071 = vmatmul.mubr.f32.vlgmr.msra.gmra.mxu1 %v9047_v16  ;;  %6925 = vmatmul.mubr.f32.vlgmr.msra.gmra.mxu0 %v9047_v16 }
 0xa25   :  { %6007 = vmatpush1.msk.msra.mxu1 %vm77_vm1, %v8889_v54  ;;  %3237 = vmatprep.mubr.f32.mxu1 %v10311_v45 }
 0xa26   :  { %6927 = vmatprep.subr.mxu1 %v10311_v45  ;;  %6933 = vmatpush3.msra.mxu0 %v8861_v17 }
 0xa27   :  { %6934 = vmatprep.subr.mxu0 %v10311_v45  ;;  %6964 = vmatprep.mubr.msk.f32.mxu0 %vm7812_vm0, %v10311_v45 }
 0xa28   :  { %6935 = vmatpush3.msra.mxu0 %v8865_v18  ;;  %6008 = vmatmul.mubr.msk.f32.vlgmr.msra.gmra.mxu1 %vm73_vm2, %v3169_v24 }
 0xa29   :  { %6936 = vmatprep.subr.mxu0 %v10311_v45  ;;  %6928 = vmatpush3.msk.msra.mxu1 %vm77_vm1, %v8898_v28 }
 0xa2a   :  { %6937 = vmatpush3.msra.mxu0 %v8869_v19  ;;  %6929 = vmatprep.mubr.msk.f32.mxu1 %vm7812_vm0, %v10311_v45 }
 0xa2b   :  { %6938 = vmatprep.subr.mxu0 %v10311_v45  ;;  %3314 = vmatprep.subr.mxu1 %v8900_v30 }
 0xa2c   :  { %6939 = vmatpush3.msra.mxu0 %v8873_v20  ;;  %6930 = vmatmul.mubr.msk.f32.vlgmr.msra.gmra.mxu1 %vm73_vm2, %v3169_v24  ;;  %v10391_v24 = vsub.s32 1, %v10388_v27 }
 0xa2d   :  { %6940 = vmatprep.subr.mxu0 %v10311_v45  ;;  %3315 = vmatpush1.msra.mxu1 %v8908_v13 }
 0xa2e   :  { %6941 = vmatpush3.msra.mxu0 %v8877_v21  ;;  %3378 = vmatprep.mubr.f32.mxu1 %v10311_v45 }
 0xa2f   :  { %6942 = vmatprep.subr.mxu0 %v10311_v45  ;;  %3316 = vmatprep.subr.mxu1 %v8910_v44 }
 0xa30   :  { %6943 = vmatpush3.msra.mxu0 %v8881_v22  ;;  %3317 = vmatpush1.msra.mxu1 %v8913_v41 }
 0xa31   :  { %6944 = vmatprep.subr.mxu0 %v10311_v45  ;;  %3318 = vmatprep.subr.mxu1 %v8916_v37 }
 0xa32   :  { %6945 = vmatpush3.msra.mxu0 %v8885_v23  ;;  %3319 = vmatpush1.msra.mxu1 %v8920_v32 }
 0xa33   :  { %6946 = vmatprep.subr.mxu0 %v10311_v45  ;;  %3320 = vmatprep.subr.mxu1 %v8923_v31 }
 0xa34   :  { %6947 = vmatpush3.msra.mxu0 %v8954_v50  ;;  %3321 = vmatpush1.msra.mxu1 %v8926_v33 }
 0xa35   :  { %6948 = vmatprep.subr.mxu0 %v10311_v45  ;;  %3322 = vmatprep.subr.mxu1 %v8929_v36 }
 0xa36   :  { %6949 = vmatpush3.msra.mxu0 %v8964_v60  ;;  %3323 = vmatpush1.msra.mxu1 %v8932_v40 }
 0xa37   :  { %6950 = vmatprep.subr.mxu0 %v10311_v45  ;;  %3324 = vmatprep.subr.mxu1 %v8935_v57 }
 0xa38   :  { %6951 = vmatpush3.msra.mxu0 %v8974_v51  ;;  %3325 = vmatpush1.msra.mxu1 %v8938_v38 }
 0xa39   :  { %6952 = vmatprep.subr.mxu0 %v10311_v45  ;;  %3326 = vmatprep.subr.mxu1 %v8941_v35 }
 0xa3a   :  { %6953 = vmatpush3.msra.mxu0 %v8982_v0  ;;  %3327 = vmatpush1.msra.mxu1 %v8944_v34 }
 0xa3b   :  { %6954 = vmatprep.subr.mxu0 %v10311_v45  ;;  %3328 = vmatprep.subr.mxu1 %v8947_v56 }
 0xa3c   :  { %6955 = vmatpush3.msra.mxu0 %v8990_v61  ;;  %3329 = vmatpush1.msra.mxu1 %v8952_v29 }
 0xa3d   :  { %6956 = vmatprep.subr.mxu0 %v10311_v45  ;;  %3330 = vmatprep.subr.mxu1 %v8958_v47 }
 0xa3e   :  { %6957 = vmatpush3.msra.mxu0 %v9000_v42  ;;  %3331 = vmatpush1.msra.mxu1 %v8962_v48 }
 0xa3f   :  { %6958 = vmatprep.subr.mxu0 %v10311_v45  ;;  %3332 = vmatprep.subr.mxu1 %v8968_v49 }
 0xa40   :  { %6959 = vmatpush3.msra.mxu0 %v9010_v55  ;;  %3333 = vmatpush1.msra.mxu1 %v8972_v63 }
 0xa41   :  { %6960 = vmatprep.subr.mxu0 %v10311_v45  ;;  %3334 = vmatprep.subr.mxu1 %v8976_v1 }
 0xa42   :  { %6961 = vmatpush3.msra.mxu0 %v9020_v4  ;;  %3335 = vmatpush1.msra.mxu1 %v8980_v52 }
 0xa43   :  { %6962 = vmatprep.subr.mxu0 %v10311_v45  ;;  %3336 = vmatprep.subr.mxu1 %v8984_v46 }
 0xa44   :  { %6963 = vmatpush3.msra.mxu0 %v9030_v26  ;;  %3337 = vmatpush1.msra.mxu1 %v8988_v59 }
 0xa45   :  { %6972 = vmatprep.subr.mxu0 %v10311_v45  ;;  %3338 = vmatprep.subr.mxu1 %v8994_v43 }
 0xa46   :  { %3339 = vmatpush1.msra.mxu1 %v8998_v58 }
 0xa47   :  { %3340 = vmatprep.subr.mxu1 %v9004_v53 }
 0xa48   :  { %3341 = vmatpush1.msra.mxu1 %v9008_v39 }
 0xa49   :  { %3342 = vmatprep.subr.mxu1 %v9014_v62 }
 0xa4a   :  { %3343 = vmatpush1.msra.mxu1 %v9018_v2  ;;  %v9141_v2 = vrot.slane %v2786_v25, %v10391_v24  ;;  %v10392_v24 = vsub.s32 2, %v10388_v27 }
 0xa4b   :  { %3344 = vmatprep.subr.mxu1 %v9024_v5 }
 0xa4c   :  { %3345 = vmatpush1.msra.mxu1 %v9028_v6  ;;  %v9149_v59 = vrot.slane %v2786_v25, %v10392_v24  ;;  %v10395_v24 = vld [vmem:[#allocation9_spill] sm:$0xff] }
 0xa4d   :  { %6014 = vmatprep.subr.msk.mxu1 %vm77_vm1, %v8857_v11  ;;  %v2886_v11 = vadd.f32 %v9043_v12, %v9141_v2 }
 0xae4   :  { %v3072_v9 = vpop.f32.mrf.mxu1  ;;  %v3143_v15 = vpop.f32.mrf.mxu0 }
 0xae5   :  { %v3147_v5 = vadd.f32 %v3072_v9, %v2884_v3 }
 0xae6   :  { %v6926_v62 = vpop.f32.mrf.mxu0  ;;  %v3074_v39 = vpop.f32.mrf.mxu1 }
 0xae7   :  { %v6004_v6 = vmul.f32 -1.442695, %v3147_v5  ;;  %v3154_v53 = vadd.f32 %v3074_v39, %v2886_v11  ;;  %v3161_v5 = vadd.f32 %v3143_v15, %v9145_v8 }
 0xae9   :  { %7579 = vpow2.f32 %v6004_v6  ;;  %v6005_v7 = vmul.f32 -1.442695, %v3154_v53  ;;  %v2955_v6 = vadd.f32 %v9045_v14, %v9149_v59  ;;  %v3239_v14 = vpop.f32.mrf.mxu1 }
 0xaeb   :  { %7581 = vpow2.f32 %v6005_v7  ;;  %v6013_v7 = vld [vmem:[%s10182_s1 + $0x2] sm:$0x3] }
 0xaf6   :  { %v7580_v58 = vpop.eup %7579 }
 0xaf7   :  { %v3151_v43 = vadd.f32 1.0, %v7580_v58 }
 0xaf8   :  { %v7582_v10 = vpop.eup %7581 }
 0xaf9   :  { %7583 = vrcp.f32 %v3151_v43  ;;  %v3158_v62 = vadd.f32 1.0, %v7582_v10  ;;  %v10394_v10 = vld [vmem:[#allocation8_spill] sm:$0xff] }
 0xafb   :  { %7585 = vrcp.f32 %v3158_v62  ;;  %v10396_v62 = vld [vmem:[#allocation10_spill] sm:$0xff] }
 0xb06   :  { %v7584_v3 = vpop.eup %7583 }
 0xb07   :  { %v3162_v11 = vmul.f32 %v7584_v3, %v3161_v5  ;;  %v10397_v5 = vld [vmem:[#allocation11_spill] sm:$0xff]  ;;  %v10398_v3 = vld [vmem:[#allocation12_spill] sm:$0xff] }
 0xb08   :  { %v7586_v58 = vpop.eup %7585 }
 0xb09   :  { %v3163_v53 = vadd.f32 %v3162_v11, %v2955_v6  ;;  %v3165_v43 = vsub.f32 1.0, %v7586_v58  ;;  %v3167_v9 = vmul.f32 %v7586_v58, %v9047_v16  ;;  %v3241_v16 = vpop.f32.mrf.mxu1  ;;  %v10399_v6 = vld [vmem:[#allocation13_spill] sm:$0xff]  ;;  %v10400_v11 = vld [vmem:[#allocation14_spill] sm:$0xff] }
 0xb0a   :  { %v10402_v58 = vld [vmem:[#allocation21_spill] sm:$0xff] }
 0xb0b   :  { %7587 = vtanh.f32 %v3163_v53  ;;  %v9194_v25 = vpop.f32.mrf.mxu1  ;;  %v10401_v53 = vld [vmem:[#allocation20_spill] sm:$0xff] }
 0xb0d   :  { %v6931_v15 = vpop.f32.mrf.mxu1 }
 0xb18   :  { %v7588_v39 = vpop.eup %7587 }
 0xb19   :  { %v3166_v12 = vmul.f32 %v7588_v39, %v3165_v43  ;;  %v10403_v43 = vld [vmem:[#allocation15_spill] sm:$0xff] }
 0xb1a   :  { %v10404_v39 = vld [vmem:[#allocation19_spill] sm:$0xff] }
 0xb1b   :  { %v9155_v27 = vadd.f32 %v3167_v9, %v3166_v12  ;;  %v3240_v12 = vadd.f32 %v3239_v14, %v10404_v39 }
 0xb1d   :  { %10393 = vst [vmem:[#allocation23_spill] sm:$0xff] %v9155_v27  ;;  %3379 = vmatmul.mubr.f32.vlgmr.msra.gmra.mxu1 %v9155_v27  ;;  %6965 = vmatmul.mubr.f32.vlgmr.msra.gmra.mxu0 %v9155_v27 }
 0xb1e   :  { %6015 = vmatpush1.msk.msra.mxu1 %vm77_vm1, %v8889_v54  ;;  %3546 = vmatprep.mubr.f32.mxu1 %v10311_v45 }
 0xb1f   :  { %6967 = vmatprep.subr.mxu1 %v10311_v45  ;;  %6973 = vmatpush3.msra.mxu0 %v8861_v17 }
 0xb20   :  { %6974 = vmatprep.subr.mxu0 %v10311_v45  ;;  %7004 = vmatprep.mubr.msk.f32.mxu0 %vm7812_vm0, %v10311_v45 }
 0xb21   :  { %6975 = vmatpush3.msra.mxu0 %v8865_v18  ;;  %6016 = vmatmul.mubr.msk.f32.vlgmr.msra.gmra.mxu1 %vm73_vm2, %v6013_v7 }
 0xb22   :  { %6976 = vmatprep.subr.mxu0 %v10311_v45  ;;  %6968 = vmatpush3.msk.msra.mxu1 %vm77_vm1, %v8898_v28 }
 0xb23   :  { %6977 = vmatpush3.msra.mxu0 %v8869_v19  ;;  %6969 = vmatprep.mubr.msk.f32.mxu1 %vm7812_vm0, %v10311_v45 }
 0xb24   :  { %6978 = vmatprep.subr.mxu0 %v10311_v45  ;;  %3623 = vmatprep.subr.mxu1 %v8900_v30 }
 0xb25   :  { %6979 = vmatpush3.msra.mxu0 %v8873_v20  ;;  %6970 = vmatmul.mubr.msk.f32.vlgmr.msra.gmra.mxu1 %vm73_vm2, %v6013_v7 }
 0xb26   :  { %6980 = vmatprep.subr.mxu0 %v10311_v45  ;;  %3624 = vmatpush1.msra.mxu1 %v8908_v13 }
 0xb27   :  { %6981 = vmatpush3.msra.mxu0 %v8877_v21  ;;  %3687 = vmatprep.mubr.f32.mxu1 %v10311_v45 }
 0xb28   :  { %6982 = vmatprep.subr.mxu0 %v10311_v45  ;;  %3625 = vmatprep.subr.mxu1 %v8910_v44 }
 0xb29   :  { %6983 = vmatpush3.msra.mxu0 %v8881_v22  ;;  %3626 = vmatpush1.msra.mxu1 %v8913_v41 }
 0xb2a   :  { %6984 = vmatprep.subr.mxu0 %v10311_v45  ;;  %3627 = vmatprep.subr.mxu1 %v8916_v37 }
 0xb2b   :  { %6985 = vmatpush3.msra.mxu0 %v8885_v23  ;;  %3628 = vmatpush1.msra.mxu1 %v8920_v32 }
 0xb2c   :  { %6986 = vmatprep.subr.mxu0 %v10311_v45  ;;  %3629 = vmatprep.subr.mxu1 %v8923_v31 }
 0xb2d   :  { %6987 = vmatpush3.msra.mxu0 %v8954_v50  ;;  %3630 = vmatpush1.msra.mxu1 %v8926_v33 }
 0xb2e   :  { %6988 = vmatprep.subr.mxu0 %v10311_v45  ;;  %3631 = vmatprep.subr.mxu1 %v8929_v36 }
 0xb2f   :  { %6989 = vmatpush3.msra.mxu0 %v8964_v60  ;;  %3632 = vmatpush1.msra.mxu1 %v8932_v40 }
 0xb30   :  { %6990 = vmatprep.subr.mxu0 %v10311_v45  ;;  %3633 = vmatprep.subr.mxu1 %v8935_v57 }
 0xb31   :  { %6991 = vmatpush3.msra.mxu0 %v8974_v51  ;;  %3634 = vmatpush1.msra.mxu1 %v8938_v38 }
 0xb32   :  { %6992 = vmatprep.subr.mxu0 %v10311_v45  ;;  %3635 = vmatprep.subr.mxu1 %v8941_v35 }
 0xb33   :  { %6993 = vmatpush3.msra.mxu0 %v8982_v0  ;;  %3636 = vmatpush1.msra.mxu1 %v8944_v34 }
 0xb34   :  { %6994 = vmatprep.subr.mxu0 %v10311_v45  ;;  %3637 = vmatprep.subr.mxu1 %v8947_v56 }
 0xb35   :  { %6995 = vmatpush3.msra.mxu0 %v8990_v61  ;;  %3638 = vmatpush1.msra.mxu1 %v8952_v29 }
 0xb36   :  { %6996 = vmatprep.subr.mxu0 %v10311_v45  ;;  %3639 = vmatprep.subr.mxu1 %v8958_v47 }
 0xb37   :  { %6997 = vmatpush3.msra.mxu0 %v9000_v42  ;;  %3640 = vmatpush1.msra.mxu1 %v8962_v48 }
 0xb38   :  { %6998 = vmatprep.subr.mxu0 %v10311_v45  ;;  %3641 = vmatprep.subr.mxu1 %v8968_v49 }
 0xb39   :  { %6999 = vmatpush3.msra.mxu0 %v9010_v55  ;;  %3642 = vmatpush1.msra.mxu1 %v8972_v63 }
 0xb3a   :  { %7000 = vmatprep.subr.mxu0 %v10311_v45  ;;  %3643 = vmatprep.subr.mxu1 %v8976_v1 }
 0xb3b   :  { %7001 = vmatpush3.msra.mxu0 %v9020_v4  ;;  %3644 = vmatpush1.msra.mxu1 %v8980_v52 }
 0xb3c   :  { %7002 = vmatprep.subr.mxu0 %v10311_v45  ;;  %3645 = vmatprep.subr.mxu1 %v8984_v46 }
 0xb3d   :  { %7003 = vmatpush3.msra.mxu0 %v9030_v26  ;;  %3646 = vmatpush1.msra.mxu1 %v10394_v10 }
 0xb3e   :  { %7007 = vmatprep.subr.mxu0 %v10311_v45  ;;  %3647 = vmatprep.subr.mxu1 %v10395_v24 }
 0xb3f   :  { %3648 = vmatpush1.msra.mxu1 %v10396_v62 }
 0xb40   :  { %3649 = vmatprep.subr.mxu1 %v10397_v5 }
 0xb41   :  { %3650 = vmatpush1.msra.mxu1 %v10398_v3  ;;  %v3242_v3 = vadd.f32 %v3241_v16, %v9141_v2 }
 0xb42   :  { %3651 = vmatprep.subr.mxu1 %v10399_v6 }
 0xb43   :  { %3652 = vmatpush1.msra.mxu1 %v10400_v11 }
 0xb44   :  { %3653 = vmatprep.subr.mxu1 %v10401_v53 }
 0xb45   :  { %3654 = vmatpush1.msra.mxu1 %v10402_v58 }
 0xb46   :  { %6022 = vmatprep.subr.msk.mxu1 %vm77_vm1, %v10403_v43 }
 0xbdd   :  { %v3380_v9 = vpop.f32.mrf.mxu1  ;;  %v3451_v15 = vpop.f32.mrf.mxu0 }
 0xbde   :  { %v3455_v7 = vadd.f32 %v3380_v9, %v3240_v12  ;;  %v3469_v43 = vadd.f32 %v3451_v15, %v9145_v8  ;;  %v3311_v12 = vadd.f32 %v9194_v25, %v9149_v59  ;;  %v10407_v15 = vld [vmem:[#allocation11_spill] sm:$0xff] }
 0xbdf   :  { %v6966_v26 = vpop.f32.mrf.mxu0  ;;  %v3382_v55 = vpop.f32.mrf.mxu1 }
 0xbe0   :  { %v6011_v4 = vmul.f32 -1.442695, %v3455_v7  ;;  %v3462_v6 = vadd.f32 %v3382_v55, %v3242_v3  ;;  %v10408_v7 = vld [vmem:[#allocation12_spill] sm:$0xff] }
 0xbe2   :  { %7589 = vpow2.f32 %v6011_v4  ;;  %v6012_v11 = vmul.f32 -1.442695, %v3462_v6 }
 0xbe4   :  { %7591 = vpow2.f32 %v6012_v11 }
 0xbef   :  { %v7590_v53 = vpop.eup %7589 }
 0xbf0   :  { %v3459_v5 = vadd.f32 1.0, %v7590_v53 }
 0xbf1   :  { %v7592_v58 = vpop.eup %7591 }
 0xbf2   :  { %7593 = vrcp.f32 %v3459_v5  ;;  %v3466_v42 = vadd.f32 1.0, %v7592_v58  ;;  %v6021_v58 = vld [vmem:[%s10182_s1 + $0x4] sm:$0x3] }
 0xbf4   :  { %7595 = vrcp.f32 %v3466_v42  ;;  %v9262_v42 = vpop.f32.mrf.mxu1 }
 0xbf6   :  { %v9264_v25 = vpop.f32.mrf.mxu1 }
 0xbf8   :  { %v9266_v5 = vpop.f32.mrf.mxu1 }
 0xbfa   :  { %v6971_v53 = vpop.f32.mrf.mxu1 }
 0xbff   :  { %v7594_v14 = vpop.eup %7593 }
 0xc00   :  { %v3470_v26 = vmul.f32 %v7594_v14, %v3469_v43  ;;  %v10406_v43 = vld [vmem:[#allocation16_spill] sm:$0xff]  ;;  %v10409_v14 = vld [vmem:[#allocation17_spill] sm:$0xff] }
 0xc01   :  { %v7596_v16 = vpop.eup %7595 }
 0xc02   :  { %v3471_v9 = vadd.f32 %v3470_v26, %v3311_v12  ;;  %v3473_v4 = vsub.f32 1.0, %v7596_v16  ;;  %v3475_v6 = vmul.f32 %v7596_v16, %v9155_v27  ;;  %v10410_v12 = vld [vmem:[#allocation13_spill] sm:$0xff]  ;;  %v10411_v26 = vld [vmem:[#allocation14_spill] sm:$0xff]  ;;  %v10413_v16 = vld [vmem:[#allocation20_spill] sm:$0xff] }
 0xc04   :  { %7597 = vtanh.f32 %v3471_v9  ;;  %v10412_v9 = vld [vmem:[#allocation18_spill] sm:$0xff] }
 0xc11   :  { %v7598_v55 = vpop.eup %7597 }
 0xc12   :  { %v3474_v3 = vmul.f32 %v7598_v55, %v3473_v4  ;;  %v10414_v4 = vld [vmem:[#allocation21_spill] sm:$0xff]  ;;  %v10415_v55 = vld [vmem:[#allocation22_spill] sm:$0xff] }
 0xc14   :  { %v9249_v11 = vadd.f32 %v3475_v6, %v3474_v3  ;;  %v10416_v3 = vld [vmem:[#allocation15_spill] sm:$0xff]  ;;  %v3549_v6 = vadd.f32 %v9262_v42, %v10404_v39 }
 0xc16   :  { %10405 = vst [vmem:[#allocation8_spill] sm:$0xff] %v9249_v11  ;;  %3688 = vmatmul.mubr.f32.vlgmr.msra.gmra.mxu1 %v9249_v11  ;;  %7005 = vmatmul.mubr.f32.vlgmr.msra.gmra.mxu0 %v9249_v11 }
 0xc17   :  { %6023 = vmatpush1.msk.msra.mxu1 %vm77_vm1, %v8889_v54  ;;  %3855 = vmatprep.mubr.f32.mxu1 %v10311_v45 }
 0xc18   :  { %7008 = vmatpush3.msk.msra.mxu0 %vm77_vm1, %v8898_v28  ;;  %7009 = vmatprep.mubr.msk.f32.mxu0 %vm7812_vm0, %v10311_v45 }
 0xc19   :  { %3932 = vmatprep.subr.mxu1 %v8900_v30  ;;  %7012 = vmatprep.subr.mxu0 %v10311_v45 }
 0xc1a   :  { %6024 = vmatmul.mubr.msk.f32.vlgmr.msra.gmra.mxu1 %vm73_vm2, %v6021_v58  ;;  %7010 = vmatmul.mubr.msk.f32.vlgmr.msra.gmra.mxu0 %vm73_vm2, %v6021_v58 }
 0xc1b   :  { %3933 = vmatpush1.msra.mxu1 %v8908_v13  ;;  %7013 = vmatpush3.msra.mxu0 %v8861_v17 }
 0xc1c   :  { %3934 = vmatprep.subr.mxu1 %v8910_v44  ;;  %7014 = vmatprep.subr.mxu0 %v10311_v45 }
 0xc1d   :  { %3935 = vmatpush1.msra.mxu1 %v8913_v41  ;;  %7015 = vmatpush3.msra.mxu0 %v8865_v18 }
 0xc1e   :  { %3936 = vmatprep.subr.mxu1 %v8916_v37  ;;  %7016 = vmatprep.subr.mxu0 %v10311_v45 }
 0xc1f   :  { %3937 = vmatpush1.msra.mxu1 %v8920_v32  ;;  %7017 = vmatpush3.msra.mxu0 %v8869_v19 }
 0xc20   :  { %3938 = vmatprep.subr.mxu1 %v8923_v31  ;;  %7018 = vmatprep.subr.mxu0 %v10311_v45 }
 0xc21   :  { %3939 = vmatpush1.msra.mxu1 %v8926_v33  ;;  %7019 = vmatpush3.msra.mxu0 %v8873_v20 }
 0xc22   :  { %3940 = vmatprep.subr.mxu1 %v8929_v36  ;;  %7020 = vmatprep.subr.mxu0 %v10311_v45 }
 0xc23   :  { %3941 = vmatpush1.msra.mxu1 %v8932_v40  ;;  %7021 = vmatpush3.msra.mxu0 %v8877_v21 }
 0xc24   :  { %3942 = vmatprep.subr.mxu1 %v8935_v57  ;;  %7022 = vmatprep.subr.mxu0 %v10311_v45 }
 0xc25   :  { %3943 = vmatpush1.msra.mxu1 %v8938_v38  ;;  %7023 = vmatpush3.msra.mxu0 %v8881_v22 }
 0xc26   :  { %3944 = vmatprep.subr.mxu1 %v8941_v35  ;;  %7024 = vmatprep.subr.mxu0 %v10311_v45 }
 0xc27   :  { %3945 = vmatpush1.msra.mxu1 %v8944_v34  ;;  %7025 = vmatpush3.msra.mxu0 %v8885_v23 }
 0xc28   :  { %3946 = vmatprep.subr.mxu1 %v8947_v56  ;;  %7026 = vmatprep.subr.mxu0 %v10311_v45 }
 0xc29   :  { %3947 = vmatpush1.msra.mxu1 %v8952_v29  ;;  %7027 = vmatpush3.msra.mxu0 %v8954_v50 }
 0xc2a   :  { %3948 = vmatprep.subr.mxu1 %v8958_v47  ;;  %7028 = vmatprep.subr.mxu0 %v10311_v45 }
 0xc2b   :  { %3949 = vmatpush1.msra.mxu1 %v8962_v48  ;;  %7029 = vmatpush3.msra.mxu0 %v8964_v60 }
 0xc2c   :  { %3950 = vmatprep.subr.mxu1 %v8968_v49  ;;  %7030 = vmatprep.subr.mxu0 %v10311_v45 }
 0xc2d   :  { %3951 = vmatpush1.msra.mxu1 %v8972_v63  ;;  %7031 = vmatpush3.msra.mxu0 %v8974_v51 }
 0xc2e   :  { %3952 = vmatprep.subr.mxu1 %v8976_v1  ;;  %7032 = vmatprep.subr.mxu0 %v10311_v45 }
 0xc2f   :  { %3953 = vmatpush1.msra.mxu1 %v8980_v52  ;;  %7033 = vmatpush3.msra.mxu0 %v8982_v0 }
 0xc30   :  { %3954 = vmatprep.subr.mxu1 %v8984_v46  ;;  %7034 = vmatprep.subr.mxu0 %v10311_v45 }
 0xc31   :  { %3955 = vmatpush1.msra.mxu1 %v10394_v10  ;;  %7035 = vmatpush3.msra.mxu0 %v8990_v61 }
 0xc32   :  { %3956 = vmatprep.subr.mxu1 %v10395_v24  ;;  %7036 = vmatprep.subr.mxu0 %v10311_v45 }
 0xc33   :  { %3957 = vmatpush1.msra.mxu1 %v10396_v62  ;;  %7037 = vmatpush3.msra.mxu0 %v10406_v43 }
 0xc34   :  { %3958 = vmatprep.subr.mxu1 %v10407_v15  ;;  %7038 = vmatprep.subr.mxu0 %v10311_v45 }
 0xc35   :  { %3959 = vmatpush1.msra.mxu1 %v10408_v7  ;;  %7039 = vmatpush3.msra.mxu0 %v10409_v14 }
 0xc36   :  { %3960 = vmatprep.subr.mxu1 %v10410_v12  ;;  %7040 = vmatprep.subr.mxu0 %v10311_v45 }
 0xc37   :  { %3961 = vmatpush1.msra.mxu1 %v10411_v26  ;;  %7041 = vmatpush3.msra.mxu0 %v10412_v9 }
 0xc38   :  { %3962 = vmatprep.subr.mxu1 %v10413_v16  ;;  %7042 = vmatprep.subr.mxu0 %v10311_v45 }
 0xc39   :  { %3963 = vmatpush1.msra.mxu1 %v10414_v4  ;;  %3996 = vmatprep.mubr.f32.mxu1 %v10311_v45 }
 0xc3a   :  { %7043 = vmatpush3.msra.mxu0 %v10415_v55  ;;  %7044 = vmatprep.mubr.msk.f32.mxu0 %vm7812_vm0, %v10311_v45  ;;  %v3551_v55 = vadd.f32 %v9264_v25, %v9141_v2 }
 0xc3b   :  { %6030 = vmatprep.subr.msk.mxu1 %vm77_vm1, %v10416_v3  ;;  %7047 = vmatprep.subr.mxu0 %v10311_v45 }
 0xcd6   :  { %v3689_v53 = vpop.f32.mrf.mxu1  ;;  %v3760_v58 = vpop.f32.mrf.mxu0 }
 0xcd7   :  { %v3764_v27 = vadd.f32 %v3689_v53, %v3549_v6  ;;  %v3778_v42 = vadd.f32 %v3760_v58, %v9145_v8  ;;  %v6037_v53 = vld [vmem:[%s10182_s1 + $0x8] sm:$0x3]  ;;  %v9471_v58 = vld [vmem:[#allocation4 + $0x200] sm:$0xff] }
 0xcd8   :  { %v7006_v16 = vpop.f32.mrf.mxu0  ;;  %v3691_v9 = vpop.f32.mrf.mxu1 }
 0xcd9   :  { %v6019_v4 = vmul.f32 -1.442695, %v3764_v27  ;;  %v3771_v26 = vadd.f32 %v3691_v9, %v3551_v55  ;;  %v3620_v16 = vadd.f32 %v9266_v5, %v9149_v59 }
 0xcdb   :  { %7599 = vpow2.f32 %v6019_v4  ;;  %v6020_v12 = vmul.f32 -1.442695, %v3771_v26 }
 0xcdd   :  { %7601 = vpow2.f32 %v6020_v12 }
 0xce8   :  { %v7600_v14 = vpop.eup %7599 }
 0xce9   :  { %v3768_v3 = vadd.f32 1.0, %v7600_v14 }
 0xcea   :  { %v7602_v7 = vpop.eup %7601 }
 0xceb   :  { %7603 = vrcp.f32 %v3768_v3  ;;  %v3775_v15 = vadd.f32 1.0, %v7602_v7  ;;  %v9474_v3 = vld [vmem:[#allocation4 + $0x210] sm:$0xff] }
 0xced   :  { %7605 = vrcp.f32 %v3775_v15  ;;  %v6029_v15 = vld [vmem:[%s10182_s1 + $0x6] sm:$0x3] }
 0xcf8   :  { %v7604_v39 = vpop.eup %7603 }
 0xcf9   :  { %v3779_v27 = vmul.f32 %v7604_v39, %v3778_v42  ;;  %v9362_v39 = vpop.f32.mrf.mxu0  ;;  %v9477_v42 = vld [vmem:[#allocation4 + $0x1e8] sm:$0xff] }
 0xcfa   :  { %v7606_v25 = vpop.eup %7605 }
 0xcfb   :  { %v3780_v6 = vadd.f32 %v3779_v27, %v3620_v16  ;;  %v3782_v4 = vsub.f32 1.0, %v7606_v25  ;;  %v3784_v12 = vmul.f32 %v7606_v25, %v9249_v11  ;;  %v7011_v5 = vpop.f32.mrf.mxu0  ;;  %v9481_v16 = vld [vmem:[#allocation4 + $0x1e0] sm:$0xff]  ;;  %v9484_v27 = vld [vmem:[#allocation4 + $0x1f0] sm:$0xff] }
 0xcfc   :  { %v9491_v25 = vld [vmem:[#allocation4 + $0x1c0] sm:$0xff] }
 0xcfd   :  { %7607 = vtanh.f32 %v3780_v6  ;;  %v9487_v6 = vld [vmem:[#allocation4 + $0x1c8] sm:$0xff]  ;;  %v9511_v5 = vld [vmem:[#allocation4 + $0x180] sm:$0xff] }
 0xd0a   :  { %v7608_v9 = vpop.eup %7607 }
 0xd0b   :  { %v3783_v26 = vmul.f32 %v7608_v9, %v3782_v4  ;;  %v9494_v4 = vld [vmem:[#allocation4 + $0x1d0] sm:$0xff]  ;;  %v9497_v9 = vld [vmem:[#allocation4 + $0x1a8] sm:$0xff] }
 0xd0d   :  { %v9349_v14 = vadd.f32 %v3784_v12, %v3783_v26  ;;  %v9501_v26 = vld [vmem:[#allocation4 + $0x1a0] sm:$0xff]  ;;  %v9504_v12 = vld [vmem:[#allocation4 + $0x1b0] sm:$0xff] }
 0xd0f   :  { %10417 = vst [vmem:[#allocation9_spill] sm:$0xff] %v9349_v14  ;;  %3997 = vmatmul.mubr.f32.vlgmr.msra.gmra.mxu1 %v9349_v14  ;;  %7045 = vmatmul.mubr.f32.vlgmr.msra.gmra.mxu0 %v9349_v14 }
 0xd10   :  { %6031 = vmatpush1.msk.msra.mxu1 %vm77_vm1, %v8889_v54  ;;  %4164 = vmatprep.mubr.f32.mxu1 %v10311_v45  ;;  %v10425_v54 = vld [vmem:[#allocation21_spill] sm:$0xff] }
 0xd11   :  { %7048 = vmatpush3.msk.msra.mxu0 %vm77_vm1, %v8898_v28  ;;  %7049 = vmatprep.mubr.msk.f32.mxu0 %vm7812_vm0, %v10311_v45  ;;  %v10426_v28 = vld [vmem:[#allocation22_spill] sm:$0xff] }
 0xd12   :  { %4241 = vmatprep.subr.mxu1 %v8900_v30  ;;  %7052 = vmatprep.subr.mxu0 %v10311_v45  ;;  %v9434_v30 = vld [vmem:[#allocation4 + $0x8] sm:$0xf] }
 0xd13   :  { %6032 = vmatmul.mubr.msk.f32.vlgmr.msra.gmra.mxu1 %vm73_vm2, %v6029_v15  ;;  %7050 = vmatmul.mubr.msk.f32.vlgmr.msra.gmra.mxu0 %vm73_vm2, %v6029_v15  ;;  %10427 = vst [vmem:[#allocation10_spill] sm:$0xff] %v9434_v30  ;;  %v9514_v15 = vld [vmem:[#allocation4 + $0x190] sm:$0xff] }
 0xd14   :  { %4242 = vmatpush1.msra.mxu1 %v8908_v13  ;;  %7053 = vmatpush3.msra.mxu0 %v8861_v17  ;;  %v10418_v17 = vld [vmem:[#allocation11_spill] sm:$0xff]  ;;  %v3857_v13 = vpop.f32.mrf.mxu1 }
 0xd15   :  { %4243 = vmatprep.subr.mxu1 %v8910_v44  ;;  %7054 = vmatprep.subr.mxu0 %v10311_v45 }
 0xd16   :  { %4244 = vmatpush1.msra.mxu1 %v8913_v41  ;;  %7055 = vmatpush3.msra.mxu0 %v8865_v18  ;;  %v10419_v18 = vld [vmem:[#allocation12_spill] sm:$0xff]  ;;  %v3859_v44 = vpop.f32.mrf.mxu1  ;;  %v10428_v41 = vld [vmem:[#allocation19_spill] sm:$0xff] }
 0xd17   :  { %4245 = vmatprep.subr.mxu1 %v8916_v37  ;;  %7056 = vmatprep.subr.mxu0 %v10311_v45  ;;  %v3858_v37 = vadd.f32 %v3857_v13, %v10428_v41  ;;  %v9547_v13 = vld [vmem:[#allocation4 + $0x108] sm:$0xff] }
 0xd18   :  { %4246 = vmatpush1.msra.mxu1 %v8920_v32  ;;  %7057 = vmatpush3.msra.mxu0 %v8869_v19  ;;  %v10420_v19 = vld [vmem:[#allocation17_spill] sm:$0xff] }
 0xd19   :  { %4247 = vmatprep.subr.mxu1 %v8923_v31  ;;  %7058 = vmatprep.subr.mxu0 %v10311_v45 }
 0xd1a   :  { %4248 = vmatpush1.msra.mxu1 %v8926_v33  ;;  %7059 = vmatpush3.msra.mxu0 %v8873_v20  ;;  %v10421_v20 = vld [vmem:[#allocation13_spill] sm:$0xff] }
 0xd1b   :  { %4249 = vmatprep.subr.mxu1 %v8929_v36  ;;  %7060 = vmatprep.subr.mxu0 %v10311_v45 }
 0xd1c   :  { %4250 = vmatpush1.msra.mxu1 %v8932_v40  ;;  %7061 = vmatpush3.msra.mxu0 %v8877_v21  ;;  %v10422_v21 = vld [vmem:[#allocation14_spill] sm:$0xff] }
 0xd1d   :  { %4251 = vmatprep.subr.mxu1 %v8935_v57  ;;  %7062 = vmatprep.subr.mxu0 %v10311_v45 }
 0xd1e   :  { %4252 = vmatpush1.msra.mxu1 %v8938_v38  ;;  %7063 = vmatpush3.msra.mxu0 %v8881_v22  ;;  %v10423_v22 = vld [vmem:[#allocation18_spill] sm:$0xff]  ;;  %v3860_v38 = vadd.f32 %v3859_v44, %v9141_v2  ;;  %v9551_v44 = vld [vmem:[#allocation4 + $0x100] sm:$0xff] }
 0xd1f   :  { %4253 = vmatprep.subr.mxu1 %v8941_v35  ;;  %7064 = vmatprep.subr.mxu0 %v10311_v45 }
 0xd20   :  { %4254 = vmatpush1.msra.mxu1 %v8944_v34  ;;  %7065 = vmatpush3.msra.mxu0 %v8885_v23  ;;  %v10424_v23 = vld [vmem:[#allocation20_spill] sm:$0xff] }
 0xd21   :  { %4255 = vmatprep.subr.mxu1 %v8947_v56  ;;  %7066 = vmatprep.subr.mxu0 %v10311_v45 }
 0xd22   :  { %4256 = vmatpush1.msra.mxu1 %v8952_v29  ;;  %7067 = vmatpush3.msra.mxu0 %v8954_v50 }
 0xd23   :  { %4257 = vmatprep.subr.mxu1 %v8958_v47  ;;  %7068 = vmatprep.subr.mxu0 %v10311_v45 }
 0xd24   :  { %4258 = vmatpush1.msra.mxu1 %v8962_v48  ;;  %7069 = vmatpush3.msra.mxu0 %v8964_v60 }
 0xd25   :  { %4259 = vmatprep.subr.mxu1 %v8968_v49  ;;  %7070 = vmatprep.subr.mxu0 %v10311_v45  ;;  %v3929_v49 = vadd.f32 %v9362_v39, %v9149_v59  ;;  %v9507_v39 = vld [vmem:[#allocation4 + $0x188] sm:$0xff] }
 0xd26   :  { %4260 = vmatpush1.msra.mxu1 %v8972_v63  ;;  %7071 = vmatpush3.msra.mxu0 %v8974_v51 }
 0xd27   :  { %4261 = vmatprep.subr.mxu1 %v8976_v1  ;;  %7072 = vmatprep.subr.mxu0 %v10311_v45 }
 0xd28   :  { %4262 = vmatpush1.msra.mxu1 %v8980_v52  ;;  %7073 = vmatpush3.msra.mxu0 %v8982_v0 }
 0xd29   :  { %4263 = vmatprep.subr.mxu1 %v8984_v46  ;;  %7074 = vmatprep.subr.mxu0 %v10311_v45 }
 0xd2a   :  { %4264 = vmatpush1.msra.mxu1 %v10394_v10  ;;  %7075 = vmatpush3.msra.mxu0 %v8990_v61 }
 0xd2b   :  { %4265 = vmatprep.subr.mxu1 %v10395_v24  ;;  %7076 = vmatprep.subr.mxu0 %v10311_v45  ;;  %v9449_v24 = vld [vmem:[#allocation4] sm:$0xf] }
 0xd2c   :  { %4266 = vmatpush1.msra.mxu1 %v10396_v62  ;;  %7077 = vmatpush3.msra.mxu0 %v10406_v43  ;;  %v9454_v62 = vld [vmem:[#allocation4 + $0x10] sm:$0xf]  ;;  %v9460_v43 = vld [vmem:[#allocation4 + $0x208] sm:$0xff] }
 0xd2d   :  { %4267 = vmatprep.subr.mxu1 %v10418_v17  ;;  %7078 = vmatprep.subr.mxu0 %v10311_v45  ;;  %v9517_v17 = vld [vmem:[#allocation4 + $0x168] sm:$0xff] }
 0xd2e   :  { %4268 = vmatpush1.msra.mxu1 %v10419_v18  ;;  %7079 = vmatpush3.msra.mxu0 %v10420_v19  ;;  %v9521_v18 = vld [vmem:[#allocation4 + $0x160] sm:$0xff]  ;;  %v9524_v19 = vld [vmem:[#allocation4 + $0x170] sm:$0xff] }
 0xd2f   :  { %4269 = vmatprep.subr.mxu1 %v10421_v20  ;;  %7080 = vmatprep.subr.mxu0 %v10311_v45  ;;  %v9527_v20 = vld [vmem:[#allocation4 + $0x148] sm:$0xff] }
 0xd30   :  { %4270 = vmatpush1.msra.mxu1 %v10422_v21  ;;  %7081 = vmatpush3.msra.mxu0 %v10423_v22  ;;  %v9531_v21 = vld [vmem:[#allocation4 + $0x140] sm:$0xff]  ;;  %v9534_v22 = vld [vmem:[#allocation4 + $0x150] sm:$0xff] }
 0xd31   :  { %4271 = vmatprep.subr.mxu1 %v10424_v23  ;;  %7082 = vmatprep.subr.mxu0 %v10311_v45  ;;  %v9537_v23 = vld [vmem:[#allocation4 + $0x128] sm:$0xff] }
 0xd32   :  { %4272 = vmatpush1.msra.mxu1 %v10425_v54  ;;  %4305 = vmatprep.mubr.f32.mxu1 %v10311_v45  ;;  %v9541_v54 = vld [vmem:[#allocation4 + $0x120] sm:$0xff] }
 0xd33   :  { %7083 = vmatpush3.msra.mxu0 %v10426_v28  ;;  %7084 = vmatprep.mubr.msk.f32.mxu0 %vm7812_vm0, %v10311_v45  ;;  %v9544_v28 = vld [vmem:[#allocation4 + $0x130] sm:$0xff] }
 0xd34   :  { %6038 = vmatprep.subr.msk.mxu1 %vm77_vm1, %v9434_v30  ;;  %7087 = vmatprep.subr.mxu0 %v10311_v45 }
 0xdcf   :  { %v3998_v32 = vpop.f32.mrf.mxu1  ;;  %v4069_v31 = vpop.f32.mrf.mxu0 }
 0xdd0   :  { %v4073_v33 = vadd.f32 %v3998_v32, %v3858_v37  ;;  %v4087_v48 = vadd.f32 %v4069_v31, %v9145_v8  ;;  %v9554_v37 = vld [vmem:[#allocation4 + $0x110] sm:$0xff]  ;;  %v9557_v32 = vld [vmem:[#allocation4 + $0xe8] sm:$0xff]  ;;  %v9561_v31 = vld [vmem:[#allocation4 + $0xe0] sm:$0xff] }
 0xdd1   :  { %v7046_v36 = vpop.f32.mrf.mxu0  ;;  %v4000_v57 = vpop.f32.mrf.mxu1 }
 0xdd2   :  { %v6027_v40 = vmul.f32 -1.442695, %v4073_v33  ;;  %v4080_v35 = vadd.f32 %v4000_v57, %v3860_v38  ;;  %v9564_v33 = vld [vmem:[#allocation4 + $0xf0] sm:$0xff]  ;;  %v9567_v36 = vld [vmem:[#allocation4 + $0xc8] sm:$0xff] }
 0xdd3   :  { %v9464_v7 = vpop.f32.mrf.mxu0  ;;  %v9574_v57 = vld [vmem:[#allocation4 + $0xd0] sm:$0xff]  ;;  %v9577_v38 = vld [vmem:[#allocation4 + $0xa8] sm:$0xff] }
 0xdd4   :  { %7609 = vpow2.f32 %v6027_v40  ;;  %v6028_v34 = vmul.f32 -1.442695, %v4080_v35  ;;  %v9571_v40 = vld [vmem:[#allocation4 + $0xc0] sm:$0xff] }
 0xdd5   :  { %v7051_v55 = vpop.f32.mrf.mxu0  ;;  %v9581_v35 = vld [vmem:[#allocation4 + $0xa0] sm:$0xff] }
 0xdd6   :  { %7611 = vpow2.f32 %v6028_v34  ;;  %v9584_v34 = vld [vmem:[#allocation4 + $0xb0] sm:$0xff] }
 0xde1   :  { %v7610_v56 = vpop.eup %7609 }
 0xde2   :  { %v4077_v29 = vadd.f32 1.0, %v7610_v56  ;;  %v9587_v56 = vld [vmem:[#allocation4 + $0x88] sm:$0xff] }
 0xde3   :  { %v7612_v50 = vpop.eup %7611 }
 0xde4   :  { %7613 = vrcp.f32 %v4077_v29  ;;  %v4084_v47 = vadd.f32 1.0, %v7612_v50  ;;  %v9591_v29 = vld [vmem:[#allocation4 + $0x80] sm:$0xff]  ;;  %v9594_v50 = vld [vmem:[#allocation4 + $0x90] sm:$0xff] }
 0xde5   :  { %10430 = vst [vmem:[#allocation15_spill] sm:$0xff] %v9594_v50 }
 0xde6   :  { %7615 = vrcp.f32 %v4084_v47  ;;  %v9597_v47 = vld [vmem:[#allocation4 + $0x68] sm:$0xff] }
 0xde7   :  { %10431 = vst [vmem:[#allocation11_spill] sm:$0xff] %v9597_v47 }
 0xdf1   :  { %v7614_v60 = vpop.eup %7613 }
 0xdf2   :  { %v4088_v63 = vmul.f32 %v7614_v60, %v4087_v48  ;;  %v9601_v48 = vld [vmem:[#allocation4 + $0x60] sm:$0xff]  ;;  %v9604_v60 = vld [vmem:[#allocation4 + $0x70] sm:$0xff] }
 0xdf3   :  { %v7616_v1 = vpop.eup %7615  ;;  %10432 = vst [vmem:[#allocation12_spill] sm:$0xff] %v9601_v48  ;;  %10433 = vst [vmem:[#allocation17_spill] sm:$0xff] %v9604_v60 }
 0xdf4   :  { %v4089_v51 = vadd.f32 %v4088_v63, %v3929_v49  ;;  %v4091_v52 = vsub.f32 1.0, %v7616_v1  ;;  %v4093_v61 = vmul.f32 %v7616_v1, %v9349_v14  ;;  %v9607_v49 = vld [vmem:[#allocation4 + $0x48] sm:$0xff]  ;;  %v9611_v63 = vld [vmem:[#allocation4 + $0x40] sm:$0xff] }
 0xdf5   :  { %10434 = vst [vmem:[#allocation13_spill] sm:$0xff] %v9607_v49  ;;  %10435 = vst [vmem:[#allocation14_spill] sm:$0xff] %v9611_v63  ;;  %v9617_v1 = vld [vmem:[#allocation4 + $0x28] sm:$0xff] }
 0xdf6   :  { %7617 = vtanh.f32 %v4089_v51  ;;  %v9614_v51 = vld [vmem:[#allocation4 + $0x50] sm:$0xff]  ;;  %10437 = vst [vmem:[#allocation20_spill] sm:$0xff] %v9617_v1 }
 0xdf7   :  { %10436 = vst [vmem:[#allocation18_spill] sm:$0xff] %v9614_v51 }
 0xe03   :  { %v7618_v0 = vpop.eup %7617 }
 0xe04   :  { %v4092_v46 = vmul.f32 %v7618_v0, %v4091_v52  ;;  %v9621_v52 = vld [vmem:[#allocation4 + $0x20] sm:$0xff]  ;;  %v9625_v0 = vld [vmem:[#allocation4 + $0x30] sm:$0xff] }
 0xe05   :  { %10438 = vst [vmem:[#allocation21_spill] sm:$0xff] %v9621_v52  ;;  %10439 = vst [vmem:[#allocation22_spill] sm:$0xff] %v9625_v0 }
 0xe06   :  { %v9445_v10 = vadd.f32 %v4093_v61, %v4092_v46  ;;  %v4166_v46 = vpop.f32.mrf.mxu1 }
 0xe07   :  { %v4167_v55 = vadd.f32 %v4166_v46, %v10428_v41 }
 0xe08   :  { %10429 = vst [vmem:[#allocation16_spill] sm:$0xff] %v9445_v10  ;;  %4306 = vmatmul.mubr.f32.vlgmr.msra.gmra.mxu1 %v9445_v10  ;;  %7085 = vmatmul.mubr.f32.vlgmr.msra.gmra.mxu0 %v9445_v10  ;;  %v4168_v61 = vpop.f32.mrf.mxu1 }
 0xe09   :  { %6039 = vmatpush1.msk.msra.mxu1 %vm77_vm1, %v9449_v24  ;;  %4473 = vmatprep.mubr.f32.mxu1 %v10311_v45 }
 0xe0a   :  { %7088 = vmatpush3.msk.msra.mxu0 %vm77_vm1, %v9454_v62  ;;  %7089 = vmatprep.mubr.msk.f32.mxu0 %vm7812_vm0, %v10311_v45 }
 0xe0b   :  { %4550 = vmatprep.subr.mxu1 %v9460_v43  ;;  %7092 = vmatprep.subr.mxu0 %v10311_v45 }
 0xe0c   :  { %6040 = vmatmul.mubr.msk.f32.vlgmr.msra.gmra.mxu1 %vm73_vm2, %v6037_v53  ;;  %7090 = vmatmul.mubr.msk.f32.vlgmr.msra.gmra.mxu0 %vm73_vm2, %v6037_v53 }
 0xe0d   :  { %4551 = vmatpush1.msra.mxu1 %v9471_v58  ;;  %7093 = vmatpush3.msra.mxu0 %v9474_v3 }
 0xe0e   :  { %4552 = vmatprep.subr.mxu1 %v9477_v42  ;;  %7094 = vmatprep.subr.mxu0 %v10311_v45 }
 0xe0f   :  { %4553 = vmatpush1.msra.mxu1 %v9481_v16  ;;  %7095 = vmatpush3.msra.mxu0 %v9484_v27 }
 0xe10   :  { %4554 = vmatprep.subr.mxu1 %v9487_v6  ;;  %7096 = vmatprep.subr.mxu0 %v10311_v45 }
 0xe11   :  { %4555 = vmatpush1.msra.mxu1 %v9491_v25  ;;  %7097 = vmatpush3.msra.mxu0 %v9494_v4 }
 0xe12   :  { %4556 = vmatprep.subr.mxu1 %v9497_v9  ;;  %7098 = vmatprep.subr.mxu0 %v10311_v45 }
 0xe13   :  { %4557 = vmatpush1.msra.mxu1 %v9501_v26  ;;  %7099 = vmatpush3.msra.mxu0 %v9504_v12 }
 0xe14   :  { %4558 = vmatprep.subr.mxu1 %v9507_v39  ;;  %7100 = vmatprep.subr.mxu0 %v10311_v45 }
 0xe15   :  { %4559 = vmatpush1.msra.mxu1 %v9511_v5  ;;  %7101 = vmatpush3.msra.mxu0 %v9514_v15 }
 0xe16   :  { %4560 = vmatprep.subr.mxu1 %v9517_v17  ;;  %7102 = vmatprep.subr.mxu0 %v10311_v45 }
 0xe17   :  { %4561 = vmatpush1.msra.mxu1 %v9521_v18  ;;  %7103 = vmatpush3.msra.mxu0 %v9524_v19 }
 0xe18   :  { %4562 = vmatprep.subr.mxu1 %v9527_v20  ;;  %7104 = vmatprep.subr.mxu0 %v10311_v45 }
 0xe19   :  { %4563 = vmatpush1.msra.mxu1 %v9531_v21  ;;  %7105 = vmatpush3.msra.mxu0 %v9534_v22 }
 0xe1a   :  { %4564 = vmatprep.subr.mxu1 %v9537_v23  ;;  %7106 = vmatprep.subr.mxu0 %v10311_v45 }
 0xe1b   :  { %4565 = vmatpush1.msra.mxu1 %v9541_v54  ;;  %7107 = vmatpush3.msra.mxu0 %v9544_v28 }
 0xe1c   :  { %4566 = vmatprep.subr.mxu1 %v9547_v13  ;;  %7108 = vmatprep.subr.mxu0 %v10311_v45 }
 0xe1d   :  { %4567 = vmatpush1.msra.mxu1 %v9551_v44  ;;  %7109 = vmatpush3.msra.mxu0 %v9554_v37 }
 0xe1e   :  { %4568 = vmatprep.subr.mxu1 %v9557_v32  ;;  %7110 = vmatprep.subr.mxu0 %v10311_v45 }
 0xe1f   :  { %4569 = vmatpush1.msra.mxu1 %v9561_v31  ;;  %7111 = vmatpush3.msra.mxu0 %v9564_v33 }
 0xe20   :  { %4570 = vmatprep.subr.mxu1 %v9567_v36  ;;  %7112 = vmatprep.subr.mxu0 %v10311_v45 }
 0xe21   :  { %4571 = vmatpush1.msra.mxu1 %v9571_v40  ;;  %7113 = vmatpush3.msra.mxu0 %v9574_v57 }
 0xe22   :  { %4572 = vmatprep.subr.mxu1 %v9577_v38  ;;  %7114 = vmatprep.subr.mxu0 %v10311_v45 }
 0xe23   :  { %4573 = vmatpush1.msra.mxu1 %v9581_v35  ;;  %7115 = vmatpush3.msra.mxu0 %v9584_v34 }
 0xe24   :  { %4574 = vmatprep.subr.mxu1 %v9587_v56  ;;  %7116 = vmatprep.subr.mxu0 %v10311_v45 }
 0xe25   :  { %4575 = vmatpush1.msra.mxu1 %v9591_v29  ;;  %7117 = vmatpush3.msra.mxu0 %v9594_v50 }
 0xe26   :  { %4576 = vmatprep.subr.mxu1 %v9597_v47  ;;  %7118 = vmatprep.subr.mxu0 %v10311_v45 }
 0xe27   :  { %4577 = vmatpush1.msra.mxu1 %v9601_v48  ;;  %7119 = vmatpush3.msra.mxu0 %v9604_v60 }
 0xe28   :  { %4578 = vmatprep.subr.mxu1 %v9607_v49  ;;  %7120 = vmatprep.subr.mxu0 %v10311_v45 }
 0xe29   :  { %4579 = vmatpush1.msra.mxu1 %v9611_v63  ;;  %7121 = vmatpush3.msra.mxu0 %v9614_v51 }
 0xe2a   :  { %4580 = vmatprep.subr.mxu1 %v9617_v1  ;;  %7122 = vmatprep.subr.mxu0 %v10311_v45 }
 0xe2b   :  { %4581 = vmatpush1.msra.mxu1 %v9621_v52  ;;  %4614 = vmatprep.mubr.f32.mxu1 %v10311_v45 }
 0xe2c   :  { %7123 = vmatpush3.msra.mxu0 %v9625_v0  ;;  %7124 = vmatprep.mubr.msk.f32.mxu0 %vm7812_vm0, %v10311_v45  ;;  %v4169_v0 = vadd.f32 %v4168_v61, %v9141_v2 }
 0xe2d   :  { %6046 = vmatprep.subr.msk.mxu1 %vm77_vm1, %v9434_v30  ;;  %7127 = vmatprep.subr.mxu0 %v10311_v45 }
 0xec8   :  { %v4307_v53 = vpop.f32.mrf.mxu1  ;;  %v4378_v14 = vpop.f32.mrf.mxu0 }
 0xec9   :  { %v4382_v11 = vadd.f32 %v4307_v53, %v4167_v55  ;;  %v4396_v50 = vadd.f32 %v4378_v14, %v9145_v8  ;;  %v4238_v55 = vadd.f32 %v9464_v7, %v9149_v59  ;;  %v10440_v7 = vld [vmem:[#allocation15_spill] sm:$0xff]  ;;  %v10445_v53 = vld [vmem:[#allocation14_spill] sm:$0xff] }
 0xeca   :  { %v7086_v52 = vpop.f32.mrf.mxu0  ;;  %v4309_v51 = vpop.f32.mrf.mxu1 }
 0xecb   :  { %v6035_v1 = vmul.f32 -1.442695, %v4382_v11  ;;  %v4389_v63 = vadd.f32 %v4309_v51, %v4169_v0  ;;  %v10444_v0 = vld [vmem:[#allocation13_spill] sm:$0xff] }
 0xecc   :  { %v9652_v8 = vpop.f32.mrf.mxu0 }
 0xecd   :  { %7619 = vpow2.f32 %v6035_v1  ;;  %v6036_v49 = vmul.f32 -1.442695, %v4389_v63 }
 0xece   :  { %v7091_v14 = vpop.f32.mrf.mxu0 }
 0xecf   :  { %7621 = vpow2.f32 %v6036_v49 }
 0xeda   :  { %v7620_v60 = vpop.eup %7619 }
 0xedb   :  { %v4386_v30 = vadd.f32 1.0, %v7620_v60 }
 0xedc   :  { %v7622_v48 = vpop.eup %7621 }
 0xedd   :  { %7623 = vrcp.f32 %v4386_v30  ;;  %v4393_v47 = vadd.f32 1.0, %v7622_v48  ;;  %v6045_v30 = vld [vmem:[%s10182_s1 + $0xa] sm:$0x3] }
 0xede   :  { %v10443_v48 = vld [vmem:[#allocation17_spill] sm:$0xff] }
 0xedf   :  { %7625 = vrcp.f32 %v4393_v47  ;;  %v10442_v47 = vld [vmem:[#allocation12_spill] sm:$0xff] }
 0xeea   :  { %v7624_v46 = vpop.eup %7623 }
 0xeeb   :  { %v4397_v52 = vmul.f32 %v7624_v46, %v4396_v50  ;;  %v10441_v50 = vld [vmem:[#allocation11_spill] sm:$0xff]  ;;  %v10446_v46 = vld [vmem:[#allocation18_spill] sm:$0xff] }
 0xeec   :  { %v7626_v61 = vpop.eup %7625 }
 0xeed   :  { %v4398_v11 = vadd.f32 %v4397_v52, %v4238_v55  ;;  %v4400_v1 = vsub.f32 1.0, %v7626_v61  ;;  %v4402_v49 = vmul.f32 %v7626_v61, %v9445_v10  ;;  %v10447_v55 = vld [vmem:[#allocation20_spill] sm:$0xff]  ;;  %v10448_v52 = vld [vmem:[#allocation21_spill] sm:$0xff]  ;;  %v10450_v61 = vld [vmem:[#allocation10_spill] sm:$0xff] }
 0xeef   :  { %7627 = vtanh.f32 %v4398_v11  ;;  %v10449_v11 = vld [vmem:[#allocation22_spill] sm:$0xff] }
 0xefc   :  { %v7628_v51 = vpop.eup %7627 }
 0xefd   :  { %v4401_v63 = vmul.f32 %v7628_v51, %v4400_v1  ;;  %v4475_v1 = vpop.f32.mrf.mxu1 }
 0xeff   :  { %v9639_v60 = vadd.f32 %v4402_v49, %v4401_v63  ;;  %v4477_v51 = vpop.f32.mrf.mxu1  ;;  %v4476_v63 = vadd.f32 %v4475_v1, %v10428_v41 }
 0xf01   :  { %4615 = vmatmul.mubr.f32.vlgmr.msra.gmra.mxu1 %v9639_v60  ;;  %7125 = vmatmul.mubr.f32.vlgmr.msra.gmra.mxu0 %v9639_v60 }
 0xf02   :  { %6047 = vmatpush1.msk.msra.mxu1 %vm77_vm1, %v9449_v24  ;;  %4782 = vmatprep.mubr.f32.mxu1 %v10311_v45 }
 0xf03   :  { %7128 = vmatpush3.msk.msra.mxu0 %vm77_vm1, %v9454_v62  ;;  %7129 = vmatprep.mubr.msk.f32.mxu0 %vm7812_vm0, %v10311_v45 }
 0xf04   :  { %4859 = vmatprep.subr.mxu1 %v9460_v43  ;;  %7132 = vmatprep.subr.mxu0 %v10311_v45 }
 0xf05   :  { %6048 = vmatmul.mubr.msk.f32.vlgmr.msra.gmra.mxu1 %vm73_vm2, %v6045_v30  ;;  %7130 = vmatmul.mubr.msk.f32.vlgmr.msra.gmra.mxu0 %vm73_vm2, %v6045_v30 }
 0xf06   :  { %4860 = vmatpush1.msra.mxu1 %v9471_v58  ;;  %7133 = vmatpush3.msra.mxu0 %v9474_v3 }
 0xf07   :  { %4861 = vmatprep.subr.mxu1 %v9477_v42  ;;  %7134 = vmatprep.subr.mxu0 %v10311_v45 }
 0xf08   :  { %4862 = vmatpush1.msra.mxu1 %v9481_v16  ;;  %7135 = vmatpush3.msra.mxu0 %v9484_v27 }
 0xf09   :  { %4863 = vmatprep.subr.mxu1 %v9487_v6  ;;  %7136 = vmatprep.subr.mxu0 %v10311_v45 }
 0xf0a   :  { %4864 = vmatpush1.msra.mxu1 %v9491_v25  ;;  %7137 = vmatpush3.msra.mxu0 %v9494_v4 }
 0xf0b   :  { %4865 = vmatprep.subr.mxu1 %v9497_v9  ;;  %7138 = vmatprep.subr.mxu0 %v10311_v45 }
 0xf0c   :  { %4866 = vmatpush1.msra.mxu1 %v9501_v26  ;;  %7139 = vmatpush3.msra.mxu0 %v9504_v12 }
 0xf0d   :  { %4867 = vmatprep.subr.mxu1 %v9507_v39  ;;  %7140 = vmatprep.subr.mxu0 %v10311_v45 }
 0xf0e   :  { %4868 = vmatpush1.msra.mxu1 %v9511_v5  ;;  %7141 = vmatpush3.msra.mxu0 %v9514_v15 }
 0xf0f   :  { %4869 = vmatprep.subr.mxu1 %v9517_v17  ;;  %7142 = vmatprep.subr.mxu0 %v10311_v45 }
 0xf10   :  { %4870 = vmatpush1.msra.mxu1 %v9521_v18  ;;  %7143 = vmatpush3.msra.mxu0 %v9524_v19 }
 0xf11   :  { %4871 = vmatprep.subr.mxu1 %v9527_v20  ;;  %7144 = vmatprep.subr.mxu0 %v10311_v45 }
 0xf12   :  { %4872 = vmatpush1.msra.mxu1 %v9531_v21  ;;  %7145 = vmatpush3.msra.mxu0 %v9534_v22 }
 0xf13   :  { %4873 = vmatprep.subr.mxu1 %v9537_v23  ;;  %7146 = vmatprep.subr.mxu0 %v10311_v45 }
 0xf14   :  { %4874 = vmatpush1.msra.mxu1 %v9541_v54  ;;  %7147 = vmatpush3.msra.mxu0 %v9544_v28 }
 0xf15   :  { %4875 = vmatprep.subr.mxu1 %v9547_v13  ;;  %7148 = vmatprep.subr.mxu0 %v10311_v45 }
 0xf16   :  { %4876 = vmatpush1.msra.mxu1 %v9551_v44  ;;  %7149 = vmatpush3.msra.mxu0 %v9554_v37 }
 0xf17   :  { %4877 = vmatprep.subr.mxu1 %v9557_v32  ;;  %7150 = vmatprep.subr.mxu0 %v10311_v45 }
 0xf18   :  { %4878 = vmatpush1.msra.mxu1 %v9561_v31  ;;  %7151 = vmatpush3.msra.mxu0 %v9564_v33 }
 0xf19   :  { %4879 = vmatprep.subr.mxu1 %v9567_v36  ;;  %7152 = vmatprep.subr.mxu0 %v10311_v45 }
 0xf1a   :  { %4880 = vmatpush1.msra.mxu1 %v9571_v40  ;;  %7153 = vmatpush3.msra.mxu0 %v9574_v57 }
 0xf1b   :  { %4881 = vmatprep.subr.mxu1 %v9577_v38  ;;  %7154 = vmatprep.subr.mxu0 %v10311_v45 }
 0xf1c   :  { %4882 = vmatpush1.msra.mxu1 %v9581_v35  ;;  %7155 = vmatpush3.msra.mxu0 %v9584_v34 }
 0xf1d   :  { %4883 = vmatprep.subr.mxu1 %v9587_v56  ;;  %7156 = vmatprep.subr.mxu0 %v10311_v45 }
 0xf1e   :  { %4884 = vmatpush1.msra.mxu1 %v9591_v29  ;;  %7157 = vmatpush3.msra.mxu0 %v10440_v7 }
 0xf1f   :  { %4885 = vmatprep.subr.mxu1 %v10441_v50  ;;  %7158 = vmatprep.subr.mxu0 %v10311_v45  ;;  %v9729_v50 = vld [vmem:[#allocation4 + $0x221] ss:$0 sm:$0xff] }
 0xf20   :  { %4886 = vmatpush1.msra.mxu1 %v10442_v47  ;;  %7159 = vmatpush3.msra.mxu0 %v10443_v48 }
 0xf21   :  { %4887 = vmatprep.subr.mxu1 %v10444_v0  ;;  %7160 = vmatprep.subr.mxu0 %v10311_v45 }
 0xf22   :  { %4888 = vmatpush1.msra.mxu1 %v10445_v53  ;;  %7161 = vmatpush3.msra.mxu0 %v10446_v46 }
 0xf23   :  { %4889 = vmatprep.subr.mxu1 %v10447_v55  ;;  %7162 = vmatprep.subr.mxu0 %v10311_v45 }
 0xf24   :  { %4890 = vmatpush1.msra.mxu1 %v10448_v52  ;;  %4923 = vmatprep.mubr.f32.mxu1 %v10311_v45 }
 0xf25   :  { %7163 = vmatpush3.msra.mxu0 %v10449_v11  ;;  %7164 = vmatprep.mubr.msk.f32.mxu0 %vm7812_vm0, %v10311_v45  ;;  %v4478_v11 = vadd.f32 %v4477_v51, %v9141_v2 }
 0xf26   :  { %6054 = vmatprep.subr.msk.mxu1 %vm77_vm1, %v10450_v61  ;;  %7167 = vmatprep.subr.mxu0 %v10311_v45 }
 0xfc1   :  { %v4616_v49 = vpop.f32.mrf.mxu1  ;;  %v4687_v14 = vpop.f32.mrf.mxu0 }
 0xfc2   :  { %v4691_v30 = vadd.f32 %v4616_v49, %v4476_v63  ;;  %v4705_v1 = vadd.f32 %v9729_v50, %v4687_v14  ;;  %v9858_v49 = vld [vmem:[#allocation4 + $0x178] sm:$0xff] }
 0xfc3   :  { %v7126_v10 = vpop.f32.mrf.mxu0  ;;  %v4618_v55 = vpop.f32.mrf.mxu1  ;;  %v9864_v14 = vld [vmem:[#allocation4 + $0x158] sm:$0xff] }
 0xfc4   :  { %v6043_v52 = vmul.f32 -1.442695, %v4691_v30  ;;  %v4698_v46 = vadd.f32 %v4618_v55, %v4478_v11  ;;  %v4547_v10 = vadd.f32 %v9652_v8, %v9149_v59  ;;  %v9870_v30 = vld [vmem:[#allocation4 + $0x138] sm:$0xff] }
 0xfc6   :  { %7629 = vpow2.f32 %v6043_v52  ;;  %v6044_v53 = vmul.f32 -1.442695, %v4698_v46 }
 0xfc8   :  { %7631 = vpow2.f32 %v6044_v53 }
 0xfd3   :  { %v7630_v0 = vpop.eup %7629 }
 0xfd4   :  { %v4695_v61 = vadd.f32 1.0, %v7630_v0 }
 0xfd5   :  { %v7632_v48 = vpop.eup %7631 }
 0xfd6   :  { %7633 = vrcp.f32 %v4695_v61  ;;  %v4702_v47 = vadd.f32 1.0, %v7632_v48  ;;  %v9852_v48 = vld [vmem:[#allocation4 + $0x198] sm:$0xff] }
 0xfd7   :  { %v9876_v61 = vld [vmem:[#allocation4 + $0x118] sm:$0xff] }
 0xfd8   :  { %7635 = vrcp.f32 %v4702_v47  ;;  %v6053_v47 = vld [vmem:[%s10182_s1 + $0xc] sm:$0x3] }
 0xfe3   :  { %v7634_v41 = vpop.eup %7633 }
 0xfe4   :  { %v4706_v63 = vmul.f32 %v7634_v41, %v4705_v1  ;;  %v9748_v41 = vpop.f32.mrf.mxu0  ;;  %v9882_v1 = vld [vmem:[#allocation4 + $0xf8] sm:$0xff] }
 0xfe5   :  { %v7636_v55 = vpop.eup %7635 }
 0xfe6   :  { %v4707_v51 = vadd.f32 %v4706_v63, %v4547_v10  ;;  %v4709_v46 = vsub.f32 1.0, %v7636_v55  ;;  %v4711_v0 = vmul.f32 %v7636_v55, %v9639_v60  ;;  %v7131_v8 = vpop.f32.mrf.mxu0  ;;  %v9888_v10 = vld [vmem:[#allocation4 + $0xd8] sm:$0xff] }
 0xfe7   :  { %v9894_v63 = vld [vmem:[#allocation4 + $0xb8] sm:$0xff] }
 0xfe8   :  { %7637 = vtanh.f32 %v4707_v51  ;;  %v9900_v51 = vld [vmem:[#allocation4 + $0x98] sm:$0xff] }
 0xfe9   :  { %v9906_v55 = vld [vmem:[#allocation4 + $0x78] sm:$0xff] }
 0xff5   :  { %v7638_v53 = vpop.eup %7637 }
 0xff6   :  { %v4710_v52 = vmul.f32 %v7638_v53, %v4709_v46  ;;  %v9912_v46 = vld [vmem:[#allocation4 + $0x58] sm:$0xff] }
 0xff7   :  { %v9918_v53 = vld [vmem:[#allocation4 + $0x38] sm:$0xff] }
 0xff8   :  { %v9735_v11 = vadd.f32 %v4711_v0, %v4710_v52  ;;  %v10461_v0 = vld [vmem:[#allocation23_spill] sm:$0xff] }
 0xffa   :  { %4924 = vmatmul.mubr.f32.vlgmr.msra.gmra.mxu1 %v9735_v11  ;;  %7165 = vmatmul.mubr.f32.vlgmr.msra.gmra.mxu0 %v9735_v11 }
 0xffb   :  { %6055 = vmatpush1.msk.msra.mxu1 %vm77_vm1, %v9449_v24  ;;  %5091 = vmatprep.mubr.f32.mxu1 %v10311_v45  ;;  %v10451_v24 = vld [vmem:[#allocation11_spill] sm:$0xff] }
 0xffc   :  { %7168 = vmatpush3.msk.msra.mxu0 %vm77_vm1, %v9454_v62  ;;  %7169 = vmatprep.mubr.msk.f32.mxu0 %vm7812_vm0, %v10311_v45  ;;  %v10452_v62 = vld [vmem:[#allocation12_spill] sm:$0xff] }
 0xffd   :  { %5168 = vmatprep.subr.mxu1 %v9460_v43  ;;  %7172 = vmatprep.subr.mxu0 %v10311_v45  ;;  %v10453_v43 = vld [vmem:[#allocation17_spill] sm:$0xff] }
 0xffe   :  { %6056 = vmatmul.mubr.msk.f32.vlgmr.msra.gmra.mxu1 %vm73_vm2, %v6053_v47  ;;  %7170 = vmatmul.mubr.msk.f32.vlgmr.msra.gmra.mxu0 %vm73_vm2, %v6053_v47  ;;  %v10463_v47 = vld [vmem:[#allocation9_spill] sm:$0xff] }
 0xfff   :  { %5169 = vmatpush1.msra.mxu1 %v9471_v58  ;;  %7173 = vmatpush3.msra.mxu0 %v9474_v3  ;;  %v10454_v58 = vld [vmem:[#allocation13_spill] sm:$0xff]  ;;  %v10455_v3 = vld [vmem:[#allocation14_spill] sm:$0xff] }
0x1000   :  { %5170 = vmatprep.subr.mxu1 %v9477_v42  ;;  %7174 = vmatprep.subr.mxu0 %v10311_v45  ;;  %v10456_v42 = vld [vmem:[#allocation18_spill] sm:$0xff] }
0x1001   :  { %5171 = vmatpush1.msra.mxu1 %v9481_v16  ;;  %7175 = vmatpush3.msra.mxu0 %v9484_v27  ;;  %v10457_v16 = vld [vmem:[#allocation20_spill] sm:$0xff]  ;;  %v10458_v27 = vld [vmem:[#allocation21_spill] sm:$0xff] }
0x1002   :  { %5172 = vmatprep.subr.mxu1 %v9487_v6  ;;  %7176 = vmatprep.subr.mxu0 %v10311_v45  ;;  %v10459_v6 = vld [vmem:[#allocation22_spill] sm:$0xff] }
0x1003   :  { %5173 = vmatpush1.msra.mxu1 %v9491_v25  ;;  %7177 = vmatpush3.msra.mxu0 %v9494_v4  ;;  %v4784_v25 = vpop.f32.mrf.mxu1 }
0x1004   :  { %5174 = vmatprep.subr.mxu1 %v9497_v9  ;;  %7178 = vmatprep.subr.mxu0 %v10311_v45  ;;  %v10460_v9 = vld [vmem:[#allocation19_spill] sm:$0xff] }
0x1005   :  { %5175 = vmatpush1.msra.mxu1 %v9501_v26  ;;  %7179 = vmatpush3.msra.mxu0 %v9504_v12  ;;  %v4786_v4 = vpop.f32.mrf.mxu1  ;;  %v4785_v26 = vadd.f32 %v4784_v25, %v10460_v9 }
0x1006   :  { %5176 = vmatprep.subr.mxu1 %v9507_v39  ;;  %7180 = vmatprep.subr.mxu0 %v10311_v45 }
0x1007   :  { %5177 = vmatpush1.msra.mxu1 %v9511_v5  ;;  %7181 = vmatpush3.msra.mxu0 %v9514_v15 }
0x1008   :  { %5178 = vmatprep.subr.mxu1 %v9517_v17  ;;  %7182 = vmatprep.subr.mxu0 %v10311_v45 }
0x1009   :  { %5179 = vmatpush1.msra.mxu1 %v9521_v18  ;;  %7183 = vmatpush3.msra.mxu0 %v9524_v19  ;;  %v4787_v19 = vadd.f32 %v4786_v4, %v9141_v2 }
0x100a   :  { %5180 = vmatprep.subr.mxu1 %v9527_v20  ;;  %7184 = vmatprep.subr.mxu0 %v10311_v45 }
0x100b   :  { %5181 = vmatpush1.msra.mxu1 %v9531_v21  ;;  %7185 = vmatpush3.msra.mxu0 %v9534_v22 }
0x100c   :  { %5182 = vmatprep.subr.mxu1 %v9537_v23  ;;  %7186 = vmatprep.subr.mxu0 %v10311_v45 }
0x100d   :  { %5183 = vmatpush1.msra.mxu1 %v9541_v54  ;;  %7187 = vmatpush3.msra.mxu0 %v9544_v28 }
0x100e   :  { %5184 = vmatprep.subr.mxu1 %v9547_v13  ;;  %7188 = vmatprep.subr.mxu0 %v10311_v45 }
0x100f   :  { %5185 = vmatpush1.msra.mxu1 %v9551_v44  ;;  %7189 = vmatpush3.msra.mxu0 %v9554_v37  ;;  %v4856_v37 = vadd.f32 %v9748_v41, %v9149_v59  ;;  %v10462_v41 = vld [vmem:[#allocation8_spill] sm:$0xff] }
0x1010   :  { %5186 = vmatprep.subr.mxu1 %v9557_v32  ;;  %7190 = vmatprep.subr.mxu0 %v10311_v45 }
0x1011   :  { %5187 = vmatpush1.msra.mxu1 %v9561_v31  ;;  %7191 = vmatpush3.msra.mxu0 %v9564_v33 }
0x1012   :  { %5188 = vmatprep.subr.mxu1 %v9567_v36  ;;  %7192 = vmatprep.subr.mxu0 %v10311_v45 }
0x1013   :  { %5189 = vmatpush1.msra.mxu1 %v9571_v40  ;;  %7193 = vmatpush3.msra.mxu0 %v9574_v57 }
0x1014   :  { %5190 = vmatprep.subr.mxu1 %v9577_v38  ;;  %7194 = vmatprep.subr.mxu0 %v10311_v45 }
0x1015   :  { %5191 = vmatpush1.msra.mxu1 %v9581_v35  ;;  %7195 = vmatpush3.msra.mxu0 %v9584_v34  ;;  %v9830_v34 = vld [vmem:[#allocation4 + $0x218] sm:$0xff] }
0x1016   :  { %5192 = vmatprep.subr.mxu1 %v9587_v56  ;;  %7196 = vmatprep.subr.mxu0 %v10311_v45  ;;  %v9834_v56 = vld [vmem:[#allocation4 + $0x1f8] sm:$0xff] }
0x1017   :  { %5193 = vmatpush1.msra.mxu1 %v9591_v29  ;;  %7197 = vmatpush3.msra.mxu0 %v10440_v7  ;;  %v9840_v29 = vld [vmem:[#allocation4 + $0x1d8] sm:$0xff] }
0x1018   :  { %5194 = vmatprep.subr.mxu1 %v10451_v24  ;;  %7198 = vmatprep.subr.mxu0 %v10311_v45  ;;  %v9846_v7 = vld [vmem:[#allocation4 + $0x1b8] sm:$0xff]  ;;  %v10464_v24 = vld [vmem:[#allocation16_spill] sm:$0xff] }
0x1019   :  { %5195 = vmatpush1.msra.mxu1 %v10452_v62  ;;  %7199 = vmatpush3.msra.mxu0 %v10453_v43 }
0x101a   :  { %5196 = vmatprep.subr.mxu1 %v10454_v58  ;;  %7200 = vmatprep.subr.mxu0 %v10311_v45 }
0x101b   :  { %5197 = vmatpush1.msra.mxu1 %v10455_v3  ;;  %7201 = vmatpush3.msra.mxu0 %v10456_v42 }
0x101c   :  { %5198 = vmatprep.subr.mxu1 %v10457_v16  ;;  %7202 = vmatprep.subr.mxu0 %v10311_v45 }
0x101d   :  { %5199 = vmatpush1.msra.mxu1 %v10458_v27  ;;  %7203 = vmatpush3.msra.mxu0 %v10459_v6 }
0x101e   :  { %5232 = vmatprep.mubr.f32.mxu1 %v10311_v45  ;;  %7204 = vmatprep.mubr.msk.f32.mxu0 %vm7812_vm0, %v10311_v45 }
0x101f   :  { %7207 = vmatprep.subr.mxu1 %v10311_v45  ;;  %7242 = vmatprep.subr.mxu0 %v10311_v45 }
0x10ba   :  { %v4925_v12 = vpop.f32.mrf.mxu1  ;;  %v4996_v39 = vpop.f32.mrf.mxu0 }
0x10bb   :  { %v5000_v5 = vadd.f32 %v4925_v12, %v4785_v26  ;;  %v5014_v13 = vadd.f32 %v9729_v50, %v4996_v39 }
0x10bc   :  { %v7166_v15 = vpop.f32.mrf.mxu0  ;;  %v4927_v18 = vpop.f32.mrf.mxu1 }
0x10bd   :  { %v6051_v17 = vmul.f32 -1.442695, %v5000_v5  ;;  %v5007_v20 = vadd.f32 %v4927_v18, %v4787_v19  ;;  %v5347_v5 = vld [vmem:[#allocation4 + $0x222] ss:$0 sm:$0xff] }
0x10be   :  { %v9927_v52 = vpop.f32.mrf.mxu0 }
0x10bf   :  { %7639 = vpow2.f32 %v6051_v17  ;;  %v6052_v21 = vmul.f32 -1.442695, %v5007_v20 }
0x10c0   :  { %v7171_v8 = vpop.f32.mrf.mxu0 }
0x10c1   :  { %7641 = vpow2.f32 %v6052_v21 }
0x10cc   :  { %v7640_v22 = vpop.eup %7639 }
0x10cd   :  { %v5004_v23 = vadd.f32 1.0, %v7640_v22 }
0x10ce   :  { %v7642_v54 = vpop.eup %7641 }
0x10cf   :  { %7643 = vrcp.f32 %v5004_v23  ;;  %v5011_v28 = vadd.f32 1.0, %v7642_v54 }
0x10d1   :  { %7645 = vrcp.f32 %v5011_v28 }
0x10dc   :  { %v7644_v44 = vpop.eup %7643 }
0x10dd   :  { %v5015_v32 = vmul.f32 %v7644_v44, %v5014_v13 }
0x10de   :  { %v7646_v33 = vpop.eup %7645 }
0x10df   :  { %v5016_v31 = vadd.f32 %v5015_v32, %v4856_v37  ;;  %v5018_v36 = vsub.f32 1.0, %v7646_v33  ;;  %v5020_v38 = vmul.f32 %v7646_v33, %v9735_v11 }
0x10e1   :  { %7647 = vtanh.f32 %v5016_v31 }
0x10ee   :  { %v7648_v40 = vpop.eup %7647 }
0x10ef   :  { %v5019_v57 = vmul.f32 %v7648_v40, %v5018_v36 }
0x10f1   :  { %v9828_v35 = vadd.f32 %v5020_v38, %v5019_v57 }
0x10f3   :  { %5233 = vmatmul.mubr.f32.vlgmr.msra.gmra.mxu1 %v9828_v35  ;;  %7205 = vmatmul.mubr.f32.vlgmr.msra.gmra.mxu0 %v9828_v35 }
0x10f4   :  { %7208 = vmatpush3.msra.mxu1 %v9830_v34  ;;  %7243 = vmatpush3.msra.mxu0 %v9830_v34 }
0x10f5   :  { %7209 = vmatprep.subr.mxu1 %v10311_v45  ;;  %7244 = vmatprep.subr.mxu0 %v10311_v45 }
0x10f6   :  { %7210 = vmatpush3.msra.mxu1 %v9834_v56  ;;  %7245 = vmatpush3.msra.mxu0 %v9834_v56 }
0x10f7   :  { %7211 = vmatprep.subr.mxu1 %v10311_v45  ;;  %7246 = vmatprep.subr.mxu0 %v10311_v45 }
0x10f8   :  { %7212 = vmatpush3.msra.mxu1 %v9840_v29  ;;  %7247 = vmatpush3.msra.mxu0 %v9840_v29 }
0x10f9   :  { %7213 = vmatprep.subr.mxu1 %v10311_v45  ;;  %7248 = vmatprep.subr.mxu0 %v10311_v45 }
0x10fa   :  { %7214 = vmatpush3.msra.mxu1 %v9846_v7  ;;  %7249 = vmatpush3.msra.mxu0 %v9846_v7 }
0x10fb   :  { %7215 = vmatprep.subr.mxu1 %v10311_v45  ;;  %7250 = vmatprep.subr.mxu0 %v10311_v45 }
0x10fc   :  { %7216 = vmatpush3.msra.mxu1 %v9852_v48  ;;  %7251 = vmatpush3.msra.mxu0 %v9852_v48 }
0x10fd   :  { %7217 = vmatprep.subr.mxu1 %v10311_v45  ;;  %7252 = vmatprep.subr.mxu0 %v10311_v45 }
0x10fe   :  { %7218 = vmatpush3.msra.mxu1 %v9858_v49  ;;  %7253 = vmatpush3.msra.mxu0 %v9858_v49 }
0x10ff   :  { %7219 = vmatprep.subr.mxu1 %v10311_v45  ;;  %7254 = vmatprep.subr.mxu0 %v10311_v45 }
0x1100   :  { %7220 = vmatpush3.msra.mxu1 %v9864_v14  ;;  %7255 = vmatpush3.msra.mxu0 %v9864_v14 }
0x1101   :  { %7221 = vmatprep.subr.mxu1 %v10311_v45  ;;  %7256 = vmatprep.subr.mxu0 %v10311_v45 }
0x1102   :  { %7222 = vmatpush3.msra.mxu1 %v9870_v30  ;;  %7257 = vmatpush3.msra.mxu0 %v9870_v30 }
0x1103   :  { %7223 = vmatprep.subr.mxu1 %v10311_v45  ;;  %7258 = vmatprep.subr.mxu0 %v10311_v45 }
0x1104   :  { %7224 = vmatpush3.msra.mxu1 %v9876_v61  ;;  %7259 = vmatpush3.msra.mxu0 %v9876_v61 }
0x1105   :  { %7225 = vmatprep.subr.mxu1 %v10311_v45  ;;  %7260 = vmatprep.subr.mxu0 %v10311_v45 }
0x1106   :  { %7226 = vmatpush3.msra.mxu1 %v9882_v1  ;;  %7261 = vmatpush3.msra.mxu0 %v9882_v1 }
0x1107   :  { %7227 = vmatprep.subr.mxu1 %v10311_v45  ;;  %7262 = vmatprep.subr.mxu0 %v10311_v45 }
0x1108   :  { %7228 = vmatpush3.msra.mxu1 %v9888_v10  ;;  %7263 = vmatpush3.msra.mxu0 %v9888_v10 }
0x1109   :  { %7229 = vmatprep.subr.mxu1 %v10311_v45  ;;  %7264 = vmatprep.subr.mxu0 %v10311_v45 }
0x110a   :  { %7230 = vmatpush3.msra.mxu1 %v9894_v63  ;;  %7265 = vmatpush3.msra.mxu0 %v9894_v63 }
0x110b   :  { %7231 = vmatprep.subr.mxu1 %v10311_v45  ;;  %7266 = vmatprep.subr.mxu0 %v10311_v45 }
0x110c   :  { %7232 = vmatpush3.msra.mxu1 %v9900_v51  ;;  %7267 = vmatpush3.msra.mxu0 %v9900_v51 }
0x110d   :  { %7233 = vmatprep.subr.mxu1 %v10311_v45  ;;  %7268 = vmatprep.subr.mxu0 %v10311_v45 }
0x110e   :  { %7234 = vmatpush3.msra.mxu1 %v9906_v55  ;;  %7269 = vmatpush3.msra.mxu0 %v9906_v55 }
0x110f   :  { %7235 = vmatprep.subr.mxu1 %v10311_v45  ;;  %7270 = vmatprep.subr.mxu0 %v10311_v45 }
0x1110   :  { %7236 = vmatpush3.msra.mxu1 %v9912_v46  ;;  %7271 = vmatpush3.msra.mxu0 %v9912_v46 }
0x1111   :  { %7237 = vmatprep.subr.mxu1 %v10311_v45  ;;  %7272 = vmatprep.subr.mxu0 %v10311_v45 }
0x1112   :  { %7238 = vmatpush3.msra.mxu1 %v9918_v53  ;;  %7239 = vmatprep.mubr.msk.f32.mxu1 %vm7812_vm0, %v10311_v45 }
0x1113   :  { %7273 = vmatpush3.msra.mxu0 %v9918_v53  ;;  %7274 = vmatprep.mubr.msk.f32.mxu0 %vm7812_vm0, %v10311_v45 }
0x1114   :  { %7240 = vmatmul.mubr.f32.vlgmr.msra.gmra.mxu1 %v10461_v0  ;;  %7275 = vmatmul.mubr.f32.vlgmr.msra.gmra.mxu0 %v10462_v41 }
0x1115   :  { %7277 = vmatprep.subr.mxu1 %v10311_v45  ;;  %7312 = vmatprep.subr.mxu0 %v10311_v45 }
0x1116   :  { %7278 = vmatpush3.msra.mxu1 %v9830_v34  ;;  %7313 = vmatpush3.msra.mxu0 %v9830_v34 }
0x1117   :  { %7279 = vmatprep.subr.mxu1 %v10311_v45  ;;  %7314 = vmatprep.subr.mxu0 %v10311_v45 }
0x1118   :  { %7280 = vmatpush3.msra.mxu1 %v9834_v56  ;;  %7315 = vmatpush3.msra.mxu0 %v9834_v56 }
0x1119   :  { %7281 = vmatprep.subr.mxu1 %v10311_v45  ;;  %7316 = vmatprep.subr.mxu0 %v10311_v45 }
0x111a   :  { %7282 = vmatpush3.msra.mxu1 %v9840_v29  ;;  %7317 = vmatpush3.msra.mxu0 %v9840_v29 }
0x111b   :  { %7283 = vmatprep.subr.mxu1 %v10311_v45  ;;  %7318 = vmatprep.subr.mxu0 %v10311_v45 }
0x111c   :  { %7284 = vmatpush3.msra.mxu1 %v9846_v7  ;;  %7319 = vmatpush3.msra.mxu0 %v9846_v7 }
0x111d   :  { %7285 = vmatprep.subr.mxu1 %v10311_v45  ;;  %7320 = vmatprep.subr.mxu0 %v10311_v45 }
0x111e   :  { %7286 = vmatpush3.msra.mxu1 %v9852_v48  ;;  %7321 = vmatpush3.msra.mxu0 %v9852_v48 }
0x111f   :  { %7287 = vmatprep.subr.mxu1 %v10311_v45  ;;  %7322 = vmatprep.subr.mxu0 %v10311_v45 }
0x1120   :  { %7288 = vmatpush3.msra.mxu1 %v9858_v49  ;;  %7323 = vmatpush3.msra.mxu0 %v9858_v49 }
0x1121   :  { %7289 = vmatprep.subr.mxu1 %v10311_v45  ;;  %7324 = vmatprep.subr.mxu0 %v10311_v45 }
0x1122   :  { %7290 = vmatpush3.msra.mxu1 %v9864_v14  ;;  %7325 = vmatpush3.msra.mxu0 %v9864_v14 }
0x1123   :  { %7291 = vmatprep.subr.mxu1 %v10311_v45  ;;  %7326 = vmatprep.subr.mxu0 %v10311_v45 }
0x1124   :  { %7292 = vmatpush3.msra.mxu1 %v9870_v30  ;;  %7327 = vmatpush3.msra.mxu0 %v9870_v30 }
0x1125   :  { %7293 = vmatprep.subr.mxu1 %v10311_v45  ;;  %7328 = vmatprep.subr.mxu0 %v10311_v45 }
0x1126   :  { %7294 = vmatpush3.msra.mxu1 %v9876_v61  ;;  %7329 = vmatpush3.msra.mxu0 %v9876_v61 }
0x1127   :  { %7295 = vmatprep.subr.mxu1 %v10311_v45  ;;  %7330 = vmatprep.subr.mxu0 %v10311_v45 }
0x1128   :  { %7296 = vmatpush3.msra.mxu1 %v9882_v1  ;;  %7331 = vmatpush3.msra.mxu0 %v9882_v1 }
0x1129   :  { %7297 = vmatprep.subr.mxu1 %v10311_v45  ;;  %7332 = vmatprep.subr.mxu0 %v10311_v45 }
0x112a   :  { %7298 = vmatpush3.msra.mxu1 %v9888_v10  ;;  %7333 = vmatpush3.msra.mxu0 %v9888_v10 }
0x112b   :  { %7299 = vmatprep.subr.mxu1 %v10311_v45  ;;  %7334 = vmatprep.subr.mxu0 %v10311_v45 }
0x112c   :  { %7300 = vmatpush3.msra.mxu1 %v9894_v63  ;;  %7335 = vmatpush3.msra.mxu0 %v9894_v63 }
0x112d   :  { %7301 = vmatprep.subr.mxu1 %v10311_v45  ;;  %7336 = vmatprep.subr.mxu0 %v10311_v45 }
0x112e   :  { %7302 = vmatpush3.msra.mxu1 %v9900_v51  ;;  %7337 = vmatpush3.msra.mxu0 %v9900_v51 }
0x112f   :  { %7303 = vmatprep.subr.mxu1 %v10311_v45  ;;  %7338 = vmatprep.subr.mxu0 %v10311_v45 }
0x1130   :  { %7304 = vmatpush3.msra.mxu1 %v9906_v55  ;;  %7339 = vmatpush3.msra.mxu0 %v9906_v55 }
0x1131   :  { %7305 = vmatprep.subr.mxu1 %v10311_v45  ;;  %7340 = vmatprep.subr.mxu0 %v10311_v45 }
0x1132   :  { %7306 = vmatpush3.msra.mxu1 %v9912_v46  ;;  %7341 = vmatpush3.msra.mxu0 %v9912_v46 }
0x1133   :  { %7307 = vmatprep.subr.mxu1 %v10311_v45  ;;  %7342 = vmatprep.subr.mxu0 %v10311_v45 }
0x1134   :  { %7308 = vmatpush3.msra.mxu1 %v9918_v53  ;;  %7309 = vmatprep.mubr.msk.f32.mxu1 %vm7812_vm0, %v10311_v45 }
0x1135   :  { %7343 = vmatpush3.msra.mxu0 %v9918_v53  ;;  %7344 = vmatprep.mubr.msk.f32.mxu0 %vm7812_vm0, %v10311_v45 }
0x1136   :  { %7310 = vmatmul.mubr.f32.vlgmr.msra.gmra.mxu1 %v10463_v47  ;;  %7345 = vmatmul.mubr.f32.vlgmr.msra.gmra.mxu0 %v10464_v24 }
0x1137   :  { %7347 = vmatprep.subr.mxu1 %v10311_v45  ;;  %7382 = vmatprep.subr.mxu0 %v10311_v45 }
0x1138   :  { %7348 = vmatpush3.msra.mxu1 %v9830_v34  ;;  %7383 = vmatpush3.msra.mxu0 %v9830_v34 }
0x1139   :  { %7349 = vmatprep.subr.mxu1 %v10311_v45  ;;  %7384 = vmatprep.subr.mxu0 %v10311_v45 }
0x113a   :  { %7350 = vmatpush3.msra.mxu1 %v9834_v56  ;;  %7385 = vmatpush3.msra.mxu0 %v9834_v56 }
0x113b   :  { %7351 = vmatprep.subr.mxu1 %v10311_v45  ;;  %7386 = vmatprep.subr.mxu0 %v10311_v45 }
0x113c   :  { %7352 = vmatpush3.msra.mxu1 %v9840_v29  ;;  %7387 = vmatpush3.msra.mxu0 %v9840_v29 }
0x113d   :  { %7353 = vmatprep.subr.mxu1 %v10311_v45  ;;  %7388 = vmatprep.subr.mxu0 %v10311_v45 }
0x113e   :  { %7354 = vmatpush3.msra.mxu1 %v9846_v7  ;;  %7389 = vmatpush3.msra.mxu0 %v9846_v7 }
0x113f   :  { %7355 = vmatprep.subr.mxu1 %v10311_v45  ;;  %7390 = vmatprep.subr.mxu0 %v10311_v45 }
0x1140   :  { %7356 = vmatpush3.msra.mxu1 %v9852_v48  ;;  %7391 = vmatpush3.msra.mxu0 %v9852_v48 }
0x1141   :  { %7357 = vmatprep.subr.mxu1 %v10311_v45  ;;  %7392 = vmatprep.subr.mxu0 %v10311_v45 }
0x1142   :  { %7358 = vmatpush3.msra.mxu1 %v9858_v49  ;;  %7393 = vmatpush3.msra.mxu0 %v9858_v49 }
0x1143   :  { %7359 = vmatprep.subr.mxu1 %v10311_v45  ;;  %7394 = vmatprep.subr.mxu0 %v10311_v45 }
0x1144   :  { %7360 = vmatpush3.msra.mxu1 %v9864_v14  ;;  %7395 = vmatpush3.msra.mxu0 %v9864_v14 }
0x1145   :  { %7361 = vmatprep.subr.mxu1 %v10311_v45  ;;  %7396 = vmatprep.subr.mxu0 %v10311_v45 }
0x1146   :  { %7362 = vmatpush3.msra.mxu1 %v9870_v30  ;;  %7397 = vmatpush3.msra.mxu0 %v9870_v30 }
0x1147   :  { %7363 = vmatprep.subr.mxu1 %v10311_v45  ;;  %7398 = vmatprep.subr.mxu0 %v10311_v45 }
0x1148   :  { %7364 = vmatpush3.msra.mxu1 %v9876_v61  ;;  %7399 = vmatpush3.msra.mxu0 %v9876_v61 }
0x1149   :  { %7365 = vmatprep.subr.mxu1 %v10311_v45  ;;  %7400 = vmatprep.subr.mxu0 %v10311_v45 }
0x114a   :  { %7366 = vmatpush3.msra.mxu1 %v9882_v1  ;;  %7401 = vmatpush3.msra.mxu0 %v9882_v1 }
0x114b   :  { %7367 = vmatprep.subr.mxu1 %v10311_v45  ;;  %7402 = vmatprep.subr.mxu0 %v10311_v45 }
0x114c   :  { %7368 = vmatpush3.msra.mxu1 %v9888_v10  ;;  %7403 = vmatpush3.msra.mxu0 %v9888_v10 }
0x114d   :  { %7369 = vmatprep.subr.mxu1 %v10311_v45  ;;  %7404 = vmatprep.subr.mxu0 %v10311_v45 }
0x114e   :  { %7370 = vmatpush3.msra.mxu1 %v9894_v63  ;;  %7405 = vmatpush3.msra.mxu0 %v9894_v63 }
0x114f   :  { %7371 = vmatprep.subr.mxu1 %v10311_v45  ;;  %7406 = vmatprep.subr.mxu0 %v10311_v45 }
0x1150   :  { %7372 = vmatpush3.msra.mxu1 %v9900_v51  ;;  %7407 = vmatpush3.msra.mxu0 %v9900_v51 }
0x1151   :  { %7373 = vmatprep.subr.mxu1 %v10311_v45  ;;  %7408 = vmatprep.subr.mxu0 %v10311_v45 }
0x1152   :  { %7374 = vmatpush3.msra.mxu1 %v9906_v55  ;;  %7409 = vmatpush3.msra.mxu0 %v9906_v55 }
0x1153   :  { %7375 = vmatprep.subr.mxu1 %v10311_v45  ;;  %7410 = vmatprep.subr.mxu0 %v10311_v45 }
0x1154   :  { %7376 = vmatpush3.msra.mxu1 %v9912_v46  ;;  %7411 = vmatpush3.msra.mxu0 %v9912_v46 }
0x1155   :  { %7377 = vmatprep.subr.mxu1 %v10311_v45  ;;  %7412 = vmatprep.subr.mxu0 %v10311_v45 }
0x1156   :  { %7378 = vmatpush3.msra.mxu1 %v9918_v53  ;;  %7379 = vmatprep.mubr.msk.f32.mxu1 %vm7812_vm0, %v10311_v45 }
0x1157   :  { %7413 = vmatpush3.msra.mxu0 %v9918_v53  ;;  %7414 = vmatprep.mubr.msk.f32.mxu0 %vm7812_vm0, %v10311_v45 }
0x1158   :  { %7380 = vmatmul.mubr.f32.vlgmr.msra.gmra.mxu1 %v9639_v60  ;;  %7415 = vmatmul.mubr.f32.vlgmr.msra.gmra.mxu0 %v9735_v11  ;;  %v5093_v60 = vpop.f32.mrf.mxu1 }
0x1159   :  { %7417 = vmatprep.subr.mxu1 %v10311_v45  ;;  %7449 = vmatprep.mubr.msk.f32.mxu1 %vm7812_vm0, %v10311_v45  ;;  %v5094_v62 = vadd.f32 %v5093_v60, %v10460_v9 }
0x115a   :  { %7418 = vmatpush3.msra.mxu1 %v9830_v34  ;;  %7452 = vmatprep.subr.mxu0 %v10311_v45  ;;  %v5095_v11 = vpop.f32.mrf.mxu1 }
0x115b   :  { %7419 = vmatprep.subr.mxu1 %v10311_v45  ;;  %7453 = vmatpush3.msra.mxu0 %v9830_v34  ;;  %v5096_v6 = vadd.f32 %v5095_v11, %v9141_v2  ;;  %v5165_v2 = vadd.f32 %v9927_v52, %v9149_v59 }
0x115c   :  { %7420 = vmatpush3.msra.mxu1 %v9834_v56  ;;  %7454 = vmatprep.subr.mxu0 %v10311_v45 }
0x115d   :  { %7421 = vmatprep.subr.mxu1 %v10311_v45  ;;  %7455 = vmatpush3.msra.mxu0 %v9834_v56 }
0x115e   :  { %7422 = vmatpush3.msra.mxu1 %v9840_v29  ;;  %7456 = vmatprep.subr.mxu0 %v10311_v45 }
0x115f   :  { %7423 = vmatprep.subr.mxu1 %v10311_v45  ;;  %7457 = vmatpush3.msra.mxu0 %v9840_v29 }
0x1160   :  { %7424 = vmatpush3.msra.mxu1 %v9846_v7  ;;  %7458 = vmatprep.subr.mxu0 %v10311_v45 }
0x1161   :  { %7425 = vmatprep.subr.mxu1 %v10311_v45  ;;  %7459 = vmatpush3.msra.mxu0 %v9846_v7 }
0x1162   :  { %7426 = vmatpush3.msra.mxu1 %v9852_v48  ;;  %7460 = vmatprep.subr.mxu0 %v10311_v45 }
0x1163   :  { %7427 = vmatprep.subr.mxu1 %v10311_v45  ;;  %7461 = vmatpush3.msra.mxu0 %v9852_v48 }
0x1164   :  { %7428 = vmatpush3.msra.mxu1 %v9858_v49  ;;  %7462 = vmatprep.subr.mxu0 %v10311_v45 }
0x1165   :  { %7429 = vmatprep.subr.mxu1 %v10311_v45  ;;  %7463 = vmatpush3.msra.mxu0 %v9858_v49 }
0x1166   :  { %7430 = vmatpush3.msra.mxu1 %v9864_v14  ;;  %7464 = vmatprep.subr.mxu0 %v10311_v45 }
0x1167   :  { %7431 = vmatprep.subr.mxu1 %v10311_v45  ;;  %7465 = vmatpush3.msra.mxu0 %v9864_v14 }
0x1168   :  { %7432 = vmatpush3.msra.mxu1 %v9870_v30  ;;  %7466 = vmatprep.subr.mxu0 %v10311_v45 }
0x1169   :  { %7433 = vmatprep.subr.mxu1 %v10311_v45  ;;  %7467 = vmatpush3.msra.mxu0 %v9870_v30 }
0x116a   :  { %7434 = vmatpush3.msra.mxu1 %v9876_v61  ;;  %7468 = vmatprep.subr.mxu0 %v10311_v45 }
0x116b   :  { %7435 = vmatprep.subr.mxu1 %v10311_v45  ;;  %7469 = vmatpush3.msra.mxu0 %v9876_v61 }
0x116c   :  { %7436 = vmatpush3.msra.mxu1 %v9882_v1  ;;  %7470 = vmatprep.subr.mxu0 %v10311_v45 }
0x116d   :  { %7437 = vmatprep.subr.mxu1 %v10311_v45  ;;  %7471 = vmatpush3.msra.mxu0 %v9882_v1 }
0x116e   :  { %7438 = vmatpush3.msra.mxu1 %v9888_v10  ;;  %7472 = vmatprep.subr.mxu0 %v10311_v45 }
0x116f   :  { %7439 = vmatprep.subr.mxu1 %v10311_v45  ;;  %7473 = vmatpush3.msra.mxu0 %v9888_v10 }
0x1170   :  { %7440 = vmatpush3.msra.mxu1 %v9894_v63  ;;  %7474 = vmatprep.subr.mxu0 %v10311_v45 }
0x1171   :  { %7441 = vmatprep.subr.mxu1 %v10311_v45  ;;  %7475 = vmatpush3.msra.mxu0 %v9894_v63 }
0x1172   :  { %7442 = vmatpush3.msra.mxu1 %v9900_v51  ;;  %7476 = vmatprep.subr.mxu0 %v10311_v45 }
0x1173   :  { %7443 = vmatprep.subr.mxu1 %v10311_v45  ;;  %7477 = vmatpush3.msra.mxu0 %v9900_v51 }
0x1174   :  { %7444 = vmatpush3.msra.mxu1 %v9906_v55  ;;  %7478 = vmatprep.subr.mxu0 %v10311_v45 }
0x1175   :  { %7445 = vmatprep.subr.mxu1 %v10311_v45  ;;  %7479 = vmatpush3.msra.mxu0 %v9906_v55 }
0x1176   :  { %7446 = vmatpush3.msra.mxu1 %v9912_v46  ;;  %7480 = vmatprep.subr.mxu0 %v10311_v45 }
0x1177   :  { %7447 = vmatprep.subr.mxu1 %v10311_v45  ;;  %7481 = vmatpush3.msra.mxu0 %v9912_v46 }
0x1178   :  { %7448 = vmatpush3.msra.mxu1 %v9918_v53  ;;  %7482 = vmatprep.subr.mxu0 %v10311_v45 }
0x1179   :  { %7450 = vmatmul.mubr.f32.vlgmr.msra.gmra.mxu1 %v9828_v35  ;;  %7483 = vmatpush3.msra.mxu0 %v9918_v53 }
0x117a   :  { %7484 = vmatprep.mubr.msk.f32.mxu0 %vm7812_vm0, %v10311_v45 }
0x11b3   :  { %v5234_v43 = vpop.f32.mrf.mxu1  ;;  %v5305_v58 = vpop.f32.mrf.mxu0 }
0x11b4   :  { %v5309_v3 = vadd.f32 %v5234_v43, %v5094_v62  ;;  %v5323_v9 = vadd.f32 %v9729_v50, %v5305_v58 }
0x11b5   :  { %v7206_v42 = vpop.f32.mrf.mxu0  ;;  %v5236_v27 = vpop.f32.mrf.mxu1 }
0x11b6   :  { %v6059_v16 = vmul.f32 -1.442695, %v5309_v3  ;;  %v5316_v25 = vadd.f32 %v5236_v27, %v5096_v6 }
0x11b8   :  { %7649 = vpow2.f32 %v6059_v16  ;;  %v6060_v4 = vmul.f32 -1.442695, %v5316_v25 }
0x11ba   :  { %7651 = vpow2.f32 %v6060_v4 }
0x11c5   :  { %v7650_v26 = vpop.eup %7649 }
0x11c6   :  { %v5313_v12 = vadd.f32 1.0, %v7650_v26 }
0x11c7   :  { %v7652_v45 = vpop.eup %7651 }
0x11c8   :  { %7653 = vrcp.f32 %v5313_v12  ;;  %v5320_v39 = vadd.f32 1.0, %v7652_v45 }
0x11ca   :  { %7655 = vrcp.f32 %v5320_v39 }
0x11d4   :  { %v5414_v15 = vpop.f32.mrf.mxu1  ;;  %v5484_v17 = vpop.f32.mrf.mxu0 }
0x11d5   :  { %v7654_v18 = vpop.eup %7653  ;;  %v5415_v19 = vadd.f32 %v5414_v15, %v5347_v5  ;;  %v5485_v20 = vadd.f32 %v5484_v17, %v5347_v5 }
0x11d6   :  { %v5324_v21 = vmul.f32 %v7654_v18, %v5323_v9  ;;  %v7241_v22 = vpop.f32.mrf.mxu1  ;;  %v7276_v23 = vpop.f32.mrf.mxu0 }
0x11d7   :  { %5909 = vst.msk [vmem:[%s10187_s6] sm:$0x3] %vm5908_vm5, %v5415_v19  ;;  %6061 = vst.msk [vmem:[%s10187_s6 + $0x2] sm:$0x3] %vm5908_vm5, %v5485_v20  ;;  %v7656_v54 = vpop.eup %7655 }
0x11d8   :  { %v5325_v50 = vadd.f32 %v5324_v21, %v5165_v2  ;;  %v5327_v28 = vsub.f32 1.0, %v7656_v54  ;;  %v5329_v44 = vmul.f32 %v7656_v54, %v9828_v35 }
0x11da   :  { %7657 = vtanh.f32 %v5325_v50 }
0x11e7   :  { %v7658_v13 = vpop.eup %7657 }
0x11e8   :  { %v5328_v59 = vmul.f32 %v7658_v13, %v5327_v28 }
0x11ea   :  { %v5330_v37 = vadd.f32 %v5329_v44, %v5328_v59 }
0x11ec   :  { %7485 = vmatmul.mubr.f32.vlgmr.msra.gmra.mxu0 %v5330_v37 }
0x11f6   :  { %v5554_v32 = vpop.f32.mrf.mxu1  ;;  %v5624_v31 = vpop.f32.mrf.mxu0 }
0x11f7   :  { %v5555_v33 = vadd.f32 %v5554_v32, %v5347_v5  ;;  %v5625_v36 = vadd.f32 %v5624_v31, %v5347_v5 }
0x11f8   :  { %v7311_v40 = vpop.f32.mrf.mxu1  ;;  %v7346_v57 = vpop.f32.mrf.mxu0 }
0x11f9   :  { %6062 = vst.msk [vmem:[%s10187_s6 + $0x4] sm:$0x3] %vm5908_vm5, %v5555_v33  ;;  %6063 = vst.msk [vmem:[%s10187_s6 + $0x6] sm:$0x3] %vm5908_vm5, %v5625_v36 }
0x1218   :  { %v5694_v38 = vpop.f32.mrf.mxu1  ;;  %v5764_v35 = vpop.f32.mrf.mxu0 }
0x1219   :  { %v5695_v34 = vadd.f32 %v5694_v38, %v5347_v5  ;;  %v5765_v56 = vadd.f32 %v5764_v35, %v5347_v5 }
0x121a   :  { %v7381_v29 = vpop.f32.mrf.mxu1  ;;  %v7416_v7 = vpop.f32.mrf.mxu0 }
0x121b   :  { %6064 = vst.msk [vmem:[%s10187_s6 + $0x8] sm:$0x3] %vm5908_vm5, %v5695_v34  ;;  %6065 = vst.msk [vmem:[%s10187_s6 + $0xa] sm:$0x3] %vm5908_vm5, %v5765_v56 }
0x1239   :  { %v5834_v48 = vpop.f32.mrf.mxu1 }
0x123a   :  { %v5835_v49 = vadd.f32 %v5834_v48, %v5347_v5 }
0x123b   :  { %v7451_v14 = vpop.f32.mrf.mxu1 }
0x123c   :  { %6066 = vst.msk [vmem:[%s10187_s6 + $0xc] sm:$0x3] %vm5908_vm5, %v5835_v49 }
0x12ac   :  { %v5904_v30 = vpop.f32.mrf.mxu0 }
0x12ad   :  { %v5905_v61 = vadd.f32 %v5904_v30, %v5347_v5 }
0x12ae   :  { %v7486_v1 = vpop.f32.mrf.mxu0 }
0x12af   :  { %6067 = vst.msk [vmem:[%s10187_s6 + $0xe] sm:$0x3] %vm5908_vm5, %v5905_v61 }
0x12b0   :  { %5932 = vsyncpa [#allocation3], 1 }
0x12b1   :  { %5933 = vsyncpa [#allocation5], 1 }

</bundles_post_ra>
